<compile_context>
chip_gen: v5e
topology: v5e:2x2
jax: 0.10.0
libtpu: 0.0.40
codegen_flags: <defaults>
</compile_context>

<pallas_src>
import functools
import math

import jax
import jax.numpy as jnp
import numpy as np
from jax.experimental import pallas as pl
from jax.experimental.pallas import tpu as pltpu

C0, C1 = 32, 64          # OutputBlock channels [32, 64], end_channel = 1
CHEB_K = 3
MISC_W = max(2 * C0, C1)


def _sago_kernel(x_ref, wqkv_ref, wo_ref, sup_ref, emb_ref, wp_ref, bn_ref,
                 cw_ref, fc1w_ref, ln_ref, misc_ref, o_ref, *, n_heads, t_len, tb):
    H, T, TB = n_heads, t_len, tb
    f32, bf16 = jnp.float32, jnp.bfloat16
    xb = x_ref[...]                                   # (TB, N, T) vertex-major f32
    N = xb.shape[1]
    C = H * T
    M = TB * N
    xm = xb.reshape(M, T).astype(bf16)                # fold batch into matmul M

    # ---------------- SAT3D: fused QKV projection + per-head spatial attention.
    qkv = jnp.dot(xm, wqkv_ref[...], preferred_element_type=f32)      # (M, 3C)
    qkv_bf = qkv.astype(bf16)
    q3 = qkv_bf[:, :C].reshape(TB, N, C)
    k3 = qkv_bf[:, C:2 * C].reshape(TB, N, C)
    v3 = qkv_bf[:, 2 * C:].reshape(TB, N, C)
    scale = 1.0 / math.sqrt(T)
    # Per-head outputs are folded straight into the output projection
    # (attn = sum_h head_h @ wo[h]) -> no VMEM scratch, no lane concatenation.
    attn = None
    for h in range(H):
        sl = slice(h * T, (h + 1) * T)
        qh, kh, vh = q3[:, :, sl], k3[:, :, sl], v3[:, :, sl]
        s = jnp.einsum('bnt,bmt->bnm', qh, kh,
                       preferred_element_type=f32) * scale            # (TB, N, N)
        s = s - jnp.max(s, axis=-1, keepdims=True)
        e = jnp.exp(s)
        den = jnp.sum(e, axis=-1, keepdims=True)
        inv = pl.reciprocal(den, approx=True)
        inv = inv * (2.0 - den * inv)                 # Newton step -> ~f32 exact
        a = (e * inv).astype(bf16)
        hv = jnp.einsum('bnm,bmt->bnt', a, vh, preferred_element_type=f32)
        proj = jnp.dot(hv.reshape(M, T).astype(bf16), wo_ref[h],
                       preferred_element_type=f32)                    # (M, C)
        attn = proj if attn is None else attn + proj
    attn3 = attn.reshape(TB, N, C)                                    # f32

    # ---------------- AdpGCN: adaptive Chebyshev graph conv + residual.
    # supports[0] is the identity -> handled implicitly with attn3 itself.
    attn_bf = attn3.astype(bf16)
    sup_b = jnp.broadcast_to(sup_ref[...][None], (TB, 2 * N, N))      # bf16
    sup_out = jnp.einsum('bkm,bmc->bkc', sup_b, attn_bf,
                         preferred_element_type=f32)                  # (TB, 2N, C)
    xg = jnp.concatenate(
        [attn3, sup_out[:, :N, :], sup_out[:, N:, :]], axis=-1)       # (TB, N, 3C)
    # ONE wide MXU matmul against the concatenated weights_pool (3C, D*C).
    g_all = jnp.dot(xg.reshape(M, CHEB_K * C).astype(bf16), wp_ref[...],
                    preferred_element_type=f32)                       # (M, D*C)
    emb = emb_ref[...]                                                # (N, D) f32
    D = emb.shape[1]
    g3 = g_all.reshape(TB, N, D * C)
    gc = emb[:, 0][None, :, None] * g3[:, :, :C]                      # VPU reduce
    for d in range(1, D):
        gc = gc + emb[:, d][None, :, None] * g3[:, :, d * C:(d + 1) * C]
    x2 = (gc + bn_ref[...][None] + attn3).reshape(M, C)               # (M, C) f32

    # ---------------- OutputBlock: temporal GLU conv (residual folded) + LN + FCs.
    conv = (jnp.dot(x2.astype(bf16), cw_ref[...], preferred_element_type=f32)
            + misc_ref[0:1, :2 * C0])                                 # (M, 2*C0)
    glu = conv[:, :C0] * jax.nn.sigmoid(conv[:, C0:])                 # (M, C0)

    # LayerNorm jointly over [n_vertex, C0], per sample (NOT across the TB block).
    y = glu.reshape(TB, N, C0)
    cnt = float(N * C0)
    mu = jnp.sum(jnp.sum(y, axis=2, keepdims=True), axis=1, keepdims=True) / cnt
    dlt = y - mu
    var = jnp.sum(jnp.sum(dlt * dlt, axis=2, keepdims=True),
                  axis=1, keepdims=True) / cnt
    yn = dlt * jax.lax.rsqrt(var + 1e-5) * ln_ref[0][None] + ln_ref[1][None]

    z = jnp.maximum(
        jnp.dot(yn.reshape(M, C0).astype(bf16), fc1w_ref[...],
                preferred_element_type=f32) + misc_ref[1:2, :C1], 0.0)  # (M, C1)
    # FC2 as a (1,C1)@(C1,M) matmul -> lane-dense (1, TB*N) output row.
    out_row = jnp.dot(misc_ref[2:3, :C1], z.T,
                      preferred_element_type=f32) + misc_ref[3, 0]    # (1, M)
    o_ref[...] = out_row[None]                                        # (1, 1, M)


def make_params(key, *, n_his, n_vertex, n_heads, emb_dim):
    T, N, H, D = n_his, n_vertex, n_heads, emb_dim
    C = T * H
    ks = jax.random.split(key, 12)

    def init(k, shape, s=0.1):
        return jax.random.normal(k, shape, jnp.float32) * s

    return dict(
        wq=init(ks[0], (T, C)), wk=init(ks[1], (T, C)), wv=init(ks[2], (T, C)),
        wo=init(ks[3], (C, C)),
        node_emb=init(ks[4], (N, D), 1.0),
        weights_pool=init(ks[5], (D, CHEB_K, C, C)),
        bias_pool=init(ks[6], (D, C)),
        conv_w=init(ks[7], (2 * C0, H, T)),        # CausalConv2d (out, in, Kt) w/o width
        conv_b=init(ks[8], (2 * C0,)),
        ln_w=jnp.ones((N, C0), jnp.float32),
        ln_b=jnp.zeros((N, C0), jnp.float32),
        fc1_w=init(ks[9], (C1, C0)),               # torch Linear (out, in)
        fc1_b=init(ks[10], (C1,)),
        fc2_w=init(ks[11], (1, C1)),
        fc2_b=jnp.zeros((1,), jnp.float32),
    )


def _adaptive_supports(node_emb):
    N = node_emb.shape[0]
    adj = jax.nn.softmax(jax.nn.relu(node_emb @ node_emb.T), axis=1)
    s0 = jnp.eye(N, dtype=jnp.float32)
    s2 = 2.0 * adj @ adj - s0
    return jnp.stack([s0, adj, s2], axis=0)        # (3, N, N)


def _precompute(params, *, n_heads, n_his):
    """Parameter-only glue (no dependence on x). MXU operands cast to bf16 once."""
    T, H = n_his, n_heads
    C = T * H
    bf16 = jnp.bfloat16
    E = params["node_emb"]
    N, D = E.shape
    sup = _adaptive_supports(E)[1:].reshape(2 * N, N)      # stacked non-identity supports
    # weights_pool (D, K, Cin, Cout) -> (K*Cin, D*Cout) for ONE wide matmul.
    wp_cat = jnp.transpose(params["weights_pool"], (1, 2, 0, 3)).reshape(
        CHEB_K * C, D * C)
    bn = E @ params["bias_pool"]                           # (N, C) f32
    wqkv = jnp.concatenate([params["wq"], params["wk"], params["wv"]], axis=1)
    wo3 = params["wo"].reshape(H, T, C)                    # per-head wo row blocks
    # Temporal conv, transposed, with GLU residual (last time step of each head,
    # channel zero-padded) folded into the first C0 output columns.
    cw = params["conv_w"].reshape(2 * C0, C).T             # (C, 2*C0)
    rows = jnp.arange(H) * T + (T - 1)
    P = jnp.zeros((C, C0), jnp.float32).at[rows, jnp.arange(H)].set(1.0)
    cw_aug = cw + jnp.pad(P, ((0, 0), (0, C0)))
    ln = jnp.stack([params["ln_w"], params["ln_b"]], axis=0)          # (2, N, C0)
    fc1_wT = params["fc1_w"].T                                        # (C0, C1)
    misc = jnp.zeros((4, MISC_W), jnp.float32)
    misc = misc.at[0, :2 * C0].set(params["conv_b"])
    misc = misc.at[1, :C1].set(params["fc1_b"])
    misc = misc.at[2, :C1].set(params["fc2_w"][0])
    misc = misc.at[3, 0].set(params["fc2_b"][0])
    return (wqkv.astype(bf16), wo3.astype(bf16), sup.astype(bf16), E,
            wp_cat.astype(bf16), bn, cw_aug.astype(bf16), fc1_wT.astype(bf16),
            ln, misc)


def _pick_tb(batch, n_vertex, *, target_rows=512, max_rows=2048):
    """Smallest batch block reaching >= target_rows MXU rows per grid step
    (keeps >=2 steps for v7x megacore only when each step is still full-height);
    otherwise take the whole batch in one step (grid is just a serial loop)."""
    cap = max(1, max_rows // n_vertex)
    divisors = [d for d in range(1, batch + 1) if batch % d == 0 and d <= cap]
    if not divisors:
        divisors = [1]
    for d in divisors:
        if d * n_vertex >= target_rows:
            return d
    return divisors[-1]


def sago_forward(x, params, *, n_heads, n_his):
    B = x.shape[0]
    T, H = n_his, n_heads
    N = x.shape[-1]
    xt = jnp.transpose(x[:, 0], (0, 2, 1))         # (B, N, T) vertex-major
    tb = _pick_tb(B, N)

    weights = _precompute(params, n_heads=H, n_his=T)
    operands = (xt,) + weights

    def bcast(shape):
        nd = len(shape)
        return pl.BlockSpec(shape, lambda b, _nd=nd: (0,) * _nd)

    in_specs = [pl.BlockSpec((tb, N, T), lambda b: (b, 0, 0))]
    in_specs += [bcast(w.shape) for w in weights]
    # Lane-dense output: one (1, 1, tb*N) row per grid step.
    out_specs = pl.BlockSpec((1, 1, tb * N), lambda b: (b, 0, 0))

    kernel = functools.partial(_sago_kernel, n_heads=H, t_len=T, tb=tb)
    out = pl.pallas_call(
        kernel,
        out_shape=jax.ShapeDtypeStruct((B // tb, 1, tb * N), jnp.float32),
        grid_spec=pltpu.PrefetchScalarGridSpec(
            num_scalar_prefetch=0, grid=(B // tb,),
            in_specs=in_specs, out_specs=out_specs),
        compiler_params=pltpu.CompilerParams(
            dimension_semantics=("parallel",),
            vmem_limit_bytes=32 * 1024 * 1024),
    )(*operands)
    return out.reshape(B, N)[:, None, None, :]     # (B, 1, 1, N)


def sago_reference(x, params, *, n_heads, n_his):
    """Pure-JAX f32 reference mirroring the PyTorch forward."""
    B = x.shape[0]
    T, H = n_his, n_heads
    N = x.shape[-1]
    xt = jnp.transpose(x[:, 0], (0, 2, 1))                                   # (B, N, T)
    q, k, v = xt @ params["wq"], xt @ params["wk"], xt @ params["wv"]
    heads = []
    for h in range(H):
        qh, kh, vh = (a[..., h * T:(h + 1) * T] for a in (q, k, v))
        s = jnp.einsum("bnt,bmt->bnm", qh, kh) / math.sqrt(T)
        heads.append(jnp.einsum("bnm,bmt->bnt", jax.nn.softmax(s, axis=-1), vh))
    attn = jnp.concatenate(heads, axis=-1) @ params["wo"]                    # (B, N, C)

    supports = _adaptive_supports(params["node_emb"])
    wn = jnp.einsum("nd,dkio->nkio", params["node_emb"], params["weights_pool"])
    bn = params["node_emb"] @ params["bias_pool"]
    xg = jnp.einsum("knm,bmc->bnkc", supports, attn)
    gconv = jnp.einsum("bnkc,nkco->bno", xg, wn) + bn
    x2 = gconv + attn                                                        # (B, N, C)

    x_flat = jnp.transpose(x2, (0, 2, 1))                                    # (B, H*T, N)
    conv_w = params["conv_w"].reshape(2 * C0, H * T)
    conv = jnp.einsum("oc,bcn->bon", conv_w, x_flat) + params["conv_b"][None, :, None]
    x_p, x_q = conv[:, :C0], conv[:, C0:]
    x_last = x_flat.reshape(B, H, T, N)[:, :, T - 1, :]                      # (B, H, N)
    x_in = jnp.concatenate([x_last, jnp.zeros((B, C0 - H, N), jnp.float32)], axis=1)
    glu = (x_p + x_in) * jax.nn.sigmoid(x_q)                                 # (B, C0, N)
    y = jnp.transpose(glu, (0, 2, 1))                                        # (B, N, C0)
    mu = jnp.mean(y, axis=(1, 2), keepdims=True)
    var = jnp.mean((y - mu) ** 2, axis=(1, 2), keepdims=True)
    yn = (y - mu) * jax.lax.rsqrt(var + 1e-5) * params["ln_w"] + params["ln_b"]
    z = jax.nn.relu(yn @ params["fc1_w"].T + params["fc1_b"])
    out = z @ params["fc2_w"].T + params["fc2_b"]                            # (B, N, 1)
    return jnp.transpose(out, (0, 2, 1))[:, :, None, :]                      # (B, 1, 1, N)


if __name__ == "__main__":
    B, T, N, H, D = 4, 8, 16, 4, 8          # batch, n_his, n_vertex, n_heads, emb_dim
    key = jax.random.PRNGKey(0)
    kx, kp = jax.random.split(key)
    x = jax.random.normal(kx, (B, 1, T, N), jnp.float32)
    params = make_params(kp, n_his=T, n_vertex=N, n_heads=H, emb_dim=D)

    out = sago_forward(x, params, n_heads=H, n_his=T)
    out = jax.block_until_ready(out)
    assert out.shape == (B, 1, 1, N)

    ref = sago_reference(x, params, n_heads=H, n_his=T)
    # Tolerance widened vs f32-only version: MXU operands are bf16 (per perf
    # review); all VPU math (softmax, sigmoid, LayerNorm) remains f32.
    np.testing.assert_allclose(np.asarray(out), np.asarray(ref), rtol=3e-2, atol=3e-2)
    print("KERNEL_OK")
</pallas_src>

<mosaic_0001>
module attributes {stable_mosaic.version = 11 : i64} {
  func.func @_sago_kernel(%arg0: i32, %arg1: memref<4x16x8xf32, #tpu.memory_space<vmem>>, %arg2: memref<8x96xbf16, #tpu.memory_space<vmem>>, %arg3: memref<4x8x32xbf16, #tpu.memory_space<vmem>>, %arg4: memref<32x16xbf16, #tpu.memory_space<vmem>>, %arg5: memref<16x8xf32, #tpu.memory_space<vmem>>, %arg6: memref<96x256xbf16, #tpu.memory_space<vmem>>, %arg7: memref<16x32xf32, #tpu.memory_space<vmem>>, %arg8: memref<32x64xbf16, #tpu.memory_space<vmem>>, %arg9: memref<32x64xbf16, #tpu.memory_space<vmem>>, %arg10: memref<2x16x32xf32, #tpu.memory_space<vmem>>, %arg11: memref<4x64xf32, #tpu.memory_space<vmem>>, %arg12: memref<1x1x64xf32, #tpu.memory_space<vmem>>) attributes {dimension_semantics = [#tpu.dimension_semantics<parallel>], iteration_bounds = array<i64: 1>, scalar_prefetch = 0 : i64, scratch_operands = 0 : i64, tpu.core_type = #tpu.core_type<tc>, window_params = [{transform_indices = @transform_0, window_bounds = array<i64: 4, 16, 8>}, {pipeline_mode = #tpu.pipeline_mode<synchronous>, transform_indices = @transform_1, window_bounds = array<i64: 8, 96>}, {pipeline_mode = #tpu.pipeline_mode<synchronous>, transform_indices = @transform_2, window_bounds = array<i64: 4, 8, 32>}, {pipeline_mode = #tpu.pipeline_mode<synchronous>, transform_indices = @transform_3, window_bounds = array<i64: 32, 16>}, {pipeline_mode = #tpu.pipeline_mode<synchronous>, transform_indices = @transform_4, window_bounds = array<i64: 16, 8>}, {pipeline_mode = #tpu.pipeline_mode<synchronous>, transform_indices = @transform_5, window_bounds = array<i64: 96, 256>}, {pipeline_mode = #tpu.pipeline_mode<synchronous>, transform_indices = @transform_6, window_bounds = array<i64: 16, 32>}, {pipeline_mode = #tpu.pipeline_mode<synchronous>, transform_indices = @transform_7, window_bounds = array<i64: 32, 64>}, {pipeline_mode = #tpu.pipeline_mode<synchronous>, transform_indices = @transform_8, window_bounds = array<i64: 32, 64>}, {pipeline_mode = #tpu.pipeline_mode<synchronous>, transform_indices = @transform_9, window_bounds = array<i64: 2, 16, 32>}, {pipeline_mode = #tpu.pipeline_mode<synchronous>, transform_indices = @transform_10, window_bounds = array<i64: 4, 64>}, {transform_indices = @transform_11, window_bounds = array<i64: 1, 1, 64>}]} {
    %c0 = arith.constant 0 : index
    %c0_0 = arith.constant 0 : index
    %c0_1 = arith.constant 0 : index
    %0 = vector.load %arg1[%c0, %c0_0, %c0_1] : memref<4x16x8xf32, #tpu.memory_space<vmem>>, vector<4x16x8xf32>
    %1 = vector.shape_cast %0 : vector<4x16x8xf32> to vector<64x8xf32>
    %2 = arith.truncf %1 : vector<64x8xf32> to vector<64x8xbf16>
    %c0_2 = arith.constant 0 : index
    %c0_3 = arith.constant 0 : index
    %3 = vector.load %arg2[%c0_2, %c0_3] : memref<8x96xbf16, #tpu.memory_space<vmem>>, vector<8x96xbf16>
    %cst = arith.constant dense<0.000000e+00> : vector<64x96xf32>
    %4 = tpu.matmul %2, %3, %cst {dimension_numbers = #tpu.dot_dimension_numbers<[1], [0], [0], [1], [0, 0, 1, 1], [], []>} : vector<64x8xbf16>, vector<8x96xbf16>, vector<64x96xf32> -> vector<64x96xf32>
    %5 = arith.truncf %4 : vector<64x96xf32> to vector<64x96xbf16>
    %6 = vector.extract_strided_slice %5 {offsets = [0, 0], sizes = [64, 32], strides = [1, 1]} : vector<64x96xbf16> to vector<64x32xbf16>
    %7 = vector.shape_cast %6 : vector<64x32xbf16> to vector<4x16x32xbf16>
    %8 = vector.extract_strided_slice %5 {offsets = [0, 32], sizes = [64, 32], strides = [1, 1]} : vector<64x96xbf16> to vector<64x32xbf16>
    %9 = vector.shape_cast %8 : vector<64x32xbf16> to vector<4x16x32xbf16>
    %10 = vector.extract_strided_slice %5 {offsets = [0, 64], sizes = [64, 32], strides = [1, 1]} : vector<64x96xbf16> to vector<64x32xbf16>
    %11 = vector.shape_cast %10 : vector<64x32xbf16> to vector<4x16x32xbf16>
    %12 = vector.extract_strided_slice %7 {offsets = [0, 0, 0], sizes = [4, 16, 8], strides = [1, 1, 1]} : vector<4x16x32xbf16> to vector<4x16x8xbf16>
    %13 = vector.extract_strided_slice %9 {offsets = [0, 0, 0], sizes = [4, 16, 8], strides = [1, 1, 1]} : vector<4x16x32xbf16> to vector<4x16x8xbf16>
    %14 = vector.extract_strided_slice %11 {offsets = [0, 0, 0], sizes = [4, 16, 8], strides = [1, 1, 1]} : vector<4x16x32xbf16> to vector<4x16x8xbf16>
    "tpu.trace_start"() <{level = 10 : i32, message = "bnt,bmt->bnm"}> : () -> ()
    %cst_4 = arith.constant dense<0.000000e+00> : vector<4x16x16xf32>
    %15 = tpu.matmul %12, %13, %cst_4 {dimension_numbers = #tpu.dot_dimension_numbers<[2], [2], [1], [1], [0, 0, 0, 1, 1, 1], [0], [0]>} : vector<4x16x8xbf16>, vector<4x16x8xbf16>, vector<4x16x16xf32> -> vector<4x16x16xf32>
    "tpu.trace_stop"() : () -> ()
    %cst_5 = arith.constant 0.353553385 : f32
    %16 = vector.broadcast %cst_5 : f32 to vector<4x16x16xf32>
    %17 = arith.mulf %15, %16 : vector<4x16x16xf32>
    %cst_6 = arith.constant dense<0xFF800000> : vector<4x16xf32>
    %18 = vector.multi_reduction <maximumf>, %17, %cst_6 [2] : vector<4x16x16xf32> to vector<4x16xf32>
    %19 = vector.shape_cast %18 : vector<4x16xf32> to vector<4x16x1xf32>
    %20 = vector.broadcast %19 : vector<4x16x1xf32> to vector<4x16x16xf32>
    %21 = arith.subf %17, %20 : vector<4x16x16xf32>
    %22 = math.exp %21 : vector<4x16x16xf32>
    %cst_7 = arith.constant dense<0.000000e+00> : vector<4x16xf32>
    %23 = vector.multi_reduction <add>, %22, %cst_7 [2] : vector<4x16x16xf32> to vector<4x16xf32>
    %24 = vector.shape_cast %23 : vector<4x16xf32> to vector<4x16x1xf32>
    %25 = tpu.reciprocal %24 {approx = true} : vector<4x16x1xf32> -> vector<4x16x1xf32>
    %26 = arith.mulf %24, %25 : vector<4x16x1xf32>
    %cst_8 = arith.constant 2.000000e+00 : f32
    %27 = vector.broadcast %cst_8 : f32 to vector<4x16x1xf32>
    %28 = arith.subf %27, %26 : vector<4x16x1xf32>
    %29 = arith.mulf %25, %28 : vector<4x16x1xf32>
    %30 = vector.broadcast %29 : vector<4x16x1xf32> to vector<4x16x16xf32>
    %31 = arith.mulf %22, %30 : vector<4x16x16xf32>
    %32 = arith.truncf %31 : vector<4x16x16xf32> to vector<4x16x16xbf16>
    "tpu.trace_start"() <{level = 10 : i32, message = "bnm,bmt->bnt"}> : () -> ()
    %cst_9 = arith.constant dense<0.000000e+00> : vector<4x16x8xf32>
    %33 = tpu.matmul %32, %14, %cst_9 {dimension_numbers = #tpu.dot_dimension_numbers<[2], [1], [1], [2], [0, 0, 0, 1, 1, 2], [0], [0]>} : vector<4x16x16xbf16>, vector<4x16x8xbf16>, vector<4x16x8xf32> -> vector<4x16x8xf32>
    "tpu.trace_stop"() : () -> ()
    %34 = vector.shape_cast %33 : vector<4x16x8xf32> to vector<64x8xf32>
    %35 = arith.truncf %34 : vector<64x8xf32> to vector<64x8xbf16>
    %c0_10 = arith.constant 0 : index
    %c0_11 = arith.constant 0 : index
    %c0_12 = arith.constant 0 : index
    %36 = vector.load %arg3[%c0_10, %c0_11, %c0_12] : memref<4x8x32xbf16, #tpu.memory_space<vmem>>, vector<1x8x32xbf16>
    %37 = vector.shape_cast %36 : vector<1x8x32xbf16> to vector<8x32xbf16>
    %cst_13 = arith.constant dense<0.000000e+00> : vector<64x32xf32>
    %38 = tpu.matmul %35, %37, %cst_13 {dimension_numbers = #tpu.dot_dimension_numbers<[1], [0], [0], [1], [0, 0, 1, 1], [], []>} : vector<64x8xbf16>, vector<8x32xbf16>, vector<64x32xf32> -> vector<64x32xf32>
    %39 = vector.extract_strided_slice %7 {offsets = [0, 0, 8], sizes = [4, 16, 8], strides = [1, 1, 1]} : vector<4x16x32xbf16> to vector<4x16x8xbf16>
    %40 = vector.extract_strided_slice %9 {offsets = [0, 0, 8], sizes = [4, 16, 8], strides = [1, 1, 1]} : vector<4x16x32xbf16> to vector<4x16x8xbf16>
    %41 = vector.extract_strided_slice %11 {offsets = [0, 0, 8], sizes = [4, 16, 8], strides = [1, 1, 1]} : vector<4x16x32xbf16> to vector<4x16x8xbf16>
    "tpu.trace_start"() <{level = 10 : i32, message = "bnt,bmt->bnm"}> : () -> ()
    %cst_14 = arith.constant dense<0.000000e+00> : vector<4x16x16xf32>
    %42 = tpu.matmul %39, %40, %cst_14 {dimension_numbers = #tpu.dot_dimension_numbers<[2], [2], [1], [1], [0, 0, 0, 1, 1, 1], [0], [0]>} : vector<4x16x8xbf16>, vector<4x16x8xbf16>, vector<4x16x16xf32> -> vector<4x16x16xf32>
    "tpu.trace_stop"() : () -> ()
    %cst_15 = arith.constant 0.353553385 : f32
    %43 = vector.broadcast %cst_15 : f32 to vector<4x16x16xf32>
    %44 = arith.mulf %42, %43 : vector<4x16x16xf32>
    %cst_16 = arith.constant dense<0xFF800000> : vector<4x16xf32>
    %45 = vector.multi_reduction <maximumf>, %44, %cst_16 [2] : vector<4x16x16xf32> to vector<4x16xf32>
    %46 = vector.shape_cast %45 : vector<4x16xf32> to vector<4x16x1xf32>
    %47 = vector.broadcast %46 : vector<4x16x1xf32> to vector<4x16x16xf32>
    %48 = arith.subf %44, %47 : vector<4x16x16xf32>
    %49 = math.exp %48 : vector<4x16x16xf32>
    %cst_17 = arith.constant dense<0.000000e+00> : vector<4x16xf32>
    %50 = vector.multi_reduction <add>, %49, %cst_17 [2] : vector<4x16x16xf32> to vector<4x16xf32>
    %51 = vector.shape_cast %50 : vector<4x16xf32> to vector<4x16x1xf32>
    %52 = tpu.reciprocal %51 {approx = true} : vector<4x16x1xf32> -> vector<4x16x1xf32>
    %53 = arith.mulf %51, %52 : vector<4x16x1xf32>
    %cst_18 = arith.constant 2.000000e+00 : f32
    %54 = vector.broadcast %cst_18 : f32 to vector<4x16x1xf32>
    %55 = arith.subf %54, %53 : vector<4x16x1xf32>
    %56 = arith.mulf %52, %55 : vector<4x16x1xf32>
    %57 = vector.broadcast %56 : vector<4x16x1xf32> to vector<4x16x16xf32>
    %58 = arith.mulf %49, %57 : vector<4x16x16xf32>
    %59 = arith.truncf %58 : vector<4x16x16xf32> to vector<4x16x16xbf16>
    "tpu.trace_start"() <{level = 10 : i32, message = "bnm,bmt->bnt"}> : () -> ()
    %cst_19 = arith.constant dense<0.000000e+00> : vector<4x16x8xf32>
    %60 = tpu.matmul %59, %41, %cst_19 {dimension_numbers = #tpu.dot_dimension_numbers<[2], [1], [1], [2], [0, 0, 0, 1, 1, 2], [0], [0]>} : vector<4x16x16xbf16>, vector<4x16x8xbf16>, vector<4x16x8xf32> -> vector<4x16x8xf32>
    "tpu.trace_stop"() : () -> ()
    %61 = vector.shape_cast %60 : vector<4x16x8xf32> to vector<64x8xf32>
    %62 = arith.truncf %61 : vector<64x8xf32> to vector<64x8xbf16>
    %c1 = arith.constant 1 : index
    %c0_20 = arith.constant 0 : index
    %c0_21 = arith.constant 0 : index
    %63 = vector.load %arg3[%c1, %c0_20, %c0_21] : memref<4x8x32xbf16, #tpu.memory_space<vmem>>, vector<1x8x32xbf16>
    %64 = vector.shape_cast %63 : vector<1x8x32xbf16> to vector<8x32xbf16>
    %cst_22 = arith.constant dense<0.000000e+00> : vector<64x32xf32>
    %65 = tpu.matmul %62, %64, %cst_22 {dimension_numbers = #tpu.dot_dimension_numbers<[1], [0], [0], [1], [0, 0, 1, 1], [], []>} : vector<64x8xbf16>, vector<8x32xbf16>, vector<64x32xf32> -> vector<64x32xf32>
    %66 = arith.addf %38, %65 : vector<64x32xf32>
    %67 = vector.extract_strided_slice %7 {offsets = [0, 0, 16], sizes = [4, 16, 8], strides = [1, 1, 1]} : vector<4x16x32xbf16> to vector<4x16x8xbf16>
    %68 = vector.extract_strided_slice %9 {offsets = [0, 0, 16], sizes = [4, 16, 8], strides = [1, 1, 1]} : vector<4x16x32xbf16> to vector<4x16x8xbf16>
    %69 = vector.extract_strided_slice %11 {offsets = [0, 0, 16], sizes = [4, 16, 8], strides = [1, 1, 1]} : vector<4x16x32xbf16> to vector<4x16x8xbf16>
    "tpu.trace_start"() <{level = 10 : i32, message = "bnt,bmt->bnm"}> : () -> ()
    %cst_23 = arith.constant dense<0.000000e+00> : vector<4x16x16xf32>
    %70 = tpu.matmul %67, %68, %cst_23 {dimension_numbers = #tpu.dot_dimension_numbers<[2], [2], [1], [1], [0, 0, 0, 1, 1, 1], [0], [0]>} : vector<4x16x8xbf16>, vector<4x16x8xbf16>, vector<4x16x16xf32> -> vector<4x16x16xf32>
    "tpu.trace_stop"() : () -> ()
    %cst_24 = arith.constant 0.353553385 : f32
    %71 = vector.broadcast %cst_24 : f32 to vector<4x16x16xf32>
    %72 = arith.mulf %70, %71 : vector<4x16x16xf32>
    %cst_25 = arith.constant dense<0xFF800000> : vector<4x16xf32>
    %73 = vector.multi_reduction <maximumf>, %72, %cst_25 [2] : vector<4x16x16xf32> to vector<4x16xf32>
    %74 = vector.shape_cast %73 : vector<4x16xf32> to vector<4x16x1xf32>
    %75 = vector.broadcast %74 : vector<4x16x1xf32> to vector<4x16x16xf32>
    %76 = arith.subf %72, %75 : vector<4x16x16xf32>
    %77 = math.exp %76 : vector<4x16x16xf32>
    %cst_26 = arith.constant dense<0.000000e+00> : vector<4x16xf32>
    %78 = vector.multi_reduction <add>, %77, %cst_26 [2] : vector<4x16x16xf32> to vector<4x16xf32>
    %79 = vector.shape_cast %78 : vector<4x16xf32> to vector<4x16x1xf32>
    %80 = tpu.reciprocal %79 {approx = true} : vector<4x16x1xf32> -> vector<4x16x1xf32>
    %81 = arith.mulf %79, %80 : vector<4x16x1xf32>
    %cst_27 = arith.constant 2.000000e+00 : f32
    %82 = vector.broadcast %cst_27 : f32 to vector<4x16x1xf32>
    %83 = arith.subf %82, %81 : vector<4x16x1xf32>
    %84 = arith.mulf %80, %83 : vector<4x16x1xf32>
    %85 = vector.broadcast %84 : vector<4x16x1xf32> to vector<4x16x16xf32>
    %86 = arith.mulf %77, %85 : vector<4x16x16xf32>
    %87 = arith.truncf %86 : vector<4x16x16xf32> to vector<4x16x16xbf16>
    "tpu.trace_start"() <{level = 10 : i32, message = "bnm,bmt->bnt"}> : () -> ()
    %cst_28 = arith.constant dense<0.000000e+00> : vector<4x16x8xf32>
    %88 = tpu.matmul %87, %69, %cst_28 {dimension_numbers = #tpu.dot_dimension_numbers<[2], [1], [1], [2], [0, 0, 0, 1, 1, 2], [0], [0]>} : vector<4x16x16xbf16>, vector<4x16x8xbf16>, vector<4x16x8xf32> -> vector<4x16x8xf32>
    "tpu.trace_stop"() : () -> ()
    %89 = vector.shape_cast %88 : vector<4x16x8xf32> to vector<64x8xf32>
    %90 = arith.truncf %89 : vector<64x8xf32> to vector<64x8xbf16>
    %c2 = arith.constant 2 : index
    %c0_29 = arith.constant 0 : index
    %c0_30 = arith.constant 0 : index
    %91 = vector.load %arg3[%c2, %c0_29, %c0_30] : memref<4x8x32xbf16, #tpu.memory_space<vmem>>, vector<1x8x32xbf16>
    %92 = vector.shape_cast %91 : vector<1x8x32xbf16> to vector<8x32xbf16>
    %cst_31 = arith.constant dense<0.000000e+00> : vector<64x32xf32>
    %93 = tpu.matmul %90, %92, %cst_31 {dimension_numbers = #tpu.dot_dimension_numbers<[1], [0], [0], [1], [0, 0, 1, 1], [], []>} : vector<64x8xbf16>, vector<8x32xbf16>, vector<64x32xf32> -> vector<64x32xf32>
    %94 = arith.addf %66, %93 : vector<64x32xf32>
    %95 = vector.extract_strided_slice %7 {offsets = [0, 0, 24], sizes = [4, 16, 8], strides = [1, 1, 1]} : vector<4x16x32xbf16> to vector<4x16x8xbf16>
    %96 = vector.extract_strided_slice %9 {offsets = [0, 0, 24], sizes = [4, 16, 8], strides = [1, 1, 1]} : vector<4x16x32xbf16> to vector<4x16x8xbf16>
    %97 = vector.extract_strided_slice %11 {offsets = [0, 0, 24], sizes = [4, 16, 8], strides = [1, 1, 1]} : vector<4x16x32xbf16> to vector<4x16x8xbf16>
    "tpu.trace_start"() <{level = 10 : i32, message = "bnt,bmt->bnm"}> : () -> ()
    %cst_32 = arith.constant dense<0.000000e+00> : vector<4x16x16xf32>
    %98 = tpu.matmul %95, %96, %cst_32 {dimension_numbers = #tpu.dot_dimension_numbers<[2], [2], [1], [1], [0, 0, 0, 1, 1, 1], [0], [0]>} : vector<4x16x8xbf16>, vector<4x16x8xbf16>, vector<4x16x16xf32> -> vector<4x16x16xf32>
    "tpu.trace_stop"() : () -> ()
    %cst_33 = arith.constant 0.353553385 : f32
    %99 = vector.broadcast %cst_33 : f32 to vector<4x16x16xf32>
    %100 = arith.mulf %98, %99 : vector<4x16x16xf32>
    %cst_34 = arith.constant dense<0xFF800000> : vector<4x16xf32>
    %101 = vector.multi_reduction <maximumf>, %100, %cst_34 [2] : vector<4x16x16xf32> to vector<4x16xf32>
    %102 = vector.shape_cast %101 : vector<4x16xf32> to vector<4x16x1xf32>
    %103 = vector.broadcast %102 : vector<4x16x1xf32> to vector<4x16x16xf32>
    %104 = arith.subf %100, %103 : vector<4x16x16xf32>
    %105 = math.exp %104 : vector<4x16x16xf32>
    %cst_35 = arith.constant dense<0.000000e+00> : vector<4x16xf32>
    %106 = vector.multi_reduction <add>, %105, %cst_35 [2] : vector<4x16x16xf32> to vector<4x16xf32>
    %107 = vector.shape_cast %106 : vector<4x16xf32> to vector<4x16x1xf32>
    %108 = tpu.reciprocal %107 {approx = true} : vector<4x16x1xf32> -> vector<4x16x1xf32>
    %109 = arith.mulf %107, %108 : vector<4x16x1xf32>
    %cst_36 = arith.constant 2.000000e+00 : f32
    %110 = vector.broadcast %cst_36 : f32 to vector<4x16x1xf32>
    %111 = arith.subf %110, %109 : vector<4x16x1xf32>
    %112 = arith.mulf %108, %111 : vector<4x16x1xf32>
    %113 = vector.broadcast %112 : vector<4x16x1xf32> to vector<4x16x16xf32>
    %114 = arith.mulf %105, %113 : vector<4x16x16xf32>
    %115 = arith.truncf %114 : vector<4x16x16xf32> to vector<4x16x16xbf16>
    "tpu.trace_start"() <{level = 10 : i32, message = "bnm,bmt->bnt"}> : () -> ()
    %cst_37 = arith.constant dense<0.000000e+00> : vector<4x16x8xf32>
    %116 = tpu.matmul %115, %97, %cst_37 {dimension_numbers = #tpu.dot_dimension_numbers<[2], [1], [1], [2], [0, 0, 0, 1, 1, 2], [0], [0]>} : vector<4x16x16xbf16>, vector<4x16x8xbf16>, vector<4x16x8xf32> -> vector<4x16x8xf32>
    "tpu.trace_stop"() : () -> ()
    %117 = vector.shape_cast %116 : vector<4x16x8xf32> to vector<64x8xf32>
    %118 = arith.truncf %117 : vector<64x8xf32> to vector<64x8xbf16>
    %c3 = arith.constant 3 : index
    %c0_38 = arith.constant 0 : index
    %c0_39 = arith.constant 0 : index
    %119 = vector.load %arg3[%c3, %c0_38, %c0_39] : memref<4x8x32xbf16, #tpu.memory_space<vmem>>, vector<1x8x32xbf16>
    %120 = vector.shape_cast %119 : vector<1x8x32xbf16> to vector<8x32xbf16>
    %cst_40 = arith.constant dense<0.000000e+00> : vector<64x32xf32>
    %121 = tpu.matmul %118, %120, %cst_40 {dimension_numbers = #tpu.dot_dimension_numbers<[1], [0], [0], [1], [0, 0, 1, 1], [], []>} : vector<64x8xbf16>, vector<8x32xbf16>, vector<64x32xf32> -> vector<64x32xf32>
    %122 = arith.addf %94, %121 : vector<64x32xf32>
    %123 = vector.shape_cast %122 : vector<64x32xf32> to vector<4x16x32xf32>
    %124 = arith.truncf %123 : vector<4x16x32xf32> to vector<4x16x32xbf16>
    %c0_41 = arith.constant 0 : index
    %c0_42 = arith.constant 0 : index
    %125 = vector.load %arg4[%c0_41, %c0_42] : memref<32x16xbf16, #tpu.memory_space<vmem>>, vector<32x16xbf16>
    %126 = vector.shape_cast %125 : vector<32x16xbf16> to vector<1x32x16xbf16>
    %127 = vector.shape_cast %126 : vector<1x32x16xbf16> to vector<1x32x16xbf16>
    %128 = vector.broadcast %127 : vector<1x32x16xbf16> to vector<4x32x16xbf16>
    "tpu.trace_start"() <{level = 10 : i32, message = "bkm,bmc->bkc"}> : () -> ()
    %cst_43 = arith.constant dense<0.000000e+00> : vector<4x32x32xf32>
    %129 = tpu.matmul %128, %124, %cst_43 {dimension_numbers = #tpu.dot_dimension_numbers<[2], [1], [1], [2], [0, 0, 0, 1, 1, 2], [0], [0]>} : vector<4x32x16xbf16>, vector<4x16x32xbf16>, vector<4x32x32xf32> -> vector<4x32x32xf32>
    "tpu.trace_stop"() : () -> ()
    %130 = vector.extract_strided_slice %129 {offsets = [0, 0, 0], sizes = [4, 16, 32], strides = [1, 1, 1]} : vector<4x32x32xf32> to vector<4x16x32xf32>
    %131 = vector.extract_strided_slice %129 {offsets = [0, 16, 0], sizes = [4, 16, 32], strides = [1, 1, 1]} : vector<4x32x32xf32> to vector<4x16x32xf32>
    %132 = tpu.concatenate %123, %130, %131 in 2 : vector<4x16x32xf32>, vector<4x16x32xf32>, vector<4x16x32xf32> -> vector<4x16x96xf32>
    %133 = vector.shape_cast %132 : vector<4x16x96xf32> to vector<64x96xf32>
    %134 = arith.truncf %133 : vector<64x96xf32> to vector<64x96xbf16>
    %c0_44 = arith.constant 0 : index
    %c0_45 = arith.constant 0 : index
    %135 = vector.load %arg6[%c0_44, %c0_45] : memref<96x256xbf16, #tpu.memory_space<vmem>>, vector<96x256xbf16>
    %cst_46 = arith.constant dense<0.000000e+00> : vector<64x256xf32>
    %136 = tpu.matmul %134, %135, %cst_46 {dimension_numbers = #tpu.dot_dimension_numbers<[1], [0], [0], [1], [0, 0, 1, 1], [], []>} : vector<64x96xbf16>, vector<96x256xbf16>, vector<64x256xf32> -> vector<64x256xf32>
    %c0_47 = arith.constant 0 : index
    %c0_48 = arith.constant 0 : index
    %137 = vector.load %arg5[%c0_47, %c0_48] : memref<16x8xf32, #tpu.memory_space<vmem>>, vector<16x8xf32>
    %138 = vector.shape_cast %136 : vector<64x256xf32> to vector<4x16x256xf32>
    %139 = vector.extract_strided_slice %137 {offsets = [0, 0], sizes = [16, 1], strides = [1, 1]} : vector<16x8xf32> to vector<16x1xf32>
    %140 = vector.shape_cast %139 : vector<16x1xf32> to vector<16xf32>
    %141 = vector.shape_cast %140 : vector<16xf32> to vector<1x16x1xf32>
    %142 = vector.extract_strided_slice %138 {offsets = [0, 0, 0], sizes = [4, 16, 32], strides = [1, 1, 1]} : vector<4x16x256xf32> to vector<4x16x32xf32>
    %143 = vector.broadcast %141 : vector<1x16x1xf32> to vector<4x16x32xf32>
    %144 = arith.mulf %143, %142 : vector<4x16x32xf32>
    %145 = vector.extract_strided_slice %137 {offsets = [0, 1], sizes = [16, 1], strides = [1, 1]} : vector<16x8xf32> to vector<16x1xf32>
    %146 = vector.shape_cast %145 : vector<16x1xf32> to vector<16xf32>
    %147 = vector.shape_cast %146 : vector<16xf32> to vector<1x16x1xf32>
    %148 = vector.extract_strided_slice %138 {offsets = [0, 0, 32], sizes = [4, 16, 32], strides = [1, 1, 1]} : vector<4x16x256xf32> to vector<4x16x32xf32>
    %149 = vector.broadcast %147 : vector<1x16x1xf32> to vector<4x16x32xf32>
    %150 = arith.mulf %149, %148 : vector<4x16x32xf32>
    %151 = arith.addf %144, %150 : vector<4x16x32xf32>
    %152 = vector.extract_strided_slice %137 {offsets = [0, 2], sizes = [16, 1], strides = [1, 1]} : vector<16x8xf32> to vector<16x1xf32>
    %153 = vector.shape_cast %152 : vector<16x1xf32> to vector<16xf32>
    %154 = vector.shape_cast %153 : vector<16xf32> to vector<1x16x1xf32>
    %155 = vector.extract_strided_slice %138 {offsets = [0, 0, 64], sizes = [4, 16, 32], strides = [1, 1, 1]} : vector<4x16x256xf32> to vector<4x16x32xf32>
    %156 = vector.broadcast %154 : vector<1x16x1xf32> to vector<4x16x32xf32>
    %157 = arith.mulf %156, %155 : vector<4x16x32xf32>
    %158 = arith.addf %151, %157 : vector<4x16x32xf32>
    %159 = vector.extract_strided_slice %137 {offsets = [0, 3], sizes = [16, 1], strides = [1, 1]} : vector<16x8xf32> to vector<16x1xf32>
    %160 = vector.shape_cast %159 : vector<16x1xf32> to vector<16xf32>
    %161 = vector.shape_cast %160 : vector<16xf32> to vector<1x16x1xf32>
    %162 = vector.extract_strided_slice %138 {offsets = [0, 0, 96], sizes = [4, 16, 32], strides = [1, 1, 1]} : vector<4x16x256xf32> to vector<4x16x32xf32>
    %163 = vector.broadcast %161 : vector<1x16x1xf32> to vector<4x16x32xf32>
    %164 = arith.mulf %163, %162 : vector<4x16x32xf32>
    %165 = arith.addf %158, %164 : vector<4x16x32xf32>
    %166 = vector.extract_strided_slice %137 {offsets = [0, 4], sizes = [16, 1], strides = [1, 1]} : vector<16x8xf32> to vector<16x1xf32>
    %167 = vector.shape_cast %166 : vector<16x1xf32> to vector<16xf32>
    %168 = vector.shape_cast %167 : vector<16xf32> to vector<1x16x1xf32>
    %169 = vector.extract_strided_slice %138 {offsets = [0, 0, 128], sizes = [4, 16, 32], strides = [1, 1, 1]} : vector<4x16x256xf32> to vector<4x16x32xf32>
    %170 = vector.broadcast %168 : vector<1x16x1xf32> to vector<4x16x32xf32>
    %171 = arith.mulf %170, %169 : vector<4x16x32xf32>
    %172 = arith.addf %165, %171 : vector<4x16x32xf32>
    %173 = vector.extract_strided_slice %137 {offsets = [0, 5], sizes = [16, 1], strides = [1, 1]} : vector<16x8xf32> to vector<16x1xf32>
    %174 = vector.shape_cast %173 : vector<16x1xf32> to vector<16xf32>
    %175 = vector.shape_cast %174 : vector<16xf32> to vector<1x16x1xf32>
    %176 = vector.extract_strided_slice %138 {offsets = [0, 0, 160], sizes = [4, 16, 32], strides = [1, 1, 1]} : vector<4x16x256xf32> to vector<4x16x32xf32>
    %177 = vector.broadcast %175 : vector<1x16x1xf32> to vector<4x16x32xf32>
    %178 = arith.mulf %177, %176 : vector<4x16x32xf32>
    %179 = arith.addf %172, %178 : vector<4x16x32xf32>
    %180 = vector.extract_strided_slice %137 {offsets = [0, 6], sizes = [16, 1], strides = [1, 1]} : vector<16x8xf32> to vector<16x1xf32>
    %181 = vector.shape_cast %180 : vector<16x1xf32> to vector<16xf32>
    %182 = vector.shape_cast %181 : vector<16xf32> to vector<1x16x1xf32>
    %183 = vector.extract_strided_slice %138 {offsets = [0, 0, 192], sizes = [4, 16, 32], strides = [1, 1, 1]} : vector<4x16x256xf32> to vector<4x16x32xf32>
    %184 = vector.broadcast %182 : vector<1x16x1xf32> to vector<4x16x32xf32>
    %185 = arith.mulf %184, %183 : vector<4x16x32xf32>
    %186 = arith.addf %179, %185 : vector<4x16x32xf32>
    %187 = vector.extract_strided_slice %137 {offsets = [0, 7], sizes = [16, 1], strides = [1, 1]} : vector<16x8xf32> to vector<16x1xf32>
    %188 = vector.shape_cast %187 : vector<16x1xf32> to vector<16xf32>
    %189 = vector.shape_cast %188 : vector<16xf32> to vector<1x16x1xf32>
    %190 = vector.extract_strided_slice %138 {offsets = [0, 0, 224], sizes = [4, 16, 32], strides = [1, 1, 1]} : vector<4x16x256xf32> to vector<4x16x32xf32>
    %191 = vector.broadcast %189 : vector<1x16x1xf32> to vector<4x16x32xf32>
    %192 = arith.mulf %191, %190 : vector<4x16x32xf32>
    %193 = arith.addf %186, %192 : vector<4x16x32xf32>
    %c0_49 = arith.constant 0 : index
    %c0_50 = arith.constant 0 : index
    %194 = vector.load %arg7[%c0_49, %c0_50] : memref<16x32xf32, #tpu.memory_space<vmem>>, vector<16x32xf32>
    %195 = vector.shape_cast %194 : vector<16x32xf32> to vector<1x16x32xf32>
    %196 = vector.broadcast %195 : vector<1x16x32xf32> to vector<4x16x32xf32>
    %197 = arith.addf %193, %196 : vector<4x16x32xf32>
    %198 = arith.addf %197, %123 : vector<4x16x32xf32>
    %199 = vector.shape_cast %198 : vector<4x16x32xf32> to vector<64x32xf32>
    %200 = arith.truncf %199 : vector<64x32xf32> to vector<64x32xbf16>
    %c0_51 = arith.constant 0 : index
    %c0_52 = arith.constant 0 : index
    %201 = vector.load %arg8[%c0_51, %c0_52] : memref<32x64xbf16, #tpu.memory_space<vmem>>, vector<32x64xbf16>
    %cst_53 = arith.constant dense<0.000000e+00> : vector<64x64xf32>
    %202 = tpu.matmul %200, %201, %cst_53 {dimension_numbers = #tpu.dot_dimension_numbers<[1], [0], [0], [1], [0, 0, 1, 1], [], []>} : vector<64x32xbf16>, vector<32x64xbf16>, vector<64x64xf32> -> vector<64x64xf32>
    %c0_54 = arith.constant 0 : index
    %c0_55 = arith.constant 0 : index
    %203 = vector.load %arg11[%c0_54, %c0_55] : memref<4x64xf32, #tpu.memory_space<vmem>>, vector<1x64xf32>
    %204 = vector.broadcast %203 : vector<1x64xf32> to vector<64x64xf32>
    %205 = arith.addf %202, %204 : vector<64x64xf32>
    %206 = vector.extract_strided_slice %205 {offsets = [0, 0], sizes = [64, 32], strides = [1, 1]} : vector<64x64xf32> to vector<64x32xf32>
    %207 = vector.extract_strided_slice %205 {offsets = [0, 32], sizes = [64, 32], strides = [1, 1]} : vector<64x64xf32> to vector<64x32xf32>
    %208 = arith.negf %207 : vector<64x32xf32>
    %209 = math.exp %208 : vector<64x32xf32>
    %cst_56 = arith.constant 1.000000e+00 : f32
    %210 = vector.broadcast %cst_56 : f32 to vector<64x32xf32>
    %211 = arith.addf %210, %209 : vector<64x32xf32>
    %212 = arith.divf %210, %211 : vector<64x32xf32>
    %213 = arith.mulf %206, %212 : vector<64x32xf32>
    %214 = vector.shape_cast %213 : vector<64x32xf32> to vector<4x16x32xf32>
    %cst_57 = arith.constant dense<0.000000e+00> : vector<4x16xf32>
    %215 = vector.multi_reduction <add>, %214, %cst_57 [2] : vector<4x16x32xf32> to vector<4x16xf32>
    %216 = vector.shape_cast %215 : vector<4x16xf32> to vector<4x16x1xf32>
    %cst_58 = arith.constant dense<0.000000e+00> : vector<4x1xf32>
    %217 = vector.multi_reduction <add>, %216, %cst_58 [1] : vector<4x16x1xf32> to vector<4x1xf32>
    %218 = vector.shape_cast %217 : vector<4x1xf32> to vector<4x1x1xf32>
    %cst_59 = arith.constant 5.120000e+02 : f32
    %219 = vector.broadcast %cst_59 : f32 to vector<4x1x1xf32>
    %220 = arith.divf %218, %219 : vector<4x1x1xf32>
    %221 = vector.broadcast %220 : vector<4x1x1xf32> to vector<4x16x32xf32>
    %222 = arith.subf %214, %221 : vector<4x16x32xf32>
    %223 = arith.mulf %222, %222 : vector<4x16x32xf32>
    %cst_60 = arith.constant dense<0.000000e+00> : vector<4x16xf32>
    %224 = vector.multi_reduction <add>, %223, %cst_60 [2] : vector<4x16x32xf32> to vector<4x16xf32>
    %225 = vector.shape_cast %224 : vector<4x16xf32> to vector<4x16x1xf32>
    %cst_61 = arith.constant dense<0.000000e+00> : vector<4x1xf32>
    %226 = vector.multi_reduction <add>, %225, %cst_61 [1] : vector<4x16x1xf32> to vector<4x1xf32>
    %227 = vector.shape_cast %226 : vector<4x1xf32> to vector<4x1x1xf32>
    %cst_62 = arith.constant 5.120000e+02 : f32
    %228 = vector.broadcast %cst_62 : f32 to vector<4x1x1xf32>
    %229 = arith.divf %227, %228 : vector<4x1x1xf32>
    %cst_63 = arith.constant 9.99999974E-6 : f32
    %230 = vector.broadcast %cst_63 : f32 to vector<4x1x1xf32>
    %231 = arith.addf %229, %230 : vector<4x1x1xf32>
    %232 = math.rsqrt %231 : vector<4x1x1xf32>
    %233 = vector.broadcast %232 : vector<4x1x1xf32> to vector<4x16x32xf32>
    %234 = arith.mulf %222, %233 : vector<4x16x32xf32>
    %c0_64 = arith.constant 0 : index
    %c0_65 = arith.constant 0 : index
    %c0_66 = arith.constant 0 : index
    %235 = vector.load %arg10[%c0_64, %c0_65, %c0_66] : memref<2x16x32xf32, #tpu.memory_space<vmem>>, vector<1x16x32xf32>
    %236 = vector.shape_cast %235 : vector<1x16x32xf32> to vector<16x32xf32>
    %237 = vector.shape_cast %236 : vector<16x32xf32> to vector<1x16x32xf32>
    %238 = vector.broadcast %237 : vector<1x16x32xf32> to vector<4x16x32xf32>
    %239 = arith.mulf %234, %238 : vector<4x16x32xf32>
    %c1_67 = arith.constant 1 : index
    %c0_68 = arith.constant 0 : index
    %c0_69 = arith.constant 0 : index
    %240 = vector.load %arg10[%c1_67, %c0_68, %c0_69] : memref<2x16x32xf32, #tpu.memory_space<vmem>>, vector<1x16x32xf32>
    %241 = vector.shape_cast %240 : vector<1x16x32xf32> to vector<16x32xf32>
    %242 = vector.shape_cast %241 : vector<16x32xf32> to vector<1x16x32xf32>
    %243 = vector.broadcast %242 : vector<1x16x32xf32> to vector<4x16x32xf32>
    %244 = arith.addf %239, %243 : vector<4x16x32xf32>
    %245 = vector.shape_cast %244 : vector<4x16x32xf32> to vector<64x32xf32>
    %246 = arith.truncf %245 : vector<64x32xf32> to vector<64x32xbf16>
    %c0_70 = arith.constant 0 : index
    %c0_71 = arith.constant 0 : index
    %247 = vector.load %arg9[%c0_70, %c0_71] : memref<32x64xbf16, #tpu.memory_space<vmem>>, vector<32x64xbf16>
    %cst_72 = arith.constant dense<0.000000e+00> : vector<64x64xf32>
    %248 = tpu.matmul %246, %247, %cst_72 {dimension_numbers = #tpu.dot_dimension_numbers<[1], [0], [0], [1], [0, 0, 1, 1], [], []>} : vector<64x32xbf16>, vector<32x64xbf16>, vector<64x64xf32> -> vector<64x64xf32>
    %c1_73 = arith.constant 1 : index
    %c0_74 = arith.constant 0 : index
    %249 = vector.load %arg11[%c1_73, %c0_74] : memref<4x64xf32, #tpu.memory_space<vmem>>, vector<1x64xf32>
    %250 = vector.broadcast %249 : vector<1x64xf32> to vector<64x64xf32>
    %251 = arith.addf %248, %250 : vector<64x64xf32>
    %cst_75 = arith.constant 0.000000e+00 : f32
    %252 = vector.broadcast %cst_75 : f32 to vector<64x64xf32>
    %253 = arith.maximumf %251, %252 : vector<64x64xf32>
    %c2_76 = arith.constant 2 : index
    %c0_77 = arith.constant 0 : index
    %254 = vector.load %arg11[%c2_76, %c0_77] : memref<4x64xf32, #tpu.memory_space<vmem>>, vector<1x64xf32>
    %255 = tpu.transpose %253, [1, 0] : vector<64x64xf32> -> vector<64x64xf32>
    %cst_78 = arith.constant dense<0.000000e+00> : vector<1x64xf32>
    %256 = tpu.matmul %254, %255, %cst_78 {dimension_numbers = #tpu.dot_dimension_numbers<[1], [0], [0], [1], [0, 0, 1, 1], [], []>} : vector<1x64xf32>, vector<64x64xf32>, vector<1x64xf32> -> vector<1x64xf32>
    %c3_79 = arith.constant 3 : index
    %c0_80 = arith.constant 0 : index
    %257 = vector.load %arg11[%c3_79, %c0_80] : memref<4x64xf32, #tpu.memory_space<vmem>>, vector<1x1xf32>
    %258 = vector.extract %257[0, 0] : f32 from vector<1x1xf32>
    %259 = vector.broadcast %258 : f32 to vector<1x64xf32>
    %260 = arith.addf %256, %259 : vector<1x64xf32>
    %261 = vector.shape_cast %260 : vector<1x64xf32> to vector<1x1x64xf32>
    %c0_81 = arith.constant 0 : index
    %c0_82 = arith.constant 0 : index
    %c0_83 = arith.constant 0 : index
    %262 = vector.load %arg12[%c0_81, %c0_82, %c0_83] : memref<1x1x64xf32, #tpu.memory_space<vmem>>, vector<1x1x64xf32>
    tpu.vector_store %arg12[%c0_81, %c0_82, %c0_83], %261 {strides = array<i32>} : memref<1x1x64xf32, #tpu.memory_space<vmem>>, vector<1x1x64xf32>,
    return
  }
  func.func @transform_0(%arg0: i32) -> (i32, i32, i32) {
    %c0_i32 = arith.constant 0 : i32
    %c0_i32_0 = arith.constant 0 : i32
    %c0_i32_1 = arith.constant 0 : i32
    return %arg0, %c0_i32, %c0_i32_0 : i32, i32, i32
  }
  func.func @transform_1(%arg0: i32) -> (i32, i32) {
    %c0_i32 = arith.constant 0 : i32
    %c0_i32_0 = arith.constant 0 : i32
    %c0_i32_1 = arith.constant 0 : i32
    return %c0_i32, %c0_i32_0 : i32, i32
  }
  func.func @transform_2(%arg0: i32) -> (i32, i32, i32) {
    %c0_i32 = arith.constant 0 : i32
    %c0_i32_0 = arith.constant 0 : i32
    %c0_i32_1 = arith.constant 0 : i32
    %c0_i32_2 = arith.constant 0 : i32
    return %c0_i32, %c0_i32_0, %c0_i32_1 : i32, i32, i32
  }
  func.func @transform_3(%arg0: i32) -> (i32, i32) {
    %c0_i32 = arith.constant 0 : i32
    %c0_i32_0 = arith.constant 0 : i32
    %c0_i32_1 = arith.constant 0 : i32
    return %c0_i32, %c0_i32_0 : i32, i32
  }
  func.func @transform_4(%arg0: i32) -> (i32, i32) {
    %c0_i32 = arith.constant 0 : i32
    %c0_i32_0 = arith.constant 0 : i32
    %c0_i32_1 = arith.constant 0 : i32
    return %c0_i32, %c0_i32_0 : i32, i32
  }
  func.func @transform_5(%arg0: i32) -> (i32, i32) {
    %c0_i32 = arith.constant 0 : i32
    %c0_i32_0 = arith.constant 0 : i32
    %c0_i32_1 = arith.constant 0 : i32
    return %c0_i32, %c0_i32_0 : i32, i32
  }
  func.func @transform_6(%arg0: i32) -> (i32, i32) {
    %c0_i32 = arith.constant 0 : i32
    %c0_i32_0 = arith.constant 0 : i32
    %c0_i32_1 = arith.constant 0 : i32
    return %c0_i32, %c0_i32_0 : i32, i32
  }
  func.func @transform_7(%arg0: i32) -> (i32, i32) {
    %c0_i32 = arith.constant 0 : i32
    %c0_i32_0 = arith.constant 0 : i32
    %c0_i32_1 = arith.constant 0 : i32
    return %c0_i32, %c0_i32_0 : i32, i32
  }
  func.func @transform_8(%arg0: i32) -> (i32, i32) {
    %c0_i32 = arith.constant 0 : i32
    %c0_i32_0 = arith.constant 0 : i32
    %c0_i32_1 = arith.constant 0 : i32
    return %c0_i32, %c0_i32_0 : i32, i32
  }
  func.func @transform_9(%arg0: i32) -> (i32, i32, i32) {
    %c0_i32 = arith.constant 0 : i32
    %c0_i32_0 = arith.constant 0 : i32
    %c0_i32_1 = arith.constant 0 : i32
    %c0_i32_2 = arith.constant 0 : i32
    return %c0_i32, %c0_i32_0, %c0_i32_1 : i32, i32, i32
  }
  func.func @transform_10(%arg0: i32) -> (i32, i32) {
    %c0_i32 = arith.constant 0 : i32
    %c0_i32_0 = arith.constant 0 : i32
    %c0_i32_1 = arith.constant 0 : i32
    return %c0_i32, %c0_i32_0 : i32, i32
  }
  func.func @transform_11(%arg0: i32) -> (i32, i32, i32) {
    %c0_i32 = arith.constant 0 : i32
    %c0_i32_0 = arith.constant 0 : i32
    %c0_i32_1 = arith.constant 0 : i32
    return %arg0, %c0_i32, %c0_i32_0 : i32, i32, i32
  }
}

</mosaic_0001>

<bundles_post_ra>
// kernel: tpu_custom_call.1
= control target key start
LH: loop header
LB: loop body
LE: loop exit
PB: predicated region body
PF: predicated region fallthrough
CT: control target
= control target key end

     0   :  { %16 = vsyncpa [#allocation3], 0  ;;  %s4942_s0 = inlined_call_operand.vmem [shape: f32[4,16,8], index: 0, kind: input, shape index: {}]   ;;  %s4943_s1 = inlined_call_operand.vmem [shape: bf16[8,96], index: 1, kind: input, shape index: {}]   ;;  %s4944_s2 = inlined_call_operand.hbm [shape: bf16[4,8,32], index: 2, kind: input, shape index: {}]   ;;  %s4945_s3 = inlined_call_operand.vmem [shape: bf16[32,16], index: 3, kind: input, shape index: {}]   ;;  %s4946_s4 = inlined_call_operand.vmem [shape: f32[16,8], index: 4, kind: input, shape index: {}]   ;;  %s4947_s5 = inlined_call_operand.vmem [shape: bf16[96,256], index: 5, kind: input, shape index: {}]   ;;  %s4948_s6 = inlined_call_operand.hbm [shape: f32[16,32], index: 6, kind: input, shape index: {}]   ;;  %s4949_s7 = inlined_call_operand.hbm [shape: bf16[32,64], index: 7, kind: input, shape index: {}]   ;;  %s4950_s8 = inlined_call_operand.hbm [shape: bf16[32,64], index: 8, kind: input, shape index: {}]   ;;  %s4951_s9 = inlined_call_operand.hbm [shape: f32[2,16,32], index: 9, kind: input, shape index: {}]   ;;  %s4952_s10 = inlined_call_operand.vmem [shape: f32[4,64], index: 10, kind: input, shape index: {}]   ;;  %s4953_s11 = inlined_call_operand.hbm [shape: f32[1,1,64], index: 11, kind: output, shape index: {}]  }
   0x1   :  { %17 = vsyncpa [#allocation6], 0 }
   0x2   :  { %18 = vsyncpa [#allocation9], 0  ;;  %s47_s19 = sshll.u32 %s4948_s6, 4  ;;  %s48_s19 = int_to_ptr.hbm [resolvable:$true] %s47_s19 }
   0x3   :  { %19 = vsyncpa [#allocation4], 0  ;;  %s3666_s20 = smov [#allocation5]   ;;  %s3667_s22 = smov 128  }
   0x4   :  { %s49_s21 = sshll.u32 %s3666_s20, 4  ;;  %s3668_s23 = smov 8   ;;  %s50_s21 = int_to_ptr.vmem [resolvable:$true] %s49_s21 }
   0x5   :  { %55 = dma.hbm_to_vmem [thread:$0]  %s48_s19, 256, %s50_s21, [#allocation6], %s3667_s22, %s3667_s22, %s3668_s23  }
   0x6   :  { %s73_s26 = sshll.u32 %s4950_s8, 4  ;;  %s3669_s27 = smov [#allocation8]   ;;  %s74_s26 = int_to_ptr.hbm [resolvable:$true] %s73_s26 }
   0x7   :  { %s75_s28 = sshll.u32 %s3669_s27, 4  ;;  %s28_s30 = sshll.u32 %s4944_s2, 4  ;;  %s76_s28 = int_to_ptr.vmem [resolvable:$true] %s75_s28  ;;  %s29_s30 = int_to_ptr.hbm [resolvable:$true] %s28_s30 }
   0x8   :  { %s3670_s12 = smov 64   ;;  %s3671_s13 = smov 4  }
   0x9   :  { %81 = dma.hbm_to_vmem [thread:$0]  %s74_s26, 256, %s76_s28, [#allocation9], %s3670_s12, %s3670_s12, %s3671_s13  }
   0xa   :  { %s60_s16 = sshll.u32 %s4949_s7, 4  ;;  %s3672_s17 = smov [#allocation2]   ;;  %s61_s16 = int_to_ptr.hbm [resolvable:$true] %s60_s16 }
   0xb   :  { %s30_s8 = sshll.u32 %s3672_s17, 4  ;;  %s3673_s18 = smov [#allocation7]   ;;  %s31_s8 = int_to_ptr.vmem [resolvable:$true] %s30_s8 }
   0xc   :  { %36 = dma.hbm_to_vmem [thread:$0]  %s29_s30, 256, %s31_s8, [#allocation3], %s3670_s12, %s3670_s12, %s3671_s13  }
   0xd   :  { %s62_s2 = sshll.u32 %s3673_s18, 4  ;;  %s86_s21 = sshll.u32 %s4951_s9, 4  ;;  %s63_s2 = int_to_ptr.vmem [resolvable:$true] %s62_s2  ;;  %s87_s21 = int_to_ptr.hbm [resolvable:$true] %s86_s21 }
   0xe   :  { %68 = dma.hbm_to_vmem [thread:$0]  %s61_s16, 256, %s63_s2, [#allocation6], %s3670_s12, %s3670_s12, %s3671_s13  }
   0xf   :  { %s3674_s24 = smov [#allocation10]  }
  0x10   :  { %s88_s7 = sshll.u32 %s3674_s24, 4  ;;  %s89_s7 = int_to_ptr.vmem [resolvable:$true] %s88_s7 }
  0x11   :  { %94 = dma.hbm_to_vmem [thread:$0]  %s87_s21, 512, %s89_s7, [#allocation9], %s3667_s22, %s3667_s22, %s3668_s23  }
  0x12   :  { %3658 = dma.done.wait [#allocation3], 256  }
  0x13   :  { %3659 = vsyncadd [#allocation3], 4294967040 }
  0x14   :  { %3660 = dma.done.wait [#allocation6], 512  }
  0x15   :  { %3661 = vsyncadd [#allocation6], 4294966784 }
  0x16   :  { %3662 = dma.done.wait [#allocation9], 768  }
  0x17   :  { %3663 = vsyncadd [#allocation9], 4294966528  ;;  %vm144_vm0 = vcmask 1043456   ;;  %v130_v0 = vld [vmem:[%s4943_s1] sm:$0xf]  ;;  %v119_v2 = vld [vmem:[%s4942_s0 + $0x8] sm:$0xff] }
  0x18   :  { %v118_v1 = vld [vmem:[%s4942_s0] sm:$0xff]  ;;  %v146_v3 = vsel %vm144_vm0, %v130_v0, 0  ;;  %vm131_vm1 = vcmask 64512   ;;  %v120_v5 = vld [vmem:[%s4942_s0 + $0x10] sm:$0xff]  ;;  %v121_v6 = vld [vmem:[%s4942_s0 + $0x18] sm:$0xff]  ;;  %s3675_s2 = smov 96  }
  0x19   :  { %v126_v4 = vpack.c.bf16 %v119_v2, %v118_v1  ;;  %155 = vmatpush.bf16.msra.mxu0 %v146_v3  ;;  %v127_v7 = vpack.c.bf16 %v121_v6, %v120_v5  ;;  %v122_v8 = vld [vmem:[%s4942_s0 + $0x20] sm:$0xff]  ;;  %v123_v9 = vld [vmem:[%s4942_s0 + $0x28] sm:$0xff]  ;;  %v124_v11 = vld [vmem:[%s4942_s0 + $0x30] sm:$0xff]  ;;  %vm301_vm2 = vcmask 130048   ;;  %s3677_s19 = smov 88   ;;  %s3678_s20 = smov 56  }
  0x1a   :  { %v128_v10 = vpack.c.bf16 %v123_v9, %v122_v8  ;;  %v125_v12 = vld [vmem:[%s4942_s0 + $0x38] sm:$0xff]  ;;  %s3676_s0 = smov 120   ;;  %s3679_s21 = smov 80   ;;  %vm1901_vm3 = vcmask 261120   ;;  %vm1910_vm4 = vcmask 523264   ;;  %vm1995_vm5 = vcmask 785408  }
  0x1b   :  { %v129_v13 = vpack.c.bf16 %v125_v12, %v124_v11  ;;  %s3680_s24 = smov 112   ;;  %s3681_s7 = smov 72  }
  0x1c   :  { %3070 = vmatmul.msk.bf16.vlgmr.msra.gmra.mxu0 %vm131_vm1, %v126_v4  ;;  %s3682_s9 = smov 104   ;;  %s3683_s25 = smov 48  }
  0x1d   :  { %s3684_s26 = smov 40   ;;  %s3695_s17 = smov [#allocation11]  }
  0x1e   :  { %s3056_s8 = sshll.u32 %s3695_s17, 4  ;;  %s3057_s8 = int_to_ptr.vmem [resolvable:$true] %s3056_s8 }
  0x2c   :  { %3071 = vmatmul.msk.bf16.gmra.mxu0 %vm131_vm1, %v127_v7 }
  0x3c   :  { %3072 = vmatmul.msk.bf16.gmra.mxu0 %vm131_vm1, %v128_v10 }
  0x4c   :  { %3073 = vmatmul.msk.bf16.gmra.mxu0 %vm131_vm1, %v129_v13 }
  0x99   :  { %v157_v14 = vpop.f32.mrf.mxu0 }
  0x9a   :  { %v177_v15 = vpack.c.bf16 %v157_v14, %v157_v14 }
  0x9c   :  { %v187_v18 = vunpack.c.l.b16 %v177_v15 }
  0xa1   :  { %v159_v16 = vpop.f32.mrf.mxu0 }
  0xa2   :  { %v178_v17 = vpack.c.bf16 %v159_v16, %v159_v16 }
  0xa4   :  { %v188_v19 = vunpack.c.l.b16 %v178_v17 }
  0xa6   :  { %v3815_v20 = vpack.c.b16 %v188_v19, %v187_v18 }
  0xa8   :  { %190 = vrot.lane.b32.xlu0 %v3815_v20, %s3675_s2 }
  0xa9   :  { %v162_v21 = vpop.f32.mrf.mxu0 }
  0xaa   :  { %v179_v22 = vpack.c.bf16 %v162_v21, %v162_v21 }
  0xac   :  { %v214_v25 = vunpack.c.l.b16 %v179_v22 }
  0xb1   :  { %v164_v23 = vpop.f32.mrf.mxu0 }
  0xb2   :  { %v180_v24 = vpack.c.bf16 %v164_v23, %v164_v23 }
  0xb4   :  { %v215_v26 = vunpack.c.l.b16 %v180_v24 }
  0xb6   :  { %v3819_v27 = vpack.c.b16 %v215_v26, %v214_v25 }
  0xb8   :  { %217 = vrot.lane.b32.xlu1 %v3819_v27, %s3675_s2 }
  0xb9   :  { %v167_v28 = vpop.f32.mrf.mxu0 }
  0xba   :  { %v181_v62 = vpack.c.bf16 %v167_v28, %v167_v28 }
  0xbc   :  { %v241_v0 = vunpack.c.l.b16 %v181_v62 }
  0xc1   :  { %v169_v29 = vpop.f32.mrf.mxu0 }
  0xc2   :  { %v182_v61 = vpack.c.bf16 %v169_v29, %v169_v29 }
  0xc4   :  { %v242_v63 = vunpack.c.l.b16 %v182_v61 }
  0xc6   :  { %v3842_v1 = vpack.c.b16 %v242_v63, %v241_v0 }
  0xc9   :  { %v172_v30 = vpop.f32.mrf.mxu0 }
  0xca   :  { %v183_v31 = vpack.c.bf16 %v172_v30, %v172_v30 }
  0xcc   :  { %v268_v34 = vunpack.c.l.b16 %v183_v31 }
  0xd1   :  { %v174_v32 = vpop.f32.mrf.mxu0 }
  0xd2   :  { %v184_v33 = vpack.c.bf16 %v174_v32, %v174_v32 }
  0xd4   :  { %v269_v35 = vunpack.c.l.b16 %v184_v33 }
  0xd6   :  { %v3823_v36 = vpack.c.b16 %v269_v35, %v268_v34 }
  0xd8   :  { %271 = vrot.lane.b32.xlu0 %v3823_v36, %s3675_s2 }
 0x11a   :  { %v191_v37 = vpop.permute.xlu0 %190 }
 0x11b   :  { %v196_v38 = vsel %vm131_vm1, %v191_v37, 0 }
 0x11c   :  { %205 = vmatpush.bf16.xpose.msra.mxu2 %v196_v38 }
 0x123   :  { %3074 = vmatmul.msk.bf16.vlgmr.msra.gmra.mxu2 %vm131_vm1, %v3815_v20 }
 0x12a   :  { %v218_v39 = vpop.permute.xlu1 %217 }
 0x12b   :  { %v223_v40 = vsel %vm131_vm1, %v218_v39, 0 }
 0x12c   :  { %232 = vmatpush.bf16.xpose.msrb.mxu2 %v223_v40 }
 0x133   :  { %3075 = vmatmul.msk.bf16.vlgmr.msrb.gmra.mxu2 %vm131_vm1, %v3819_v27 }
 0x14a   :  { %v272_v41 = vpop.permute.xlu0 %271 }
 0x14b   :  { %v277_v42 = vsel %vm131_vm1, %v272_v41, 0 }
 0x14c   :  { %286 = vmatpush.bf16.xpose.msra.mxu1 %v277_v42 }
 0x153   :  { %3077 = vmatmul.msk.bf16.vlgmr.msra.gmra.mxu1 %vm131_vm1, %v3823_v36 }
 0x1a6   :  { %v207_v43 = vpop.f32.mrf.mxu2 }
 0x1a7   :  { %v293_v44 = vmul.f32 0.35355338, %v207_v43 }
 0x1a9   :  { %v302_v45 = vsel %vm301_vm2, %v293_v44, -inf }
 0x1aa   :  { %303 = vmax.xlane.f32.xlu1 %v302_v45 }
 0x1ae   :  { %v209_v46 = vpop.f32.mrf.mxu2 }
 0x1af   :  { %v294_v47 = vmul.f32 0.35355338, %v209_v46 }
 0x1b1   :  { %v305_v48 = vsel %vm301_vm2, %v294_v47, -inf }
 0x1b2   :  { %306 = vmax.xlane.f32.xlu2 %v305_v48 }
 0x1b6   :  { %v234_v49 = vpop.f32.mrf.mxu2 }
 0x1b7   :  { %v295_v50 = vmul.f32 0.35355338, %v234_v49 }
 0x1b9   :  { %v308_v51 = vsel %vm301_vm2, %v295_v50, -inf }
 0x1ba   :  { %309 = vmax.xlane.f32.xlu2 %v308_v51 }
 0x1be   :  { %v236_v52 = vpop.f32.mrf.mxu2 }
 0x1bf   :  { %v296_v53 = vmul.f32 0.35355338, %v236_v52 }
 0x1c1   :  { %v311_v54 = vsel %vm301_vm2, %v296_v53, -inf }
 0x1c2   :  { %312 = vmax.xlane.f32.xlu2 %v311_v54 }
 0x1d0   :  { %v288_v55 = vpop.f32.mrf.mxu1 }
 0x1d1   :  { %v299_v56 = vmul.f32 0.35355338, %v288_v55 }
 0x1d3   :  { %v320_v57 = vsel %vm301_vm2, %v299_v56, -inf }
 0x1d4   :  { %321 = vmax.xlane.f32.xlu2 %v320_v57 }
 0x1d8   :  { %v290_v58 = vpop.f32.mrf.mxu1 }
 0x1d9   :  { %v300_v59 = vmul.f32 0.35355338, %v290_v58 }
 0x1db   :  { %v323_v60 = vsel %vm301_vm2, %v300_v59, -inf }
 0x1dc   :  { %324 = vmax.xlane.f32.xlu0 %v323_v60 }
 0x1ec   :  { %244 = vrot.lane.b32.xlu2 %v3842_v1, %s3675_s2 }
 0x1f0   :  { %427 = vrot.lane.b32.xlu0 %v3815_v20, %s3670_s12 }
 0x21d   :  { %v304_v2 = vpop.xlane.xlu1 %303 }
 0x21e   :  { %v326_v3 = vsub.f32 %v293_v44, %v304_v2 }
 0x220   :  { %v334_v4 = vmul.f32 1.442695, %v326_v3 }
 0x222   :  { %3344 = vpow2.f32 %v334_v4 }
 0x225   :  { %v307_v5 = vpop.xlane.xlu2 %306 }
 0x226   :  { %v327_v6 = vsub.f32 %v294_v47, %v307_v5 }
 0x228   :  { %v3345_v7 = vpop.eup %3344  ;;  %v336_v8 = vmul.f32 1.442695, %v327_v6 }
 0x229   :  { %v350_v9 = vsel %vm301_vm2, %v3345_v7, 0.0 }
 0x22a   :  { %3346 = vpow2.f32 %v336_v8  ;;  %351 = vadd.xlane.f32.xlu1 %v350_v9 }
 0x22d   :  { %v310_v10 = vpop.xlane.xlu2 %309 }
 0x22e   :  { %v328_v11 = vsub.f32 %v295_v50, %v310_v10 }
 0x230   :  { %v3347_v12 = vpop.eup %3346  ;;  %v338_v13 = vmul.f32 1.442695, %v328_v11 }
 0x231   :  { %v353_v14 = vsel %vm301_vm2, %v3347_v12, 0.0 }
 0x232   :  { %3348 = vpow2.f32 %v338_v13  ;;  %354 = vadd.xlane.f32.xlu2 %v353_v14 }
 0x235   :  { %v313_v15 = vpop.xlane.xlu2 %312 }
 0x236   :  { %v329_v16 = vsub.f32 %v296_v53, %v313_v15 }
 0x238   :  { %v3850_v17 = vpop.eup %3348  ;;  %v340_v18 = vmul.f32 1.442695, %v329_v16 }
 0x239   :  { %v356_v19 = vsel %vm301_vm2, %v3850_v17, 0.0 }
 0x23a   :  { %3350 = vpow2.f32 %v340_v18  ;;  %357 = vadd.xlane.f32.xlu1 %v356_v19 }
 0x240   :  { %v3854_v21 = vpop.eup %3350 }
 0x241   :  { %v359_v22 = vsel %vm301_vm2, %v3854_v21, 0.0 }
 0x242   :  { %360 = vadd.xlane.f32.xlu1 %v359_v22 }
 0x247   :  { %v322_v23 = vpop.xlane.xlu2 %321 }
 0x248   :  { %v332_v24 = vsub.f32 %v299_v56, %v322_v23 }
 0x24a   :  { %v346_v25 = vmul.f32 1.442695, %v332_v24  ;;  %575 = vrot.lane.b32.xlu2 %v3842_v1, %s3676_s0 }
 0x24c   :  { %3352 = vpow2.f32 %v346_v25 }
 0x24f   :  { %v245_v26 = vpop.permute.xlu2 %244  ;;  %v325_v28 = vpop.xlane.xlu0 %324 }
 0x250   :  { %v333_v29 = vsub.f32 %v300_v59, %v325_v28  ;;  %v250_v30 = vsel %vm131_vm1, %v245_v26, 0 }
 0x251   :  { %259 = vmatpush.bf16.xpose.msra.mxu3 %v250_v30 }
 0x252   :  { %v3861_v31 = vpop.eup %3352  ;;  %v348_v32 = vmul.f32 1.442695, %v333_v29 }
 0x253   :  { %v368_v33 = vsel %vm301_vm2, %v3861_v31, 0.0 }
 0x254   :  { %3354 = vpow2.f32 %v348_v32  ;;  %369 = vadd.xlane.f32.xlu0 %v368_v33 }
 0x258   :  { %3076 = vmatmul.msk.bf16.vlgmr.msra.gmra.mxu3 %vm131_vm1, %v3842_v1 }
 0x25a   :  { %v3867_v34 = vpop.eup %3354 }
 0x25b   :  { %v371_v35 = vsel %vm301_vm2, %v3867_v34, 0.0 }
 0x25c   :  { %372 = vadd.xlane.f32.xlu1 %v371_v35 }
 0x262   :  { %v428_v37 = vpop.permute.xlu0 %427 }
 0x263   :  { %440 = vmatpush.bf16.msra.mxu2 %v428_v37 }
 0x268   :  { %577 = vrot.lane.b32.xlu0 %v3842_v1, %s3677_s19 }
 0x270   :  { %452 = vrot.lane.b32.xlu0 %v3819_v27, %s3670_s12 }
 0x275   :  { %502 = vrot.lane.b32.xlu1 %v3823_v36, %s3670_s12 }
 0x278   :  { %529 = vrot.lane.b32.xlu0 %v3815_v20, %s3677_s19 }
 0x27d   :  { %527 = vrot.lane.b32.xlu1 %v3815_v20, %s3676_s0 }
 0x280   :  { %601 = vrot.lane.b32.xlu0 %v3823_v36, %s3677_s19 }
 0x285   :  { %599 = vrot.lane.b32.xlu1 %v3823_v36, %s3676_s0 }
 0x29d   :  { %v352_v38 = vpop.xlane.xlu1 %351 }
 0x29e   :  { %3356 = vrcp.f32 %v352_v38 }
 0x2a4   :  { %v3357_v39 = vpop.eup %3356 }
 0x2a5   :  { %v382_v40 = vmul.f32 %v3357_v39, %v352_v38  ;;  %v355_v41 = vpop.xlane.xlu2 %354 }
 0x2a6   :  { %3358 = vrcp.f32 %v355_v41 }
 0x2a7   :  { %v390_v42 = vsub.f32 2.0, %v382_v40 }
 0x2a9   :  { %v398_v43 = vmul.f32 %v3357_v39, %v390_v42 }
 0x2ab   :  { %v406_v46 = vmul.f32 %v3345_v7, %v398_v43 }
 0x2ac   :  { %v3359_v44 = vpop.eup %3358 }
 0x2ad   :  { %v383_v45 = vmul.f32 %v3359_v44, %v355_v41  ;;  %v414_v49 = vpack.c.bf16 %v406_v46, %v406_v46  ;;  %v358_v52 = vpop.xlane.xlu1 %357 }
 0x2af   :  { %v391_v47 = vsub.f32 2.0, %v383_v45  ;;  %v424_v53 = vunpack.c.l.b16 %v414_v49 }
 0x2b1   :  { %v399_v48 = vmul.f32 %v3359_v44, %v391_v47  ;;  %v576_v44 = vpop.permute.xlu2 %575 }
 0x2b3   :  { %v407_v50 = vmul.f32 %v3347_v12, %v399_v48 }
 0x2b5   :  { %v415_v51 = vpack.c.bf16 %v407_v50, %v407_v50  ;;  %v361_v56 = vpop.xlane.xlu1 %360 }
 0x2b6   :  { %3360 = vrcp.f32 %v361_v56 }
 0x2b7   :  { %v425_v54 = vunpack.c.l.b16 %v415_v51  ;;  %3362 = vrcp.f32 %v358_v52 }
 0x2b9   :  { %v426_v55 = vpack.c.b16 %v425_v54, %v424_v53 }
 0x2bb   :  { %3078 = vmatmul.msk.bf16.vlgmr.msra.gmra.mxu2 %vm301_vm2, %v426_v55 }
 0x2bc   :  { %v3361_v58 = vpop.eup %3360 }
 0x2bd   :  { %v3363_v59 = vpop.eup %3362  ;;  %v385_v60 = vmul.f32 %v3361_v58, %v361_v56 }
 0x2be   :  { %v384_v61 = vmul.f32 %v3363_v59, %v358_v52 }
 0x2bf   :  { %v393_v0 = vsub.f32 2.0, %v385_v60 }
 0x2c0   :  { %v392_v2 = vsub.f32 2.0, %v384_v61 }
 0x2c1   :  { %v401_v4 = vmul.f32 %v3361_v58, %v393_v0 }
 0x2c2   :  { %v400_v6 = vmul.f32 %v3363_v59, %v392_v2 }
 0x2c3   :  { %v409_v9 = vmul.f32 %v3854_v21, %v401_v4 }
 0x2c4   :  { %v408_v11 = vmul.f32 %v3850_v17, %v400_v6 }
 0x2c5   :  { %v417_v16 = vpack.c.bf16 %v409_v9, %v409_v9 }
 0x2c6   :  { %v416_v22 = vpack.c.bf16 %v408_v11, %v408_v11 }
 0x2c7   :  { %v370_v57 = vpop.xlane.xlu0 %369  ;;  %v450_v25 = vunpack.c.l.b16 %v417_v16 }
 0x2c8   :  { %3364 = vrcp.f32 %v370_v57  ;;  %v449_v21 = vunpack.c.l.b16 %v416_v22 }
 0x2ca   :  { %v451_v32 = vpack.c.b16 %v450_v25, %v449_v21 }
 0x2ce   :  { %v3365_v63 = vpop.eup %3364 }
 0x2cf   :  { %v373_v62 = vpop.xlane.xlu1 %372  ;;  %v388_v3 = vmul.f32 %v3365_v63, %v370_v57 }
 0x2d0   :  { %3366 = vrcp.f32 %v373_v62 }
 0x2d1   :  { %v396_v7 = vsub.f32 2.0, %v388_v3 }
 0x2d3   :  { %v404_v13 = vmul.f32 %v3365_v63, %v396_v7 }
 0x2d5   :  { %v412_v24 = vmul.f32 %v3861_v31, %v404_v13 }
 0x2d6   :  { %v3367_v5 = vpop.eup %3366 }
 0x2d7   :  { %v389_v8 = vmul.f32 %v3367_v5, %v373_v62  ;;  %v420_v29 = vpack.c.bf16 %v412_v24, %v412_v24 }
 0x2d9   :  { %v397_v10 = vsub.f32 2.0, %v389_v8  ;;  %v499_v35 = vunpack.c.l.b16 %v420_v29 }
 0x2da   :  { %v578_v12 = vpop.permute.xlu0 %577 }
 0x2db   :  { %v405_v14 = vmul.f32 %v3367_v5, %v397_v10  ;;  %v261_v15 = vpop.f32.mrf.mxu3  ;;  %v583_v31 = vsel %vm131_vm1, %v578_v12, 0 }
 0x2dc   :  { %v297_v18 = vmul.f32 0.35355338, %v261_v15 }
 0x2dd   :  { %v413_v19 = vmul.f32 %v3867_v34, %v405_v14 }
 0x2de   :  { %v314_v23 = vsel %vm301_vm2, %v297_v18, -inf }
 0x2df   :  { %315 = vmax.xlane.f32.xlu0 %v314_v23  ;;  %v421_v26 = vpack.c.bf16 %v413_v19, %v413_v19 }
 0x2e1   :  { %v500_v33 = vunpack.c.l.b16 %v421_v26 }
 0x2e2   :  { %v453_v28 = vpop.permute.xlu0 %452 }
 0x2e3   :  { %v263_v17 = vpop.f32.mrf.mxu3  ;;  %465 = vmatpush.bf16.msrb.mxu3 %v453_v28  ;;  %v501_v38 = vpack.c.b16 %v500_v33, %v499_v35 }
 0x2e4   :  { %v298_v30 = vmul.f32 0.35355338, %v263_v17 }
 0x2e6   :  { %3079 = vmatmul.msk.bf16.vlgmr.msrb.gmra.mxu3 %vm301_vm2, %v451_v32  ;;  %v317_v34 = vsel %vm301_vm2, %v298_v30, -inf }
 0x2e7   :  { %318 = vmax.xlane.f32.xlu2 %v317_v34  ;;  %v503_v37 = vpop.permute.xlu1 %502 }
 0x2e8   :  { %515 = vmatpush.bf16.msrb.mxu2 %v503_v37 }
 0x2ea   :  { %v530_v39 = vpop.permute.xlu0 %529 }
 0x2eb   :  { %v535_v40 = vsel %vm131_vm1, %v530_v39, 0  ;;  %3081 = vmatmul.msk.bf16.vlgmr.msrb.gmra.mxu2 %vm301_vm2, %v501_v38 }
 0x2ec   :  { %592 = vmatpush.bf16.xpose.msra.mxu2 %v583_v31  ;;  %544 = vmatpush.bf16.xpose.msra.mxu3 %v535_v40 }
 0x2ef   :  { %v528_v43 = vpop.permute.xlu1 %527 }
 0x2f2   :  { %v602_v41 = vpop.permute.xlu0 %601 }
 0x2f3   :  { %v607_v42 = vsel %vm131_vm1, %v602_v41, 0 }
 0x2f4   :  { %616 = vmatpush.bf16.xpose.msrb.mxu3 %v607_v42 }
 0x2f6   :  { %3082 = vmatmul.msk.bf16.vlgmr.msra.gmra.mxu3 %vm131_vm1, %v528_v43 }
 0x2f7   :  { %v600_v45 = vpop.permute.xlu1 %599 }
 0x2fb   :  { %3084 = vmatmul.msk.bf16.vlgmr.msra.gmra.mxu2 %vm131_vm1, %v576_v44 }
 0x306   :  { %3085 = vmatmul.msk.bf16.vlgmr.msrb.gmra.mxu3 %vm131_vm1, %v600_v45 }
 0x33e   :  { %v3902_v56 = vpop.f32.mrf.mxu2 }
 0x346   :  { %v3906_v58 = vpop.f32.mrf.mxu2 }
 0x352   :  { %v316_v46 = vpop.xlane.xlu0 %315 }
 0x353   :  { %v330_v47 = vsub.f32 %v297_v18, %v316_v46 }
 0x355   :  { %v342_v48 = vmul.f32 1.442695, %v330_v47 }
 0x357   :  { %3368 = vpow2.f32 %v342_v48 }
 0x35a   :  { %v319_v49 = vpop.xlane.xlu2 %318 }
 0x35b   :  { %v331_v50 = vsub.f32 %v298_v30, %v319_v49 }
 0x35d   :  { %v3369_v51 = vpop.eup %3368  ;;  %v344_v52 = vmul.f32 1.442695, %v331_v50 }
 0x35e   :  { %v362_v53 = vsel %vm301_vm2, %v3369_v51, 0.0 }
 0x35f   :  { %3370 = vpow2.f32 %v344_v52  ;;  %363 = vadd.xlane.f32.xlu1 %v362_v53 }
 0x365   :  { %v3371_v54 = vpop.eup %3370 }
 0x366   :  { %v365_v55 = vsel %vm301_vm2, %v3371_v54, 0.0 }
 0x367   :  { %366 = vadd.xlane.f32.xlu0 %v365_v55 }
 0x369   :  { %v3904_v57 = vpop.f32.mrf.mxu3 }
 0x36e   :  { %v3910_v60 = vpop.f32.mrf.mxu2 }
 0x371   :  { %v3908_v59 = vpop.f32.mrf.mxu3 }
 0x376   :  { %v3918_v63 = vpop.f32.mrf.mxu2 }
 0x379   :  { %v3912_v61 = vpop.f32.mrf.mxu3 }
 0x37b   :  { %477 = vrot.lane.b32.xlu0 %v3842_v1, %s3670_s12 }
 0x37e   :  { %v594_v4 = vpop.f32.mrf.mxu2 }
 0x37f   :  { %v627_v5 = vmul.f32 0.35355338, %v594_v4 }
 0x381   :  { %v3916_v62 = vpop.f32.mrf.mxu3  ;;  %v643_v8 = vsel %vm301_vm2, %v627_v5, -inf }
 0x386   :  { %v596_v10 = vpop.f32.mrf.mxu2 }
 0x387   :  { %v628_v12 = vmul.f32 0.35355338, %v596_v10 }
 0x389   :  { %v618_v0 = vpop.f32.mrf.mxu3  ;;  %v646_v13 = vsel %vm301_vm2, %v628_v12, -inf }
 0x38a   :  { %v629_v2 = vmul.f32 0.35355338, %v618_v0 }
 0x38c   :  { %v649_v3 = vsel %vm301_vm2, %v629_v2, -inf }
 0x38d   :  { %650 = vmax.xlane.f32.xlu2 %v649_v3 }
 0x391   :  { %v620_v6 = vpop.f32.mrf.mxu3 }
 0x392   :  { %v630_v7 = vmul.f32 0.35355338, %v620_v6 }
 0x394   :  { %v652_v9 = vsel %vm301_vm2, %v630_v7, -inf }
 0x395   :  { %644 = vmax.xlane.f32.xlu2 %v643_v8  ;;  %653 = vmax.xlane.f32.xlu1 %v652_v9 }
 0x3ad   :  { %553 = vrot.lane.b32.xlu2 %v3819_v27, %s3677_s19  ;;  %s3058_s19 = sshll.u32 %s4953_s11, 4  ;;  %s3059_s19 = int_to_ptr.hbm [resolvable:$true] %s3058_s19 }
 0x3ae   :  { %551 = vrot.lane.b32.xlu1 %v3819_v27, %s3676_s0 }
 0x3d2   :  { %v364_v11 = vpop.xlane.xlu1 %363 }
 0x3d3   :  { %3372 = vrcp.f32 %v364_v11 }
 0x3d8   :  { %647 = vmax.xlane.f32.xlu1 %v646_v13 }
 0x3d9   :  { %v3373_v14 = vpop.eup %3372 }
 0x3da   :  { %v386_v15 = vmul.f32 %v3373_v14, %v364_v11  ;;  %v367_v16 = vpop.xlane.xlu0 %366 }
 0x3db   :  { %3374 = vrcp.f32 %v367_v16 }
 0x3dc   :  { %v394_v18 = vsub.f32 2.0, %v386_v15 }
 0x3de   :  { %v402_v19 = vmul.f32 %v3373_v14, %v394_v18 }
 0x3e0   :  { %v410_v24 = vmul.f32 %v3369_v51, %v402_v19 }
 0x3e1   :  { %v3375_v22 = vpop.eup %3374 }
 0x3e2   :  { %v387_v23 = vmul.f32 %v3375_v22, %v367_v16  ;;  %v418_v21 = vpack.c.bf16 %v410_v24, %v410_v24 }
 0x3e4   :  { %v395_v25 = vsub.f32 2.0, %v387_v23  ;;  %v474_v17 = vunpack.c.l.b16 %v418_v21 }
 0x3e6   :  { %v403_v26 = vmul.f32 %v3375_v22, %v395_v25 }
 0x3e8   :  { %v411_v28 = vmul.f32 %v3371_v54, %v403_v26 }
 0x3ea   :  { %v419_v29 = vpack.c.bf16 %v411_v28, %v411_v28 }
 0x3ec   :  { %v475_v30 = vunpack.c.l.b16 %v419_v29 }
 0x3ed   :  { %v478_v32 = vpop.permute.xlu0 %477 }
 0x3ee   :  { %490 = vmatpush.bf16.msrb.mxu1 %v478_v32  ;;  %v476_v33 = vpack.c.b16 %v475_v30, %v474_v17 }
 0x3f1   :  { %806 = vrot.lane.b32.xlu1 %v3842_v1, %s3678_s20  ;;  %3080 = vmatmul.msk.bf16.vlgmr.msrb.gmra.mxu1 %vm301_vm2, %v476_v33 }
 0x400   :  { %v651_v34 = vpop.xlane.xlu2 %650 }
 0x401   :  { %v661_v31 = vsub.f32 %v629_v2, %v651_v34 }
 0x403   :  { %v675_v41 = vmul.f32 1.442695, %v661_v31 }
 0x408   :  { %v645_v35 = vpop.xlane.xlu2 %644  ;;  %v654_v37 = vpop.xlane.xlu1 %653 }
 0x409   :  { %v662_v38 = vsub.f32 %v630_v7, %v654_v37  ;;  %v659_v40 = vsub.f32 %v627_v5, %v645_v35 }
 0x40b   :  { %v677_v39 = vmul.f32 1.442695, %v662_v38  ;;  %v671_v42 = vmul.f32 1.442695, %v659_v40 }
 0x40d   :  { %3376 = vpow2.f32 %v677_v39 }
 0x40e   :  { %3378 = vpow2.f32 %v675_v41 }
 0x40f   :  { %3380 = vpow2.f32 %v671_v42 }
 0x410   :  { %v554_v43 = vpop.permute.xlu2 %553 }
 0x411   :  { %v559_v44 = vsel %vm131_vm1, %v554_v43, 0 }
 0x412   :  { %568 = vmatpush.bf16.xpose.msra.mxu1 %v559_v44 }
 0x413   :  { %v3377_v45 = vpop.eup %3376 }
 0x414   :  { %v700_v46 = vsel %vm301_vm2, %v3377_v45, 0.0  ;;  %v3379_v47 = vpop.eup %3378 }
 0x415   :  { %701 = vadd.xlane.f32.xlu0 %v700_v46  ;;  %v3933_v48 = vpop.eup %3380  ;;  %v697_v49 = vsel %vm301_vm2, %v3379_v47, 0.0 }
 0x416   :  { %v691_v50 = vsel %vm301_vm2, %v3933_v48, 0.0 }
 0x41b   :  { %698 = vadd.xlane.f32.xlu1 %v697_v49 }
 0x41d   :  { %692 = vadd.xlane.f32.xlu0 %v691_v50 }
 0x420   :  { %v552_v51 = vpop.permute.xlu1 %551 }
 0x421   :  { %3083 = vmatmul.msk.bf16.vlgmr.msra.gmra.mxu1 %vm131_vm1, %v552_v51 }
 0x431   :  { %947 = vrot.lane.b32.xlu0 %v3815_v20, %s3679_s21 }
 0x434   :  { %995 = vrot.lane.b32.xlu1 %v3842_v1, %s3679_s21 }
 0x439   :  { %831 = vrot.lane.b32.xlu0 %v3823_v36, %s3678_s20 }
 0x43c   :  { %1017 = vrot.lane.b32.xlu1 %v3823_v36, %s3680_s24 }
 0x441   :  { %993 = vrot.lane.b32.xlu0 %v3842_v1, %s3680_s24 }
 0x449   :  { %969 = vrot.lane.b32.xlu0 %v3819_v27, %s3680_s24 }
 0x44b   :  { %v648_v52 = vpop.xlane.xlu1 %647 }
 0x44c   :  { %v660_v53 = vsub.f32 %v628_v12, %v648_v52 }
 0x44e   :  { %v673_v54 = vmul.f32 1.442695, %v660_v53 }
 0x450   :  { %3382 = vpow2.f32 %v673_v54 }
 0x456   :  { %v3383_v55 = vpop.eup %3382 }
 0x457   :  { %v694_v0 = vsel %vm301_vm2, %v3383_v55, 0.0 }
 0x458   :  { %695 = vadd.xlane.f32.xlu2 %v694_v0 }
 0x463   :  { %v807_v2 = vpop.permute.xlu1 %806 }
 0x464   :  { %819 = vmatpush.bf16.msrb.mxu2 %v807_v2 }
 0x46e   :  { %v3950_v4 = vpop.f32.mrf.mxu1 }
 0x470   :  { %945 = vrot.lane.b32.xlu2 %v3815_v20, %s3680_s24 }
 0x476   :  { %v3952_v8 = vpop.f32.mrf.mxu1 }
 0x478   :  { %971 = vrot.lane.b32.xlu2 %v3819_v27, %s3679_s21 }
 0x480   :  { %1019 = vrot.lane.b32.xlu2 %v3823_v36, %s3679_s21 }
 0x488   :  { %v702_v3 = vpop.xlane.xlu0 %701 }
 0x489   :  { %3384 = vrcp.f32 %v702_v3 }
 0x48e   :  { %v699_v5 = vpop.xlane.xlu1 %698 }
 0x48f   :  { %3386 = vrcp.f32 %v699_v5  ;;  %v3385_v6 = vpop.eup %3384 }
 0x490   :  { %v718_v10 = vmul.f32 %v3385_v6, %v702_v3  ;;  %v693_v13 = vpop.xlane.xlu0 %692 }
 0x491   :  { %3388 = vrcp.f32 %v693_v13 }
 0x492   :  { %v726_v12 = vsub.f32 2.0, %v718_v10 }
 0x494   :  { %v734_v18 = vmul.f32 %v3385_v6, %v726_v12 }
 0x495   :  { %v3387_v7 = vpop.eup %3386 }
 0x496   :  { %v717_v9 = vmul.f32 %v3387_v7, %v699_v5  ;;  %v742_v23 = vmul.f32 %v3377_v45, %v734_v18 }
 0x497   :  { %v3389_v35 = vpop.eup %3388 }
 0x498   :  { %v725_v11 = vsub.f32 2.0, %v717_v9  ;;  %v750_v29 = vpack.c.bf16 %v742_v23, %v742_v23  ;;  %v715_v37 = vmul.f32 %v3389_v35, %v693_v13 }
 0x49a   :  { %v733_v14 = vmul.f32 %v3387_v7, %v725_v11  ;;  %v829_v32 = vunpack.c.l.b16 %v750_v29  ;;  %v723_v38 = vsub.f32 2.0, %v715_v37 }
 0x49c   :  { %v741_v22 = vmul.f32 %v3379_v47, %v733_v14  ;;  %v731_v39 = vmul.f32 %v3389_v35, %v723_v38 }
 0x49e   :  { %v570_v15 = vpop.f32.mrf.mxu1  ;;  %v749_v26 = vpack.c.bf16 %v741_v22, %v741_v22  ;;  %v739_v43 = vmul.f32 %v3933_v48, %v731_v39 }
 0x49f   :  { %v625_v16 = vmul.f32 0.35355338, %v570_v15 }
 0x4a0   :  { %v828_v30 = vunpack.c.l.b16 %v749_v26  ;;  %v747_v46 = vpack.c.bf16 %v739_v43, %v739_v43 }
 0x4a1   :  { %v637_v19 = vsel %vm301_vm2, %v625_v16, -inf }
 0x4a2   :  { %638 = vmax.xlane.f32.xlu0 %v637_v19  ;;  %v830_v34 = vpack.c.b16 %v829_v32, %v828_v30  ;;  %v803_v53 = vunpack.c.l.b16 %v747_v46 }
 0x4a3   :  { %v948_v24 = vpop.permute.xlu0 %947 }
 0x4a4   :  { %v953_v25 = vsel %vm131_vm1, %v948_v24, 0 }
 0x4a5   :  { %962 = vmatpush.bf16.xpose.msra.mxu2 %v953_v25 }
 0x4a6   :  { %v572_v21 = vpop.f32.mrf.mxu1  ;;  %v996_v0 = vpop.permute.xlu1 %995 }
 0x4a7   :  { %v626_v28 = vmul.f32 0.35355338, %v572_v21  ;;  %v1001_v3 = vsel %vm131_vm1, %v996_v0, 0 }
 0x4a9   :  { %v640_v17 = vsel %vm301_vm2, %v626_v28, -inf }
 0x4aa   :  { %641 = vmax.xlane.f32.xlu2 %v640_v17 }
 0x4ab   :  { %v832_v33 = vpop.permute.xlu0 %831 }
 0x4ac   :  { %844 = vmatpush.bf16.msra.mxu3 %v832_v33 }
 0x4af   :  { %3089 = vmatmul.msk.bf16.vlgmr.msra.gmra.mxu3 %vm301_vm2, %v830_v34 }
 0x4b3   :  { %v994_v47 = vpop.permute.xlu0 %993 }
 0x4bb   :  { %v970_v48 = vpop.permute.xlu0 %969 }
 0x4cb   :  { %v696_v31 = vpop.xlane.xlu2 %695 }
 0x4cc   :  { %3390 = vrcp.f32 %v696_v31 }
 0x4d2   :  { %v3391_v40 = vpop.eup %3390 }
 0x4d3   :  { %v716_v41 = vmul.f32 %v3391_v40, %v696_v31  ;;  %v946_v42 = vpop.permute.xlu2 %945 }
 0x4d5   :  { %v724_v44 = vsub.f32 2.0, %v716_v41 }
 0x4d7   :  { %v732_v45 = vmul.f32 %v3391_v40, %v724_v44 }
 0x4d9   :  { %v740_v49 = vmul.f32 %v3383_v55, %v732_v45  ;;  %v1018_v55 = vpop.permute.xlu1 %1017 }
 0x4db   :  { %v748_v50 = vpack.c.bf16 %v740_v49, %v740_v49  ;;  %v972_v51 = vpop.permute.xlu2 %971 }
 0x4dc   :  { %v977_v52 = vsel %vm131_vm1, %v972_v51, 0 }
 0x4dd   :  { %v804_v54 = vunpack.c.l.b16 %v748_v50  ;;  %986 = vmatpush.bf16.xpose.msrb.mxu3 %v977_v52 }
 0x4df   :  { %v805_v2 = vpack.c.b16 %v804_v54, %v803_v53 }
 0x4e1   :  { %3088 = vmatmul.msk.bf16.vlgmr.msrb.gmra.mxu2 %vm301_vm2, %v805_v2 }
 0x4e2   :  { %1010 = vmatpush.bf16.xpose.msrb.mxu2 %v1001_v3 }
 0x4e3   :  { %v1020_v5 = vpop.permute.xlu2 %1019 }
 0x4e4   :  { %v1025_v6 = vsel %vm131_vm1, %v1020_v5, 0  ;;  %3099 = vmatmul.msk.bf16.vlgmr.msrb.gmra.mxu3 %vm131_vm1, %v970_v48 }
 0x4e5   :  { %1034 = vmatpush.bf16.xpose.msra.mxu3 %v1025_v6 }
 0x4f1   :  { %3098 = vmatmul.msk.bf16.vlgmr.msra.gmra.mxu2 %vm131_vm1, %v946_v42 }
 0x4f4   :  { %3101 = vmatmul.msk.bf16.vlgmr.msra.gmra.mxu3 %vm131_vm1, %v1018_v55 }
 0x501   :  { %3100 = vmatmul.msk.bf16.vlgmr.msrb.gmra.mxu2 %vm131_vm1, %v994_v47 }
 0x515   :  { %v639_v7 = vpop.xlane.xlu0 %638 }
 0x516   :  { %v657_v9 = vsub.f32 %v625_v16, %v639_v7 }
 0x518   :  { %v667_v10 = vmul.f32 1.442695, %v657_v9  ;;  %v526_v9 = vld [vmem:[#allocation2] sm:$0xf] }
 0x51a   :  { %3392 = vpow2.f32 %v667_v10 }
 0x51d   :  { %v642_v11 = vpop.xlane.xlu2 %641 }
 0x51e   :  { %v658_v12 = vsub.f32 %v626_v28, %v642_v11 }
 0x520   :  { %v3393_v13 = vpop.eup %3392  ;;  %v669_v14 = vmul.f32 1.442695, %v658_v12 }
 0x521   :  { %v685_v15 = vsel %vm301_vm2, %v3393_v13, 0.0 }
 0x522   :  { %3394 = vpow2.f32 %v669_v14  ;;  %686 = vadd.xlane.f32.xlu1 %v685_v15  ;;  %v914_v14 = vsel %vm144_vm0, %v526_v9, 0 }
 0x528   :  { %v3395_v18 = vpop.eup %3394 }
 0x529   :  { %v688_v19 = vsel %vm301_vm2, %v3395_v18, 0.0 }
 0x52a   :  { %689 = vadd.xlane.f32.xlu0 %v688_v19 }
 0x532   :  { %v3971_v22 = vpop.f32.mrf.mxu3 }
 0x53a   :  { %v3973_v16 = vpop.f32.mrf.mxu3 }
 0x53e   :  { %781 = vrot.lane.b32.xlu0 %v3819_v27, %s3678_s20 }
 0x564   :  { %v3975_v23 = vpop.f32.mrf.mxu2 }
 0x567   :  { %v988_v24 = vpop.f32.mrf.mxu3 }
 0x568   :  { %v3977_v25 = vmul.f32 0.35355338, %v988_v24 }
 0x56a   :  { %v1055_v26 = vsel %vm301_vm2, %v3977_v25, -inf }
 0x56b   :  { %1056 = vmax.xlane.f32.xlu2 %v1055_v26 }
 0x56c   :  { %v3981_v21 = vpop.f32.mrf.mxu2 }
 0x56f   :  { %v990_v28 = vpop.f32.mrf.mxu3 }
 0x570   :  { %v3983_v29 = vmul.f32 0.35355338, %v990_v28 }
 0x572   :  { %v1058_v17 = vsel %vm301_vm2, %v3983_v29, -inf }
 0x573   :  { %1059 = vmax.xlane.f32.xlu1 %v1058_v17 }
 0x574   :  { %v964_v30 = vpop.f32.mrf.mxu2 }
 0x575   :  { %v3987_v32 = vmul.f32 0.35355338, %v964_v30 }
 0x577   :  { %v1036_v33 = vpop.f32.mrf.mxu3  ;;  %v1049_v34 = vsel %vm301_vm2, %v3987_v32, -inf }
 0x578   :  { %1050 = vmax.xlane.f32.xlu2 %v1049_v34  ;;  %v3991_v35 = vmul.f32 0.35355338, %v1036_v33 }
 0x57a   :  { %v1067_v39 = vsel %vm301_vm2, %v3991_v35, -inf }
 0x57c   :  { %v966_v37 = vpop.f32.mrf.mxu2 }
 0x57d   :  { %v3993_v31 = vmul.f32 0.35355338, %v966_v37 }
 0x57f   :  { %v1038_v38 = vpop.f32.mrf.mxu3  ;;  %v1052_v40 = vsel %vm301_vm2, %v3993_v31, -inf }
 0x580   :  { %v3999_v41 = vmul.f32 0.35355338, %v1038_v38  ;;  %1068 = vmax.xlane.f32.xlu2 %v1067_v39  ;;  %1053 = vmax.xlane.f32.xlu1 %v1052_v40  ;;  %v4052_v38 = vmul.f32 0.35355338, %v3916_v62 }
 0x582   :  { %v1070_v42 = vsel %vm301_vm2, %v3999_v41, -inf }
 0x583   :  { %1071 = vmax.xlane.f32.xlu0 %v1070_v42 }
 0x584   :  { %v1012_v43 = vpop.f32.mrf.mxu2 }
 0x585   :  { %v4003_v44 = vmul.f32 0.35355338, %v1012_v43 }
 0x587   :  { %v1061_v45 = vsel %vm301_vm2, %v4003_v44, -inf }
 0x588   :  { %1062 = vmax.xlane.f32.xlu2 %v1061_v45 }
 0x58c   :  { %v1014_v46 = vpop.f32.mrf.mxu2 }
 0x58d   :  { %v4007_v47 = vmul.f32 0.35355338, %v1014_v46 }
 0x58f   :  { %v1064_v49 = vsel %vm301_vm2, %v4007_v47, -inf }
 0x590   :  { %1065 = vmax.xlane.f32.xlu1 %v1064_v49 }
 0x595   :  { %v687_v50 = vpop.xlane.xlu1 %686 }
 0x596   :  { %3396 = vrcp.f32 %v687_v50 }
 0x597   :  { %1329 = vrot.lane.b32.xlu0 %v3815_v20, %s3681_s7 }
 0x59c   :  { %v3397_v51 = vpop.eup %3396 }
 0x59d   :  { %v713_v52 = vmul.f32 %v3397_v51, %v687_v50  ;;  %v690_v53 = vpop.xlane.xlu0 %689 }
 0x59e   :  { %3398 = vrcp.f32 %v690_v53 }
 0x59f   :  { %v721_v54 = vsub.f32 2.0, %v713_v52  ;;  %1327 = vrot.lane.b32.xlu0 %v3815_v20, %s3682_s9 }
 0x5a1   :  { %v729_v0 = vmul.f32 %v3397_v51, %v721_v54 }
 0x5a3   :  { %v737_v48 = vmul.f32 %v3393_v13, %v729_v0  ;;  %v522_v13 = vpack.c.bf16 %v3906_v58, %v3902_v56  ;;  %v524_v56 = vpack.c.bf16 %v3952_v8, %v3950_v4  ;;  %v525_v8 = vpack.c.bf16 %v3918_v63, %v3910_v60 }
 0x5a4   :  { %v3399_v2 = vpop.eup %3398  ;;  %v634_v60 = vsel %vm301_vm2, %v4052_v38, -inf }
 0x5a5   :  { %v714_v3 = vmul.f32 %v3399_v2, %v690_v53  ;;  %v745_v55 = vpack.c.bf16 %v737_v48, %v737_v48 }
 0x5a7   :  { %v722_v5 = vsub.f32 2.0, %v714_v3  ;;  %1353 = vrot.lane.b32.xlu0 %v3819_v27, %s3681_s7  ;;  %v778_v11 = vunpack.c.l.b16 %v745_v55 }
 0x5a9   :  { %v730_v6 = vmul.f32 %v3399_v2, %v722_v5 }
 0x5ab   :  { %v738_v7 = vmul.f32 %v3395_v18, %v730_v6  ;;  %v523_v18 = vpack.c.bf16 %v3908_v59, %v3904_v57 }
 0x5ad   :  { %v746_v10 = vpack.c.bf16 %v738_v7, %v738_v7 }
 0x5af   :  { %v779_v12 = vunpack.c.l.b16 %v746_v10  ;;  %1199 = vrot.lane.b32.xlu0 %v3819_v27, %s3683_s25 }
 0x5b0   :  { %v782_v15 = vpop.permute.xlu0 %781 }
 0x5b1   :  { %v780_v19 = vpack.c.b16 %v779_v12, %v778_v11  ;;  %794 = vmatpush.bf16.msrb.mxu1 %v782_v15 }
 0x5b4   :  { %3087 = vmatmul.msk.bf16.vlgmr.msrb.gmra.mxu1 %vm301_vm2, %v780_v19 }
 0x5b5   :  { %923 = vmatpush.bf16.msra.mxu1 %v914_v14 }
 0x5b7   :  { %1351 = vrot.lane.b32.xlu0 %v3819_v27, %s3682_s9 }
 0x5bf   :  { %1377 = vrot.lane.b32.xlu0 %v3842_v1, %s3681_s7 }
 0x5c4   :  { %3094 = vmatmul.msk.bf16.vlgmr.msra.gmra.mxu1 %vm131_vm1, %v522_v13 }
 0x5c7   :  { %1401 = vrot.lane.b32.xlu0 %v3823_v36, %s3681_s7 }
 0x5cf   :  { %1399 = vrot.lane.b32.xlu0 %v3823_v36, %s3682_s9 }
 0x5d4   :  { %3095 = vmatmul.msk.bf16.gmra.mxu1 %vm131_vm1, %v523_v18 }
 0x5de   :  { %v1057_v24 = vpop.xlane.xlu2 %1056 }
 0x5df   :  { %v1075_v26 = vsub.f32 %v3977_v25, %v1057_v24 }
 0x5e1   :  { %v1085_v28 = vmul.f32 1.442695, %v1075_v26 }
 0x5e3   :  { %3400 = vpow2.f32 %v1085_v28 }
 0x5e4   :  { %3096 = vmatmul.msk.bf16.gmra.mxu1 %vm131_vm1, %v524_v56 }
 0x5e6   :  { %v1060_v58 = vpop.xlane.xlu1 %1059 }
 0x5e7   :  { %v1076_v17 = vsub.f32 %v3983_v29, %v1060_v58 }
 0x5e9   :  { %v4040_v30 = vpop.eup %3400  ;;  %v1087_v33 = vmul.f32 1.442695, %v1076_v17 }
 0x5ea   :  { %v1103_v57 = vsel %vm301_vm2, %v4040_v30, 0.0 }
 0x5eb   :  { %3402 = vpow2.f32 %v1087_v33  ;;  %v1051_v59 = vpop.xlane.xlu2 %1050  ;;  %1104 = vadd.xlane.f32.xlu2 %v1103_v57 }
 0x5ec   :  { %v1073_v25 = vsub.f32 %v3987_v32, %v1051_v59 }
 0x5ee   :  { %v1081_v34 = vmul.f32 1.442695, %v1073_v25 }
 0x5f0   :  { %3404 = vpow2.f32 %v1081_v34 }
 0x5f1   :  { %v4045_v4 = vpop.eup %3402 }
 0x5f2   :  { %v1106_v29 = vsel %vm301_vm2, %v4045_v4, 0.0 }
 0x5f3   :  { %1107 = vadd.xlane.f32.xlu2 %v1106_v29  ;;  %v1054_v37 = vpop.xlane.xlu1 %1053 }
 0x5f4   :  { %v1074_v39 = vsub.f32 %v3993_v31, %v1054_v37  ;;  %3097 = vmatmul.msk.bf16.gmra.mxu1 %vm131_vm1, %v525_v8 }
 0x5f6   :  { %v4056_v32 = vpop.eup %3404  ;;  %v1083_v40 = vmul.f32 1.442695, %v1074_v39  ;;  %v1072_v31 = vpop.xlane.xlu0 %1071 }
 0x5f7   :  { %v1097_v42 = vsel %vm301_vm2, %v4056_v32, 0.0  ;;  %v1080_v15 = vsub.f32 %v3999_v41, %v1072_v31 }
 0x5f8   :  { %1098 = vadd.xlane.f32.xlu1 %v1097_v42  ;;  %3406 = vpow2.f32 %v1083_v40 }
 0x5f9   :  { %635 = vmax.xlane.f32.xlu0 %v634_v60  ;;  %v1095_v24 = vmul.f32 1.442695, %v1080_v15  ;;  %v4128_v15 = vmul.f32 0.35355338, %v3912_v61 }
 0x5fe   :  { %v4062_v63 = vpop.eup %3406 }
 0x5ff   :  { %v1100_v62 = vsel %vm301_vm2, %v4062_v63, 0.0 }
 0x600   :  { %1101 = vadd.xlane.f32.xlu2 %v1100_v62 }
 0x603   :  { %v1066_v43 = vpop.xlane.xlu1 %1065 }
 0x604   :  { %v1078_v45 = vsub.f32 %v4007_v47, %v1066_v43  ;;  %v1069_v47 = vpop.xlane.xlu2 %1068 }
 0x605   :  { %v1079_v6 = vsub.f32 %v3991_v35, %v1069_v47 }
 0x606   :  { %v1091_v46 = vmul.f32 1.442695, %v1078_v45 }
 0x607   :  { %v1093_v9 = vmul.f32 1.442695, %v1079_v6 }
 0x608   :  { %3408 = vpow2.f32 %v1091_v46 }
 0x609   :  { %v1330_v49 = vpop.permute.xlu0 %1329 }
 0x60a   :  { %v1335_v50 = vsel %vm131_vm1, %v1330_v49, 0 }
 0x60b   :  { %1344 = vmatpush.bf16.xpose.msrb.mxu1 %v1335_v50 }
 0x60c   :  { %v1063_v2 = vpop.xlane.xlu2 %1062 }
 0x60d   :  { %v1077_v3 = vsub.f32 %v4003_v44, %v1063_v2 }
 0x60e   :  { %v4068_v51 = vpop.eup %3408 }
 0x60f   :  { %v1112_v52 = vsel %vm301_vm2, %v4068_v51, 0.0  ;;  %v1089_v5 = vmul.f32 1.442695, %v1077_v3 }
 0x610   :  { %1113 = vadd.xlane.f32.xlu2 %v1112_v52 }
 0x611   :  { %1174 = vrot.lane.b32.xlu1 %v3815_v20, %s3683_s25  ;;  %v1328_v53 = vpop.permute.xlu0 %1327  ;;  %3410 = vpow2.f32 %v1089_v5 }
 0x612   :  { %3110 = vmatmul.msk.bf16.vlgmr.msrb.gmra.mxu1 %vm131_vm1, %v1328_v53  ;;  %3412 = vpow2.f32 %v1093_v9 }
 0x613   :  { %3414 = vpow2.f32 %v1095_v24 }
 0x617   :  { %v4087_v10 = vpop.eup %3410 }
 0x618   :  { %v1109_v44 = vsel %vm301_vm2, %v4087_v10, 0.0  ;;  %v4094_v35 = vpop.eup %3412 }
 0x619   :  { %v4075_v54 = vpop.permute.xlu0 %1353  ;;  %v1115_v18 = vsel %vm301_vm2, %v4094_v35, 0.0  ;;  %v4104_v28 = vpop.eup %3414 }
 0x61a   :  { %v1118_v56 = vsel %vm301_vm2, %v4104_v28, 0.0 }
 0x621   :  { %v1200_v0 = vpop.permute.xlu0 %1199 }
 0x622   :  { %1212 = vmatpush.bf16.msrb.mxu3 %v1200_v0 }
 0x628   :  { %1224 = vrot.lane.b32.xlu2 %v3842_v1, %s3683_s25 }
 0x629   :  { %v4080_v48 = vpop.permute.xlu0 %1351 }
 0x631   :  { %v4083_v55 = vpop.f32.mrf.mxu1  ;;  %v4085_v7 = vpop.permute.xlu0 %1377 }
 0x639   :  { %v4089_v11 = vpop.f32.mrf.mxu1  ;;  %v1402_v12 = vpop.permute.xlu0 %1401 }
 0x63a   :  { %v1407_v14 = vsel %vm131_vm1, %v1402_v12, 0 }
 0x63b   :  { %1110 = vadd.xlane.f32.xlu1 %v1109_v44  ;;  %1416 = vmatpush.bf16.xpose.msra.mxu1 %v1407_v14 }
 0x641   :  { %v4097_v19 = vpop.f32.mrf.mxu1  ;;  %v1400_v13 = vpop.permute.xlu0 %1399 }
 0x642   :  { %3113 = vmatmul.msk.bf16.vlgmr.msra.gmra.mxu1 %vm131_vm1, %v1400_v13 }
 0x643   :  { %1116 = vadd.xlane.f32.xlu1 %v1115_v18 }
 0x649   :  { %v4102_v26 = vpop.f32.mrf.mxu1 }
 0x651   :  { %1119 = vadd.xlane.f32.xlu2 %v1118_v56  ;;  %v4108_v41 = vpop.f32.mrf.mxu1 }
 0x659   :  { %v4112_v17 = vpop.f32.mrf.mxu1 }
 0x65c   :  { %1249 = vrot.lane.b32.xlu1 %v3823_v36, %s3683_s25 }
 0x65e   :  { %v1105_v58 = vpop.xlane.xlu2 %1104 }
 0x65f   :  { %3416 = vrcp.f32 %v1105_v58 }
 0x661   :  { %v4114_v34 = vpop.f32.mrf.mxu1 }
 0x665   :  { %v3417_v33 = vpop.eup %3416 }
 0x666   :  { %v1131_v57 = vmul.f32 %v3417_v33, %v1105_v58  ;;  %v1108_v59 = vpop.xlane.xlu2 %1107  ;;  %v631_v58 = vsel %vm301_vm2, %v4128_v15, -inf }
 0x667   :  { %3418 = vrcp.f32 %v1108_v59 }
 0x668   :  { %v1139_v25 = vsub.f32 2.0, %v1131_v57 }
 0x669   :  { %1375 = vrot.lane.b32.xlu2 %v3842_v1, %s3682_s9  ;;  %v4119_v31 = vpop.f32.mrf.mxu1 }
 0x66a   :  { %v1147_v29 = vmul.f32 %v3417_v33, %v1139_v25 }
 0x66b   :  { %v1099_v8 = vpop.xlane.xlu1 %1098 }
 0x66c   :  { %3420 = vrcp.f32 %v1099_v8  ;;  %v1155_v40 = vmul.f32 %v4040_v30, %v1147_v29  ;;  %v636_v0 = vpop.xlane.xlu0 %635 }
 0x66d   :  { %v3419_v37 = vpop.eup %3418  ;;  %v656_v30 = vsub.f32 %v4052_v38, %v636_v0 }
 0x66e   :  { %v1132_v39 = vmul.f32 %v3419_v37, %v1108_v59  ;;  %v1163_v45 = vpack.c.bf16 %v1155_v40, %v1155_v40 }
 0x66f   :  { %v665_v14 = vmul.f32 1.442695, %v656_v30 }
 0x670   :  { %v1140_v42 = vsub.f32 2.0, %v1132_v39  ;;  %v1196_v53 = vunpack.c.l.b16 %v1163_v45 }
 0x671   :  { %v4124_v9 = vpop.f32.mrf.mxu1 }
 0x672   :  { %v3421_v60 = vpop.eup %3420  ;;  %v1148_v62 = vmul.f32 %v3419_v37, %v1140_v42 }
 0x673   :  { %v1129_v43 = vmul.f32 %v3421_v60, %v1099_v8  ;;  %v1102_v49 = vpop.xlane.xlu2 %1101 }
 0x674   :  { %v1156_v46 = vmul.f32 %v4045_v4, %v1148_v62  ;;  %3422 = vrcp.f32 %v1102_v49 }
 0x675   :  { %v1137_v52 = vsub.f32 2.0, %v1129_v43  ;;  %3424 = vpow2.f32 %v665_v14 }
 0x676   :  { %v1164_v50 = vpack.c.bf16 %v1156_v46, %v1156_v46 }
 0x677   :  { %v1145_v3 = vmul.f32 %v3421_v60, %v1137_v52 }
 0x678   :  { %v1197_v47 = vunpack.c.l.b16 %v1164_v50 }
 0x679   :  { %v1153_v12 = vmul.f32 %v4056_v32, %v1145_v3  ;;  %v4133_v32 = vpop.f32.mrf.mxu1 }
 0x67a   :  { %v1198_v2 = vpack.c.b16 %v1197_v47, %v1196_v53  ;;  %v3423_v5 = vpop.eup %3422 }
 0x67b   :  { %v1130_v6 = vmul.f32 %v3423_v5, %v1102_v49  ;;  %v1161_v13 = vpack.c.bf16 %v1153_v12, %v1153_v12  ;;  %v4135_v25 = vpop.eup %3424 }
 0x67c   :  { %3103 = vmatmul.msk.bf16.vlgmr.msrb.gmra.mxu3 %vm301_vm2, %v1198_v2  ;;  %v682_v8 = vsel %vm301_vm2, %v4135_v25, 0.0 }
 0x67d   :  { %v1138_v4 = vsub.f32 2.0, %v1130_v6  ;;  %v1171_v33 = vunpack.c.l.b16 %v1161_v13 }
 0x67f   :  { %v1146_v44 = vmul.f32 %v3423_v5, %v1138_v4 }
 0x681   :  { %v1154_v18 = vmul.f32 %v4062_v63, %v1146_v44  ;;  %v1359_v63 = vsel %vm131_vm1, %v4075_v54, 0 }
 0x683   :  { %v1114_v24 = vpop.xlane.xlu2 %1113  ;;  %v1175_v56 = vpop.permute.xlu1 %1174  ;;  %v1162_v38 = vpack.c.bf16 %v1154_v18, %v1154_v18 }
 0x684   :  { %1187 = vmatpush.bf16.msra.mxu2 %v1175_v56  ;;  %3426 = vrcp.f32 %v1114_v24 }
 0x685   :  { %v1172_v57 = vunpack.c.l.b16 %v1162_v38 }
 0x686   :  { %632 = vmax.xlane.f32.xlu1 %v631_v58 }
 0x687   :  { %v1173_v59 = vpack.c.b16 %v1172_v57, %v1171_v33 }
 0x689   :  { %3102 = vmatmul.msk.bf16.vlgmr.msra.gmra.mxu2 %vm301_vm2, %v1173_v59 }
 0x68a   :  { %v3427_v54 = vpop.eup %3426 }
 0x68b   :  { %v1225_v61 = vpop.permute.xlu2 %1224  ;;  %v1134_v62 = vmul.f32 %v3427_v54, %v1114_v24 }
 0x68c   :  { %1237 = vmatpush.bf16.msrb.mxu2 %v1225_v61 }
 0x68d   :  { %v1142_v45 = vsub.f32 2.0, %v1134_v62 }
 0x68e   :  { %683 = vadd.xlane.f32.xlu1 %v682_v8 }
 0x68f   :  { %v1346_v29 = vpop.f32.mrf.mxu1  ;;  %v1150_v46 = vmul.f32 %v3427_v54, %v1142_v45 }
 0x690   :  { %1368 = vmatpush.bf16.xpose.msra.mxu2 %v1359_v63  ;;  %v4142_v37 = vmul.f32 0.35355338, %v1346_v29 }
 0x691   :  { %v1158_v53 = vmul.f32 %v4068_v51, %v1150_v46 }
 0x692   :  { %v1431_v39 = vsel %vm301_vm2, %v4142_v37, -inf }
 0x693   :  { %1432 = vmax.xlane.f32.xlu0 %v1431_v39  ;;  %v1166_v2 = vpack.c.bf16 %v1158_v53, %v1158_v53 }
 0x695   :  { %v1222_v6 = vunpack.c.l.b16 %v1166_v2 }
 0x697   :  { %v1348_v40 = vpop.f32.mrf.mxu1 }
 0x698   :  { %v4146_v42 = vmul.f32 0.35355338, %v1348_v40 }
 0x69a   :  { %v1434_v60 = vsel %vm301_vm2, %v4146_v42, -inf }
 0x69b   :  { %1435 = vmax.xlane.f32.xlu1 %v1434_v60 }
 0x6ae   :  { %v1111_v43 = vpop.xlane.xlu1 %1110 }
 0x6af   :  { %3428 = vrcp.f32 %v1111_v43 }
 0x6b4   :  { %756 = vrot.lane.b32.xlu1 %v3815_v20, %s3678_s20 }
 0x6b5   :  { %v3429_v49 = vpop.eup %3428 }
 0x6b6   :  { %v1133_v50 = vmul.f32 %v3429_v49, %v1111_v43  ;;  %v1117_v52 = vpop.xlane.xlu1 %1116 }
 0x6b7   :  { %3430 = vrcp.f32 %v1117_v52 }
 0x6b8   :  { %v1141_v47 = vsub.f32 2.0, %v1133_v50 }
 0x6ba   :  { %v1149_v0 = vmul.f32 %v3429_v49, %v1141_v47 }
 0x6bc   :  { %v1157_v3 = vmul.f32 %v4087_v10, %v1149_v0  ;;  %v1383_v10 = vsel %vm131_vm1, %v4085_v7, 0 }
 0x6bd   :  { %v3431_v30 = vpop.eup %3430 }
 0x6be   :  { %v1165_v5 = vpack.c.bf16 %v1157_v3, %v1157_v3  ;;  %v1135_v14 = vmul.f32 %v3431_v30, %v1117_v52 }
 0x6c0   :  { %v1221_v12 = vunpack.c.l.b16 %v1165_v5  ;;  %v1143_v13 = vsub.f32 2.0, %v1135_v14 }
 0x6c2   :  { %v1223_v4 = vpack.c.b16 %v1222_v6, %v1221_v12  ;;  %v1151_v18 = vmul.f32 %v3431_v30, %v1143_v13 }
 0x6c4   :  { %3104 = vmatmul.msk.bf16.vlgmr.msrb.gmra.mxu2 %vm301_vm2, %v1223_v4  ;;  %v1120_v44 = vpop.xlane.xlu2 %1119  ;;  %v1159_v56 = vmul.f32 %v4094_v35, %v1151_v18 }
 0x6c5   :  { %3432 = vrcp.f32 %v1120_v44 }
 0x6c6   :  { %v1167_v57 = vpack.c.bf16 %v1159_v56, %v1159_v56 }
 0x6c8   :  { %v1246_v63 = vunpack.c.l.b16 %v1167_v57 }
 0x6cb   :  { %v3433_v24 = vpop.eup %3432 }
 0x6cc   :  { %v1136_v51 = vmul.f32 %v3433_v24, %v1120_v44  ;;  %v1376_v35 = vpop.permute.xlu2 %1375 }
 0x6ce   :  { %v1144_v38 = vsub.f32 2.0, %v1136_v51  ;;  %v1250_v58 = vpop.permute.xlu1 %1249 }
 0x6cf   :  { %1262 = vmatpush.bf16.msra.mxu3 %v1250_v58 }
 0x6d0   :  { %v1152_v33 = vmul.f32 %v3433_v24, %v1144_v38 }
 0x6d2   :  { %v1160_v59 = vmul.f32 %v4104_v28, %v1152_v33 }
 0x6d3   :  { %1392 = vmatpush.bf16.xpose.msrb.mxu3 %v1383_v10  ;;  %v1418_v10 = vpop.f32.mrf.mxu1 }
 0x6d4   :  { %v1168_v61 = vpack.c.bf16 %v1160_v59, %v1160_v59  ;;  %3111 = vmatmul.msk.bf16.vlgmr.msra.gmra.mxu2 %vm131_vm1, %v4080_v48 }
 0x6d6   :  { %v1247_v8 = vunpack.c.l.b16 %v1168_v61 }
 0x6d8   :  { %v1248_v29 = vpack.c.b16 %v1247_v8, %v1246_v63 }
 0x6da   :  { %3105 = vmatmul.msk.bf16.vlgmr.msra.gmra.mxu3 %vm301_vm2, %v1248_v29  ;;  %v1429_v29 = vmul.f32 0.35355338, %v1418_v10 }
 0x6ea   :  { %3112 = vmatmul.msk.bf16.vlgmr.msrb.gmra.mxu3 %vm131_vm1, %v1376_v35 }
 0x6f9   :  { %v633_v39 = vpop.xlane.xlu1 %632 }
 0x6fa   :  { %v655_v7 = vsub.f32 %v4128_v15, %v633_v39 }
 0x6fc   :  { %v663_v40 = vmul.f32 1.442695, %v655_v7 }
 0x6fe   :  { %3434 = vpow2.f32 %v663_v40 }
 0x6ff   :  { %v4186_v3 = vpop.f32.mrf.mxu3 }
 0x701   :  { %v684_v54 = vpop.xlane.xlu1 %683 }
 0x704   :  { %v4164_v60 = vpop.eup %3434 }
 0x705   :  { %v679_v28 = vsel %vm301_vm2, %v4164_v60, 0.0 }
 0x706   :  { %680 = vadd.xlane.f32.xlu2 %v679_v28  ;;  %v1433_v48 = vpop.xlane.xlu0 %1432  ;;  %v1449_v28 = vsel %vm301_vm2, %v1429_v29, -inf }
 0x707   :  { %v1455_v62 = vsub.f32 %v4142_v37, %v1433_v48  ;;  %v4192_v6 = vpop.f32.mrf.mxu3 }
 0x709   :  { %v1463_v43 = vmul.f32 1.442695, %v1455_v62 }
 0x70b   :  { %3436 = vpow2.f32 %v1463_v43 }
 0x70c   :  { %v4169_v45 = vpop.f32.mrf.mxu2 }
 0x70e   :  { %v1436_v46 = vpop.xlane.xlu1 %1435 }
 0x70f   :  { %v1456_v49 = vsub.f32 %v4146_v42, %v1436_v46 }
 0x711   :  { %v4172_v15 = vpop.eup %3436  ;;  %v1465_v50 = vmul.f32 1.442695, %v1456_v49 }
 0x712   :  { %v1479_v52 = vsel %vm301_vm2, %v4172_v15, 0.0 }
 0x713   :  { %3438 = vpow2.f32 %v1465_v50  ;;  %1480 = vadd.xlane.f32.xlu2 %v1479_v52 }
 0x714   :  { %v4176_v53 = vpop.f32.mrf.mxu2  ;;  %3440 = vrcp.f32 %v684_v54 }
 0x715   :  { %v1269_v37 = vpack.c.bf16 %v4176_v53, %v4169_v45 }
 0x719   :  { %v4180_v47 = vpop.eup %3438 }
 0x71a   :  { %v1482_v0 = vsel %vm301_vm2, %v4180_v47, 0.0  ;;  %v3441_v51 = vpop.eup %3440 }
 0x71b   :  { %1483 = vadd.xlane.f32.xlu0 %v1482_v0  ;;  %v712_v33 = vmul.f32 %v3441_v51, %v684_v54  ;;  %v1420_v54 = vpop.f32.mrf.mxu1 }
 0x71c   :  { %v1430_v46 = vmul.f32 0.35355338, %v1420_v54 }
 0x71d   :  { %v720_v8 = vsub.f32 2.0, %v712_v33 }
 0x71e   :  { %v1452_v0 = vsel %vm301_vm2, %v1430_v46, -inf }
 0x71f   :  { %v728_v39 = vmul.f32 %v3441_v51, %v720_v8 }
 0x721   :  { %v736_v62 = vmul.f32 %v4135_v25, %v728_v39 }
 0x723   :  { %v744_v50 = vpack.c.bf16 %v736_v62, %v736_v62 }
 0x726   :  { %v757_v42 = vpop.permute.xlu1 %756 }
 0x727   :  { %769 = vmatpush.bf16.msrb.mxu0 %v757_v42 }
 0x747   :  { %v4184_v2 = vpop.f32.mrf.mxu2 }
 0x74f   :  { %v4188_v5 = vpop.f32.mrf.mxu2 }
 0x750   :  { %v1271_v30 = vpack.c.bf16 %v4188_v5, %v4184_v2 }
 0x757   :  { %v1370_v18 = vpop.f32.mrf.mxu2 }
 0x758   :  { %v1425_v56 = vmul.f32 0.35355338, %v1370_v18 }
 0x75a   :  { %v1437_v59 = vsel %vm301_vm2, %v1425_v56, -inf }
 0x75d   :  { %v4194_v12 = vpop.f32.mrf.mxu3 }
 0x75f   :  { %v1372_v61 = vpop.f32.mrf.mxu2 }
 0x760   :  { %v1426_v35 = vmul.f32 0.35355338, %v1372_v61 }
 0x762   :  { %v1440_v40 = vsel %vm301_vm2, %v1426_v35, -inf }
 0x765   :  { %v4196_v4 = vpop.f32.mrf.mxu3 }
 0x766   :  { %v1272_v14 = vpack.c.bf16 %v4196_v4, %v4194_v12 }
 0x76d   :  { %v1394_v44 = vpop.f32.mrf.mxu3 }
 0x76e   :  { %v1427_v13 = vmul.f32 0.35355338, %v1394_v44  ;;  %v754_v44 = vunpack.c.l.b16 %v744_v50 }
 0x770   :  { %v1443_v24 = vsel %vm301_vm2, %v1427_v13, -inf }
 0x771   :  { %1444 = vmax.xlane.f32.xlu2 %v1443_v24 }
 0x775   :  { %v1396_v38 = vpop.f32.mrf.mxu3 }
 0x776   :  { %v4201_v58 = vmul.f32 0.35355338, %v1396_v38 }
 0x778   :  { %v1446_v57 = vsel %vm301_vm2, %v4201_v58, -inf }
 0x779   :  { %v681_v63 = vpop.xlane.xlu2 %680  ;;  %1447 = vmax.xlane.f32.xlu0 %v1446_v57  ;;  %1438 = vmax.xlane.f32.xlu2 %v1437_v59 }
 0x77a   :  { %3442 = vrcp.f32 %v681_v63 }
 0x780   :  { %v3443_v7 = vpop.eup %3442 }
 0x781   :  { %v711_v48 = vmul.f32 %v3443_v7, %v681_v63  ;;  %1441 = vmax.xlane.f32.xlu0 %v1440_v40  ;;  %1450 = vmax.xlane.f32.xlu2 %v1449_v28 }
 0x783   :  { %v719_v43 = vsub.f32 2.0, %v711_v48 }
 0x785   :  { %v727_v49 = vmul.f32 %v3443_v7, %v719_v43 }
 0x786   :  { %v1481_v25 = vpop.xlane.xlu2 %1480 }
 0x787   :  { %v735_v52 = vmul.f32 %v4164_v60, %v727_v49 }
 0x789   :  { %v743_v42 = vpack.c.bf16 %v735_v52, %v735_v52  ;;  %1453 = vmax.xlane.f32.xlu0 %v1452_v0 }
 0x78b   :  { %v753_v18 = vunpack.c.l.b16 %v743_v42 }
 0x78d   :  { %v755_v24 = vpack.c.b16 %v754_v44, %v753_v18 }
 0x78e   :  { %v1484_v51 = vpop.xlane.xlu0 %1483 }
 0x78f   :  { %3086 = vmatmul.msk.bf16.vlgmr.msrb.gmra.mxu0 %vm301_vm2, %v755_v24 }
 0x79d   :  { %1556 = vrot.lane.b32.xlu0 %v3815_v20, %s3684_s26  ;;  %v856_v20 = vld [vmem:[#allocation2 + $0x4] sm:$0xf] }
 0x7e4   :  { %v1445_v38 = vpop.xlane.xlu2 %1444 }
 0x7e5   :  { %v1459_v10 = vsub.f32 %v1427_v13, %v1445_v38  ;;  %v870_v13 = vsel %vm144_vm0, %v856_v20, 0 }
 0x7e6   :  { %879 = vmatpush.bf16.msra.mxu0 %v870_v13 }
 0x7e7   :  { %v1471_v33 = vmul.f32 1.442695, %v1459_v10 }
 0x7e9   :  { %3444 = vpow2.f32 %v1471_v33 }
 0x7ea   :  { %3446 = vrcp.f32 %v1484_v51 }
 0x7ec   :  { %v1439_v60 = vpop.xlane.xlu2 %1438  ;;  %v4214_v57 = vpop.xlane.xlu0 %1447 }
 0x7ed   :  { %v1457_v59 = vsub.f32 %v1425_v56, %v1439_v60 }
 0x7ef   :  { %v4216_v61 = vpop.eup %3444  ;;  %v1467_v63 = vmul.f32 1.442695, %v1457_v59 }
 0x7f0   :  { %v1491_v8 = vsel %vm301_vm2, %v4216_v61, 0.0  ;;  %v3447_v54 = vpop.eup %3446 }
 0x7f1   :  { %3448 = vpow2.f32 %v1467_v63  ;;  %1492 = vadd.xlane.f32.xlu0 %v1491_v8  ;;  %v1512_v50 = vmul.f32 %v3447_v54, %v1484_v51 }
 0x7f2   :  { %3450 = vrcp.f32 %v1481_v25 }
 0x7f3   :  { %v1520_v42 = vsub.f32 2.0, %v1512_v50 }
 0x7f4   :  { %v1451_v39 = vpop.xlane.xlu2 %1450  ;;  %v1442_v7 = vpop.xlane.xlu0 %1441 }
 0x7f5   :  { %v1461_v40 = vsub.f32 %v1429_v29, %v1451_v39  ;;  %v1458_v28 = vsub.f32 %v1426_v35, %v1442_v7  ;;  %v1528_v10 = vmul.f32 %v3447_v54, %v1520_v42  ;;  %v1656_v42 = vld [vmem:[#allocation2 + $0xc] sm:$0xf] }
 0x7f7   :  { %v4221_v56 = vpop.eup %3448  ;;  %v1475_v48 = vmul.f32 1.442695, %v1461_v40  ;;  %v1469_v62 = vmul.f32 1.442695, %v1458_v28  ;;  %v1536_v33 = vmul.f32 %v4180_v47, %v1528_v10  ;;  %v1274_v28 = vld [vmem:[#allocation2 + $0x8] sm:$0xf] }
 0x7f8   :  { %v3451_v43 = vpop.eup %3450  ;;  %v1485_v49 = vsel %vm301_vm2, %v4221_v56, 0.0  ;;  %v1288_v54 = vsel %vm144_vm0, %v1274_v28, 0 }
 0x7f9   :  { %3452 = vpow2.f32 %v1475_v48  ;;  %1486 = vadd.xlane.f32.xlu1 %v1485_v49  ;;  %v1511_v52 = vmul.f32 %v3451_v43, %v1481_v25  ;;  %v1544_v63 = vpack.c.bf16 %v1536_v33, %v1536_v33  ;;  %1297 = vmatpush.bf16.msrb.mxu0 %v1288_v54  ;;  %v1460_v48 = vsub.f32 %v4201_v58, %v4214_v57 }
 0x7fa   :  { %3454 = vpow2.f32 %v1469_v62  ;;  %v853_v62 = vpack.c.bf16 %v3981_v21, %v3975_v23  ;;  %v1270_v23 = vpack.c.bf16 %v4192_v6, %v4186_v3 }
 0x7fb   :  { %v1519_v35 = vsub.f32 2.0, %v1511_v52  ;;  %v1554_v39 = vunpack.c.l.b16 %v1544_v63 }
 0x7fc   :  { %v1454_v0 = vpop.xlane.xlu0 %1453 }
 0x7fd   :  { %v1462_v44 = vsub.f32 %v1430_v46, %v1454_v0  ;;  %v1527_v25 = vmul.f32 %v3451_v43, %v1519_v35  ;;  %v1473_v43 = vmul.f32 1.442695, %v1460_v48  ;;  %v1670_v35 = vsel %vm144_vm0, %v1656_v42, 0 }
 0x7ff   :  { %v4225_v29 = vpop.eup %3452  ;;  %v1477_v18 = vmul.f32 1.442695, %v1462_v44  ;;  %v1535_v60 = vmul.f32 %v4172_v15, %v1527_v25  ;;  %v852_v15 = vpack.c.bf16 %v4089_v11, %v4083_v55  ;;  %v854_v55 = vpack.c.bf16 %v3973_v16, %v3971_v22 }
 0x800   :  { %v4227_v24 = vpop.eup %3454  ;;  %v1497_v38 = vsel %vm301_vm2, %v4225_v29, 0.0 }
 0x801   :  { %3456 = vpow2.f32 %v1477_v18  ;;  %1498 = vadd.xlane.f32.xlu1 %v1497_v38  ;;  %v1488_v51 = vsel %vm301_vm2, %v4227_v24, 0.0  ;;  %v1543_v8 = vpack.c.bf16 %v1535_v60, %v1535_v60 }
 0x802   :  { %1489 = vadd.xlane.f32.xlu2 %v1488_v51  ;;  %3458 = vpow2.f32 %v1473_v43 }
 0x803   :  { %v1553_v7 = vunpack.c.l.b16 %v1543_v8 }
 0x805   :  { %1631 = vrot.lane.b32.xlu0 %v3823_v36, %s3684_s26  ;;  %v1555_v40 = vpack.c.b16 %v1554_v39, %v1553_v7 }
 0x807   :  { %v4236_v46 = vpop.eup %3456 }
 0x808   :  { %v1500_v59 = vsel %vm301_vm2, %v4236_v46, 0.0 }
 0x809   :  { %1501 = vadd.xlane.f32.xlu1 %v1500_v59 }
 0x80c   :  { %v771_v20 = vpop.f32.mrf.mxu0 }
 0x80f   :  { %v1557_v13 = vpop.permute.xlu0 %1556 }
 0x810   :  { %1569 = vmatpush.bf16.msrb.mxu2 %v1557_v13 }
 0x813   :  { %3114 = vmatmul.msk.bf16.vlgmr.msrb.gmra.mxu2 %vm301_vm2, %v1555_v40 }
 0x814   :  { %v773_v47 = vpop.f32.mrf.mxu0 }
 0x815   :  { %v851_v36 = vpack.c.bf16 %v773_v47, %v771_v20 }
 0x817   :  { %3090 = vmatmul.msk.bf16.vlgmr.msra.gmra.mxu0 %vm131_vm1, %v851_v36 }
 0x81a   :  { %1581 = vrot.lane.b32.xlu2 %v3819_v27, %s3684_s26  ;;  %v4256_v27 = vpop.eup %3458 }
 0x822   :  { %1606 = vrot.lane.b32.xlu1 %v3842_v1, %s3684_s26  ;;  %v1494_v1 = vsel %vm301_vm2, %v4256_v27, 0.0 }
 0x827   :  { %3091 = vmatmul.msk.bf16.gmra.mxu0 %vm131_vm1, %v852_v15 }
 0x837   :  { %3092 = vmatmul.msk.bf16.gmra.mxu0 %vm131_vm1, %v853_v62 }
 0x843   :  { %1495 = vadd.xlane.f32.xlu2 %v1494_v1 }
 0x847   :  { %3093 = vmatmul.msk.bf16.gmra.mxu0 %vm131_vm1, %v854_v55 }
 0x857   :  { %3106 = vmatmul.msk.bf16.vlgmr.msrb.gmra.mxu0 %vm131_vm1, %v1269_v37 }
 0x864   :  { %v1493_v11 = vpop.xlane.xlu0 %1492 }
 0x867   :  { %3107 = vmatmul.msk.bf16.gmra.mxu0 %vm131_vm1, %v1270_v23 }
 0x86c   :  { %v1487_v21 = vpop.xlane.xlu1 %1486 }
 0x86d   :  { %3460 = vrcp.f32 %v1487_v21 }
 0x873   :  { %v3461_v58 = vpop.eup %3460 }
 0x874   :  { %v1513_v57 = vmul.f32 %v3461_v58, %v1487_v21  ;;  %v1499_v49 = vpop.xlane.xlu1 %1498 }
 0x875   :  { %3462 = vrcp.f32 %v1499_v49  ;;  %v1490_v22 = vpop.xlane.xlu2 %1489 }
 0x876   :  { %3464 = vrcp.f32 %v1490_v22  ;;  %v1521_v16 = vsub.f32 2.0, %v1513_v57 }
 0x877   :  { %3108 = vmatmul.msk.bf16.gmra.mxu0 %vm131_vm1, %v1271_v30  ;;  %v1632_v45 = vpop.permute.xlu0 %1631 }
 0x878   :  { %1644 = vmatpush.bf16.msra.mxu2 %v1632_v45  ;;  %v1529_v37 = vmul.f32 %v3461_v58, %v1521_v16 }
 0x87a   :  { %v1537_v18 = vmul.f32 %v4221_v56, %v1529_v37 }
 0x87b   :  { %v3463_v53 = vpop.eup %3462 }
 0x87c   :  { %v3465_v3 = vpop.eup %3464  ;;  %v1517_v6 = vmul.f32 %v3463_v53, %v1499_v49  ;;  %v1502_v50 = vpop.xlane.xlu1 %1501  ;;  %v1545_v10 = vpack.c.bf16 %v1537_v18, %v1537_v18 }
 0x87d   :  { %v1514_v52 = vmul.f32 %v3465_v3, %v1490_v22  ;;  %v1582_v0 = vpop.permute.xlu2 %1581  ;;  %3466 = vrcp.f32 %v1502_v50 }
 0x87e   :  { %v1525_v44 = vsub.f32 2.0, %v1517_v6  ;;  %1594 = vmatpush.bf16.msra.mxu3 %v1582_v0  ;;  %v1578_v63 = vunpack.c.l.b16 %v1545_v10  ;;  %3468 = vrcp.f32 %v1493_v11 }
 0x87f   :  { %v1522_v2 = vsub.f32 2.0, %v1514_v52 }
 0x880   :  { %v1533_v30 = vmul.f32 %v3463_v53, %v1525_v44 }
 0x881   :  { %v1530_v5 = vmul.f32 %v3465_v3, %v1522_v2 }
 0x882   :  { %1679 = vmatpush.bf16.msrb.mxu3 %v1670_v35  ;;  %v1541_v60 = vmul.f32 %v4225_v29, %v1533_v30 }
 0x883   :  { %v3467_v38 = vpop.eup %3466  ;;  %v1538_v51 = vmul.f32 %v4227_v24, %v1530_v5 }
 0x884   :  { %v1518_v25 = vmul.f32 %v3467_v38, %v1502_v50  ;;  %v1549_v39 = vpack.c.bf16 %v1541_v60, %v1541_v60  ;;  %v3469_v4 = vpop.eup %3468 }
 0x885   :  { %v1546_v33 = vpack.c.bf16 %v1538_v51, %v1538_v51 }
 0x886   :  { %v1526_v59 = vsub.f32 2.0, %v1518_v25  ;;  %v1628_v13 = vunpack.c.l.b16 %v1549_v39 }
 0x887   :  { %v1579_v8 = vunpack.c.l.b16 %v1546_v33  ;;  %3109 = vmatmul.msk.bf16.gmra.mxu0 %vm131_vm1, %v1272_v14  ;;  %v1515_v14 = vmul.f32 %v3469_v4, %v1493_v11 }
 0x888   :  { %v1534_v56 = vmul.f32 %v3467_v38, %v1526_v59 }
 0x889   :  { %v1580_v20 = vpack.c.b16 %v1579_v8, %v1578_v63 }
 0x88a   :  { %v1542_v7 = vmul.f32 %v4236_v46, %v1534_v56  ;;  %v1523_v46 = vsub.f32 2.0, %v1515_v14 }
 0x88b   :  { %3115 = vmatmul.msk.bf16.vlgmr.msra.gmra.mxu3 %vm301_vm2, %v1580_v20 }
 0x88c   :  { %v1550_v24 = vpack.c.bf16 %v1542_v7, %v1542_v7  ;;  %v1531_v54 = vmul.f32 %v3469_v4, %v1523_v46 }
 0x88e   :  { %v1629_v40 = vunpack.c.l.b16 %v1550_v24  ;;  %v1539_v43 = vmul.f32 %v4216_v61, %v1531_v54 }
 0x890   :  { %v1630_v47 = vpack.c.b16 %v1629_v40, %v1628_v13  ;;  %v1547_v23 = vpack.c.bf16 %v1539_v43, %v1539_v43 }
 0x892   :  { %3117 = vmatmul.msk.bf16.vlgmr.msra.gmra.mxu2 %vm301_vm2, %v1630_v47  ;;  %v1603_v57 = vunpack.c.l.b16 %v1547_v23 }
 0x894   :  { %v1607_v29 = vpop.permute.xlu1 %1606  ;;  %v881_v11 = vpop.f32.mrf.mxu0 }
 0x895   :  { %1619 = vmatpush.bf16.msrb.mxu1 %v1607_v29  ;;  %v926_v44 = vadd.f32 %v4097_v19, %v881_v11  ;;  %v4311_v19 = vld [vmem:[%s4945_s3] sm:$0xff] }
 0x896   :  { %v1571_v36 = vpop.f32.mrf.mxu2 }
 0x89c   :  { %v883_v16 = vpop.f32.mrf.mxu0 }
 0x89d   :  { %v928_v2 = vadd.f32 %v4102_v26, %v883_v16  ;;  %v4318_v26 = vld [vmem:[%s4945_s3 + $0x8] sm:$0xff]  ;;  %s3685_s3 = smov 32  }
 0x89e   :  { %v1573_v15 = vpop.f32.mrf.mxu2 }
 0x89f   :  { %v1651_v12 = vpack.c.bf16 %v1573_v15, %v1571_v36 }
 0x8a1   :  { %3118 = vmatmul.msk.bf16.vlgmr.msrb.gmra.mxu3 %vm131_vm1, %v1651_v12 }
 0x8a4   :  { %v886_v45 = vpop.f32.mrf.mxu0 }
 0x8a5   :  { %v931_v40 = vadd.f32 %v4108_v41, %v886_v45 }
 0x8ac   :  { %v888_v53 = vpop.f32.mrf.mxu0 }
 0x8ad   :  { %v933_v36 = vadd.f32 %v4112_v17, %v888_v53 }
 0x8b4   :  { %v4289_v37 = vpop.f32.mrf.mxu0 }
 0x8b6   :  { %v1496_v28 = vpop.xlane.xlu2 %1495 }
 0x8b7   :  { %3470 = vrcp.f32 %v1496_v28 }
 0x8bc   :  { %v4291_v3 = vpop.f32.mrf.mxu0 }
 0x8bd   :  { %v3471_v48 = vpop.eup %3470  ;;  %v938_v11 = vadd.f32 %v4119_v31, %v4291_v3 }
 0x8be   :  { %v1516_v62 = vmul.f32 %v3471_v48, %v1496_v28 }
 0x8c0   :  { %v1524_v1 = vsub.f32 2.0, %v1516_v62 }
 0x8c2   :  { %v1532_v55 = vmul.f32 %v3471_v48, %v1524_v1 }
 0x8c4   :  { %v1540_v21 = vmul.f32 %v4256_v27, %v1532_v55  ;;  %v4293_v61 = vpop.f32.mrf.mxu0 }
 0x8c5   :  { %v941_v31 = vadd.f32 %v4124_v9, %v4293_v61 }
 0x8c6   :  { %v1548_v58 = vpack.c.bf16 %v1540_v21, %v1540_v21 }
 0x8c8   :  { %v1604_v49 = vunpack.c.l.b16 %v1548_v58 }
 0x8ca   :  { %v1605_v22 = vpack.c.b16 %v1604_v49, %v1603_v57  ;;  %v936_v49 = vadd.f32 %v4114_v34, %v4289_v37 }
 0x8cc   :  { %3116 = vmatmul.msk.bf16.vlgmr.msrb.gmra.mxu1 %vm301_vm2, %v1605_v22  ;;  %v4295_v50 = vpop.f32.mrf.mxu0 }
 0x8d4   :  { %v1299_v0 = vpop.f32.mrf.mxu0 }
 0x8d5   :  { %v1319_v35 = vadd.f32 %v1299_v0, %v926_v44 }
 0x8dc   :  { %v1301_v18 = vpop.f32.mrf.mxu0 }
 0x8dd   :  { %v1320_v30 = vadd.f32 %v1301_v18, %v928_v2  ;;  %v943_v18 = vadd.f32 %v4133_v32, %v4295_v50  ;;  %v3180_v32 = vld [vmem:[%s4947_s5 + $0x50] sm:$0xf]  ;;  %v3248_v50 = vld [vmem:[%s4947_s5 + $0x54] sm:$0xf0] }
 0x8e4   :  { %v1304_v24 = vpop.f32.mrf.mxu0 }
 0x8e5   :  { %v1321_v47 = vadd.f32 %v1304_v24, %v931_v40  ;;  %v3174_v24 = vld [vmem:[%s4947_s5 + $0x48] sm:$0xf0] }
 0x8ec   :  { %v1306_v29 = vpop.f32.mrf.mxu0 }
 0x8ed   :  { %v1322_v12 = vadd.f32 %v1306_v29, %v933_v36  ;;  %v3166_v29 = vld [vmem:[%s4947_s5 + $0x38] sm:$0xf0] }
 0x8f4   :  { %v1309_v55 = vpop.f32.mrf.mxu0 }
 0x8f5   :  { %v1323_v22 = vadd.f32 %v1309_v55, %v936_v49  ;;  %v3150_v55 = vld [vmem:[%s4947_s5 + $0x18] sm:$0xf0] }
 0x8fc   :  { %v1311_v58 = vpop.f32.mrf.mxu0 }
 0x8fd   :  { %v1324_v45 = vadd.f32 %v1311_v58, %v938_v11  ;;  %v3238_v58 = vld [vmem:[%s4947_s5 + $0x4] sm:$0xf0] }
 0x90e   :  { %v1596_v6 = vpop.f32.mrf.mxu3 }
 0x915   :  { %v1646_v20 = vpop.f32.mrf.mxu2 }
 0x916   :  { %v1598_v27 = vpop.f32.mrf.mxu3 }
 0x917   :  { %v1652_v52 = vpack.c.bf16 %v1598_v27, %v1596_v6 }
 0x919   :  { %3119 = vmatmul.msk.bf16.gmra.mxu3 %vm131_vm1, %v1652_v52  ;;  %v1314_v52 = vpop.f32.mrf.mxu0 }
 0x91a   :  { %v1325_v3 = vadd.f32 %v1314_v52, %v941_v31 }
 0x91d   :  { %v1648_v39 = vpop.f32.mrf.mxu2 }
 0x91e   :  { %v1654_v7 = vpack.c.bf16 %v1648_v39, %v1646_v20  ;;  %v3246_v20 = vld [vmem:[%s4947_s5 + $0x44] sm:$0xf0]  ;;  %v3245_v39 = vld [vmem:[%s4947_s5 + $0x44] sm:$0xf] }
 0x91f   :  { %v3177_v40 = vor.u32 %v3245_v39, %v3174_v24  ;;  %v2067_v24 = vld [vmem:[%s4946_s4 + $0x8] sm:$0xff] }
 0x924   :  { %v1681_v42 = vpop.f32.mrf.mxu3 }
 0x925   :  { %v4300_v5 = vadd.f32 %v1681_v42, %v1319_v35  ;;  %v1316_v35 = vpop.f32.mrf.mxu0 }
 0x927   :  { %v1709_v10 = vpack.c.bf16 %v4300_v5, %v4300_v5 }
 0x929   :  { %v1733_v33 = vunpack.c.l.b16 %v1709_v10 }
 0x92c   :  { %v1683_v38 = vpop.f32.mrf.mxu3 }
 0x92d   :  { %v4304_v51 = vadd.f32 %v1683_v38, %v1320_v30  ;;  %v1326_v30 = vadd.f32 %v1316_v35, %v943_v18 }
 0x92f   :  { %v1710_v25 = vpack.c.bf16 %v4304_v51, %v4304_v51 }
 0x931   :  { %v1734_v60 = vunpack.c.l.b16 %v1710_v25 }
 0x933   :  { %v1735_v59 = vpack.c.b16 %v1734_v60, %v1733_v33 }
 0x935   :  { %1750 = vmatpush.bf16.msra.mxu1 %v1735_v59  ;;  %v3247_v59 = vld [vmem:[%s4947_s5 + $0x54] sm:$0xf] }
 0x938   :  { %3130 = vmatmul.msk.bf16.vlgmr.msra.gmra.mxu1 %vm301_vm2, %v4311_v19 }
 0x948   :  { %3131 = vmatmul.msk.bf16.gmra.mxu1 %vm301_vm2, %v4318_v26 }
 0x949   :  { %v1621_v63 = vpop.f32.mrf.mxu1 }
 0x951   :  { %v1623_v8 = vpop.f32.mrf.mxu1 }
 0x952   :  { %v1653_v56 = vpack.c.bf16 %v1623_v8, %v1621_v63  ;;  %v3181_v63 = vor.u32 %v3248_v50, %v3180_v32  ;;  %v3182_v8 = vld [vmem:[%s4947_s5 + $0x58] sm:$0xf0]  ;;  %v3687_v50 = vmov 2  }
 0x953   :  { %3327 = vset.pattern.permute.xlu0 %v3687_v50 }
 0x954   :  { %3120 = vmatmul.msk.bf16.gmra.mxu3 %vm131_vm1, %v1653_v56  ;;  %v3185_v56 = vor.u32 %v3247_v59, %v3182_v8 }
 0x964   :  { %3121 = vmatmul.msk.bf16.gmra.mxu3 %vm131_vm1, %v1654_v7 }
 0x99c   :  { %v1686_v13 = vpop.f32.mrf.mxu3 }
 0x99d   :  { %v4326_v15 = vadd.f32 %v1686_v13, %v1321_v47  ;;  %v3244_v13 = vld [vmem:[%s4947_s5 + $0x34] sm:$0xf0]  ;;  %v3243_v47 = vld [vmem:[%s4947_s5 + $0x34] sm:$0xf] }
 0x99f   :  { %v1711_v14 = vpack.c.bf16 %v4326_v15, %v4326_v15 }
 0x9a1   :  { %v1764_v54 = vunpack.c.l.b16 %v1711_v14  ;;  %v3242_v14 = vld [vmem:[%s4947_s5 + $0x24] sm:$0xf0] }
 0x9a4   :  { %v1688_v4 = vpop.f32.mrf.mxu3 }
 0x9a5   :  { %v4330_v28 = vadd.f32 %v1688_v4, %v1322_v12  ;;  %v3169_v12 = vor.u32 %v3243_v47, %v3166_v29  ;;  %v3156_v4 = vld [vmem:[%s4947_s5 + $0x20] sm:$0xf]  ;;  %v3689_v47 = vmov 5   ;;  %v3690_v29 = vmov 6  }
 0x9a7   :  { %v1712_v46 = vpack.c.bf16 %v4330_v28, %v4330_v28 }
 0x9a9   :  { %v1765_v48 = vunpack.c.l.b16 %v1712_v46  ;;  %v3241_v46 = vld [vmem:[%s4947_s5 + $0x24] sm:$0xf] }
 0x9ab   :  { %v1766_v62 = vpack.c.b16 %v1765_v48, %v1764_v54  ;;  %v3157_v54 = vor.u32 %v3242_v14, %v3156_v4  ;;  %v3158_v48 = vld [vmem:[%s4947_s5 + $0x28] sm:$0xf0]  ;;  %v3693_v4 = vmov 4  }
 0x9ad   :  { %1775 = vmatpush.bf16.msrb.mxu2 %v1766_v62  ;;  %v3161_v62 = vor.u32 %v3241_v46, %v3158_v48 }
 0x9b0   :  { %3132 = vmatmul.msk.bf16.vlgmr.msrb.gmra.mxu2 %vm301_vm2, %v4311_v19 }
 0x9b1   :  { %2010 = vmatpush.bf16.msra.mxu2 %v3181_v63 }
 0x9b5   :  { %v1752_v41 = vpop.f32.mrf.mxu1 }
 0x9bd   :  { %v1754_v17 = vpop.f32.mrf.mxu1 }
 0x9be   :  { %v3285_v43 = vpack.i.bf16 %v1754_v17, %v1752_v41  ;;  %v3148_v41 = vld [vmem:[%s4947_s5 + $0x10] sm:$0xf]  ;;  %v3240_v17 = vld [vmem:[%s4947_s5 + $0x14] sm:$0xf0] }
 0x9c0   :  { %3133 = vmatmul.msk.bf16.gmra.mxu2 %vm301_vm2, %v4318_v26  ;;  %3286 = vrot.lane.b32.xlu2 %v3285_v43, %s3685_s3  ;;  %v3239_v43 = vld [vmem:[%s4947_s5 + $0x14] sm:$0xf] }
 0x9c5   :  { %v1757_v1 = vpop.f32.mrf.mxu1 }
 0x9cd   :  { %v1759_v23 = vpop.f32.mrf.mxu1 }
 0x9ce   :  { %v3290_v21 = vpack.i.bf16 %v1759_v23, %v1757_v1  ;;  %v3149_v1 = vor.u32 %v3240_v17, %v3148_v41  ;;  %v3153_v23 = vor.u32 %v3239_v43, %v3150_v55 }
 0x9d0   :  { %3291 = vrot.lane.b32.xlu1 %v3290_v21, %s3670_s12  ;;  %v3140_v21 = vld [vmem:[%s4947_s5] sm:$0xf] }
 0x9d1   :  { %v3141_v49 = vor.u32 %v3238_v58, %v3140_v21 }
 0x9d7   :  { %v1691_v57 = vpop.f32.mrf.mxu3 }
 0x9d8   :  { %v4344_v16 = vadd.f32 %v1691_v57, %v1323_v22  ;;  %v3237_v57 = vld [vmem:[%s4947_s5 + $0x4] sm:$0xf]  ;;  %v3142_v22 = vld [vmem:[%s4947_s5 + $0x8] sm:$0xf0] }
 0x9d9   :  { %v3145_v11 = vor.u32 %v3237_v57, %v3142_v22 }
 0x9da   :  { %v1713_v6 = vpack.c.bf16 %v4344_v16, %v4344_v16 }
 0x9dc   :  { %v1789_v42 = vunpack.c.l.b16 %v1713_v6 }
 0x9df   :  { %v1693_v53 = vpop.f32.mrf.mxu3 }
 0x9e0   :  { %v4348_v27 = vadd.f32 %v1693_v53, %v1324_v45 }
 0x9e2   :  { %v1714_v0 = vpack.c.bf16 %v4348_v27, %v4348_v27 }
 0x9e4   :  { %v1790_v44 = vunpack.c.l.b16 %v1714_v0 }
 0x9e6   :  { %v1791_v34 = vpack.c.b16 %v1790_v44, %v1789_v42 }
 0x9e7   :  { %v1696_v37 = vpop.f32.mrf.mxu3 }
 0x9e8   :  { %1800 = vmatpush.bf16.msra.mxu0 %v1791_v34  ;;  %v4358_v2 = vadd.f32 %v1696_v37, %v1325_v3 }
 0x9ea   :  { %v1715_v10 = vpack.c.bf16 %v4358_v2, %v4358_v2 }
 0x9eb   :  { %3134 = vmatmul.msk.bf16.vlgmr.msra.gmra.mxu0 %vm301_vm2, %v4311_v19 }
 0x9ec   :  { %v1814_v61 = vunpack.c.l.b16 %v1715_v10  ;;  %2039 = vmatpush.bf16.msrb.mxu0 %v3185_v56 }
 0x9ef   :  { %v1698_v38 = vpop.f32.mrf.mxu3 }
 0x9f0   :  { %v4362_v25 = vadd.f32 %v1698_v38, %v1326_v30  ;;  %2040 = vmatpush.bf16.msrb.mxu0 %v3177_v40  ;;  %v3688_v40 = vmov 3  }
 0x9f2   :  { %v1716_v9 = vpack.c.bf16 %v4362_v25, %v4362_v25 }
 0x9f4   :  { %v1815_v33 = vunpack.c.l.b16 %v1716_v9  ;;  %2041 = vmatpush.bf16.msrb.mxu0 %v3169_v12  ;;  %v3692_v12 = vmov 7  }
 0x9f6   :  { %v1816_v60 = vpack.c.b16 %v1815_v33, %v1814_v61  ;;  %v3686_v33 = vmov 1  }
 0x9f7   :  { %3326 = vset.pattern.permute.xlu2 %v3686_v33  ;;  %3325 = vset.pattern.permute.xlu1 %v3686_v33 }
 0x9f8   :  { %1825 = vmatpush.bf16.msrb.mxu1 %v1816_v60  ;;  %2042 = vmatpush.bf16.msrb.mxu0 %v3161_v62 }
 0x9fb   :  { %3135 = vmatmul.msk.bf16.gmra.mxu0 %vm301_vm2, %v4318_v26  ;;  %3136 = vmatmul.msk.bf16.vlgmr.msrb.gmra.mxu1 %vm301_vm2, %v4311_v19  ;;  %v3172_v19 = vld [vmem:[%s4947_s5 + $0x40] sm:$0xf] }
 0x9fc   :  { %v3173_v7 = vor.u32 %v3246_v20, %v3172_v19  ;;  %2043 = vmatpush.bf16.msrb.mxu0 %v3153_v23 }
 0x9fe   :  { %2011 = vmatpush.bf16.msra.mxu2 %v3173_v7  ;;  %v2066_v7 = vld [vmem:[%s4946_s4] sm:$0xff] }
 0xa00   :  { %2044 = vmatpush.bf16.msrb.mxu0 %v3145_v11 }
 0xa0b   :  { %3137 = vmatmul.msk.bf16.gmra.mxu1 %vm301_vm2, %v4318_v26  ;;  %v3164_v26 = vld [vmem:[%s4947_s5 + $0x30] sm:$0xf] }
 0xa0c   :  { %v3165_v36 = vor.u32 %v3244_v13, %v3164_v26 }
 0xa0e   :  { %2012 = vmatpush.bf16.msra.mxu2 %v3165_v36  ;;  %v3691_v36 = vmov 0  }
 0xa12   :  { %2013 = vmatpush.bf16.msra.mxu2 %v3157_v54 }
 0xa16   :  { %2014 = vmatpush.bf16.msra.mxu2 %v3149_v1 }
 0xa1a   :  { %2015 = vmatpush.bf16.msra.mxu2 %v3141_v49  ;;  %v3287_v52 = vpop.permute.xlu2 %3286 }
 0xa1b   :  { %v3289_v0 = vunpack.i.h.bf16 %v3287_v52  ;;  %v3288_v42 = vunpack.i.l.bf16 %v3287_v52 }
 0xa1d   :  { %v1903_v3 = vsel %vm1901_vm3, %v4304_v51, %v3289_v0  ;;  %v1902_v35 = vsel %vm1901_vm3, %v4300_v5, %v3288_v42 }
 0xa33   :  { %v1777_v45 = vpop.f32.mrf.mxu2 }
 0xa3b   :  { %v1779_v53 = vpop.f32.mrf.mxu2 }
 0xa3c   :  { %v3295_v6 = vpack.i.bf16 %v1779_v53, %v1777_v45 }
 0xa3e   :  { %3296 = vrot.lane.b32.xlu0 %v3295_v6, %s3685_s3 }
 0xa42   :  { %v3292_v44 = vpop.permute.xlu1 %3291 }
 0xa43   :  { %v3294_v34 = vunpack.i.h.bf16 %v3292_v44  ;;  %v3293_v37 = vunpack.i.l.bf16 %v3292_v44  ;;  %v1782_v31 = vpop.f32.mrf.mxu2 }
 0xa45   :  { %v1912_v18 = vsel %vm1910_vm4, %v1903_v3, %v3294_v34  ;;  %v1911_v30 = vsel %vm1910_vm4, %v1902_v35, %v3293_v37 }
 0xa46   :  { %v1919_v38 = vpack.c.bf16 %v1912_v18, %v1911_v30 }
 0xa48   :  { %3186 = vmatmul.msk.bf16.vlgmr.msra.gmra.mxu2 %vm1995_vm5, %v1919_v38  ;;  %3190 = vmatmul.msk.bf16.vlgmr.msrb.gmra.mxu0 %vm1995_vm5, %v1919_v38 }
 0xa4b   :  { %v1784_v10 = vpop.f32.mrf.mxu2 }
 0xa4c   :  { %v3300_v9 = vpack.i.bf16 %v1784_v10, %v1782_v31 }
 0xa4e   :  { %3301 = vrot.lane.b32.xlu1 %v3300_v9, %s3670_s12 }
 0xa68   :  { %v1802_v61 = vpop.f32.mrf.mxu0 }
 0xa70   :  { %v1804_v60 = vpop.f32.mrf.mxu0 }
 0xa71   :  { %v3305_v32 = vpack.i.bf16 %v1804_v60, %v1802_v61 }
 0xa73   :  { %3306 = vrot.lane.b32.xlu0 %v3305_v32, %s3685_s3 }
 0xa78   :  { %v1807_v59 = vpop.f32.mrf.mxu0  ;;  %v1827_v63 = vpop.f32.mrf.mxu1 }
 0xa80   :  { %v1809_v8 = vpop.f32.mrf.mxu0  ;;  %v1829_v56 = vpop.f32.mrf.mxu1 }
 0xa81   :  { %v3310_v19 = vpack.i.bf16 %v1809_v8, %v1807_v59  ;;  %v3315_v20 = vpack.i.bf16 %v1829_v56, %v1827_v63 }
 0xa83   :  { %3311 = vrot.lane.b32.xlu1 %v3310_v19, %s3670_s12  ;;  %3316 = vrot.lane.b32.xlu2 %v3315_v20, %s3685_s3 }
 0xa88   :  { %v1832_v39 = vpop.f32.mrf.mxu1 }
 0xa8b   :  { %2087 = vperm.xlu1 %3325, %v2066_v7   ;;  %2091 = vperm.xlu2 %3326, %v2067_v24  }
 0xa90   :  { %v1834_v26 = vpop.f32.mrf.mxu1 }
 0xa91   :  { %v3320_v13 = vpack.i.bf16 %v1834_v26, %v1832_v39 }
 0xa93   :  { %3328 = vset.pattern.permute.xlu1 %v3687_v50  ;;  %3329 = vset.pattern.permute.xlu2 %v3688_v40 }
 0xa94   :  { %3321 = vrot.lane.b32.xlu0 %v3320_v13, %s3670_s12  ;;  %2147 = vperm.xlu1 %3328, %v2067_v24  }
 0xa95   :  { %2199 = vperm.xlu2 %3329, %v2066_v7  }
 0xa9c   :  { %2143 = vperm.xlu0 %3327, %v2066_v7   ;;  %3330 = vset.pattern.permute.xlu1 %v3688_v40 }
 0xa9d   :  { %3331 = vset.pattern.permute.xlu2 %v3689_v47  ;;  %2203 = vperm.xlu1 %3330, %v2067_v24  }
 0xa9e   :  { %2279 = vperm.xlu2 %3331, %v2066_v7  }
 0xaa4   :  { %3332 = vset.pattern.permute.xlu0 %v3689_v47 }
 0xaa5   :  { %2283 = vperm.xlu0 %3332, %v2067_v24   ;;  %3333 = vset.pattern.permute.xlu1 %v3690_v29 }
 0xaa6   :  { %3334 = vset.pattern.permute.xlu2 %v3690_v29  ;;  %2335 = vperm.xlu1 %3333, %v2066_v7  }
 0xaa7   :  { %2339 = vperm.xlu2 %3334, %v2067_v24  }
 0xaad   :  { %3337 = vset.pattern.permute.xlu0 %v3691_v36 }
 0xaae   :  { %2070 = vperm.xlu0 %3337, %v2066_v7   ;;  %3335 = vset.pattern.permute.xlu1 %v3692_v12 }
 0xaaf   :  { %3336 = vset.pattern.permute.xlu2 %v3692_v12  ;;  %2391 = vperm.xlu1 %3335, %v2066_v7  }
 0xab0   :  { %2395 = vperm.xlu2 %3336, %v2067_v24   ;;  %v3297_v14 = vpop.permute.xlu0 %3296 }
 0xab1   :  { %v3299_v46 = vunpack.i.h.bf16 %v3297_v14  ;;  %v3298_v54 = vunpack.i.l.bf16 %v3297_v14 }
 0xab3   :  { %v1905_v17 = vsel %vm1901_vm3, %v4330_v28, %v3299_v46  ;;  %v1904_v43 = vsel %vm1901_vm3, %v4326_v15, %v3298_v54 }
 0xab6   :  { %3339 = vset.pattern.permute.xlu0 %v3693_v4 }
 0xab7   :  { %2255 = vperm.xlu0 %3339, %v2066_v7   ;;  %3338 = vset.pattern.permute.xlu1 %v3691_v36 }
 0xab8   :  { %2075 = vperm.xlu1 %3338, %v2067_v24  }
 0xabf   :  { %3341 = vset.pattern.permute.xlu0 %v3692_v12 }
 0xac0   :  { %3340 = vset.pattern.permute.xlu1 %v3693_v4  ;;  %v3302_v48 = vpop.permute.xlu1 %3301 }
 0xac1   :  { %v3304_v62 = vunpack.i.h.bf16 %v3302_v48  ;;  %v3303_v41 = vunpack.i.l.bf16 %v3302_v48  ;;  %2259 = vperm.xlu1 %3340, %v2067_v24  }
 0xac3   :  { %v1914_v1 = vsel %vm1910_vm4, %v1905_v17, %v3304_v62  ;;  %v1913_v55 = vsel %vm1910_vm4, %v1904_v43, %v3303_v41 }
 0xac4   :  { %v1920_v23 = vpack.c.bf16 %v1914_v1, %v1913_v55 }
 0xac5   :  { %v4476_v52 = vpop.f32.mrf.mxu0 }
 0xac6   :  { %3187 = vmatmul.msk.bf16.gmra.mxu2 %vm1995_vm5, %v1920_v23  ;;  %3191 = vmatmul.msk.bf16.gmra.mxu0 %vm1995_vm5, %v1920_v23 }
 0xacb   :  { %v4493_v18 = vpop.f32.mrf.mxu2 }
 0xacd   :  { %v4495_v30 = vpop.f32.mrf.mxu0 }
 0xad3   :  { %v4508_v8 = vpop.f32.mrf.mxu2 }
 0xadd   :  { %v3317_v21 = vpop.permute.xlu2 %3316 }
 0xade   :  { %v3319_v9 = vunpack.i.h.bf16 %v3317_v21  ;;  %v3318_v61 = vunpack.i.l.bf16 %v3317_v21 }
 0xae0   :  { %v1909_v59 = vsel %vm1901_vm3, %v4362_v25, %v3319_v9  ;;  %v1908_v63 = vsel %vm1901_vm3, %v4358_v2, %v3318_v61 }
 0xae5   :  { %v4472_v58 = vpop.permute.xlu2 %2091  ;;  %v3307_v49 = vpop.permute.xlu0 %3306 }
 0xae6   :  { %v3309_v22 = vunpack.i.h.bf16 %v3307_v49  ;;  %v3308_v11 = vunpack.i.l.bf16 %v3307_v49  ;;  %v2095_v62 = vmul.f32 %v4472_v58, %v4508_v8 }
 0xae8   :  { %v1907_v0 = vsel %vm1901_vm3, %v4348_v27, %v3309_v22  ;;  %v1906_v42 = vsel %vm1901_vm3, %v4344_v16, %v3308_v11 }
 0xaef   :  { %v4474_v57 = vpop.permute.xlu2 %2199 }
 0xaf0   :  { %v2206_v12 = vmul.f32 %v4474_v57, %v4493_v18 }
 0xaf5   :  { %v3312_v45 = vpop.permute.xlu1 %3311 }
 0xaf6   :  { %v3314_v53 = vunpack.i.h.bf16 %v3312_v45  ;;  %v3313_v6 = vunpack.i.l.bf16 %v3312_v45 }
 0xaf8   :  { %v1916_v44 = vsel %vm1910_vm4, %v1907_v0, %v3314_v53  ;;  %v1915_v34 = vsel %vm1910_vm4, %v1906_v42, %v3313_v6  ;;  %v4484_v37 = vpop.permute.xlu2 %2279 }
 0xaf9   :  { %v1921_v31 = vpack.c.bf16 %v1916_v44, %v1915_v34  ;;  %v2286_v3 = vmul.f32 %v4484_v37, %v4476_v52 }
 0xafb   :  { %2302 = vrot.lane.b32.xlu2 %v2286_v3, %s3675_s2  ;;  %3188 = vmatmul.msk.bf16.gmra.mxu2 %vm1995_vm5, %v1921_v31 }
 0xafc   :  { %3192 = vmatmul.msk.bf16.gmra.mxu0 %vm1995_vm5, %v1921_v31 }
 0xafd   :  { %v4491_v35 = vpop.permute.xlu1 %2087 }
 0xafe   :  { %v2094_v40 = vmul.f32 %v4491_v35, %v4493_v18 }
 0xb01   :  { %v4497_v38 = vpop.permute.xlu2 %2339 }
 0xb02   :  { %v2343_v10 = vmul.f32 %v4497_v38, %v4495_v30 }
 0xb04   :  { %2360 = vrot.lane.b32.xlu0 %v2343_v10, %s3670_s12 }
 0xb06   :  { %v3322_v33 = vpop.permute.xlu0 %3321  ;;  %v4502_v60 = vpop.permute.xlu1 %2147 }
 0xb07   :  { %v3324_v32 = vunpack.i.h.bf16 %v3322_v33  ;;  %v3323_v50 = vunpack.i.l.bf16 %v3322_v33  ;;  %v2151_v39 = vmul.f32 %v4502_v60, %v4508_v8 }
 0xb09   :  { %v1918_v56 = vsel %vm1910_vm4, %v1909_v59, %v3324_v32  ;;  %v1917_v19 = vsel %vm1910_vm4, %v1908_v63, %v3323_v50 }
 0xb0a   :  { %v1922_v20 = vpack.c.bf16 %v1918_v56, %v1917_v19  ;;  %v4540_v4 = vpop.permute.xlu2 %2395 }
 0xb0b   :  { %v2399_v46 = vmul.f32 %v4540_v4, %v4495_v30 }
 0xb0c   :  { %2168 = vrot.lane.b32.xlu0 %v2151_v39, %s3670_s12  ;;  %3189 = vmatmul.msk.bf16.gmra.mxu2 %vm1995_vm5, %v1922_v20 }
 0xb0d   :  { %3193 = vmatmul.msk.bf16.gmra.mxu0 %vm1995_vm5, %v1922_v20 }
 0xb0e   :  { %v4532_v29 = vpop.permute.xlu0 %2143 }
 0xb0f   :  { %v4517_v7 = vpop.permute.xlu1 %2203  ;;  %v2150_v36 = vmul.f32 %v4532_v29, %v4493_v18 }
 0xb10   :  { %v2207_v48 = vmul.f32 %v4517_v7, %v4508_v8 }
 0xb17   :  { %v4542_v14 = vpop.permute.xlu0 %2283 }
 0xb18   :  { %v4519_v24 = vpop.permute.xlu1 %2335  ;;  %v2287_v54 = vmul.f32 %v4542_v14, %v4495_v30 }
 0xb19   :  { %v2342_v26 = vmul.f32 %v4519_v24, %v4476_v52 }
 0xb1b   :  { %2358 = vrot.lane.b32.xlu2 %v2342_v26, %s3670_s12 }
 0xb21   :  { %v4524_v13 = vpop.permute.xlu1 %2391 }
 0xb22   :  { %v2398_v47 = vmul.f32 %v4524_v13, %v4476_v52 }
 0xb23   :  { %2110 = vrot.lane.b32.xlu2 %v2094_v40, %s3675_s2 }
 0xb24   :  { %2414 = vrot.lane.b32.xlu1 %v2398_v47, %s3685_s3 }
 0xb2a   :  { %v4621_v59 = vpop.permute.xlu1 %2075 }
 0xb2b   :  { %2166 = vrot.lane.b32.xlu2 %v2150_v36, %s3670_s12 }
 0xb2c   :  { %2222 = vrot.lane.b32.xlu1 %v2206_v12, %s3685_s3 }
 0xb33   :  { %2416 = vrot.lane.b32.xlu2 %v2399_v46, %s3685_s3  ;;  %v4641_v40 = vpop.permute.xlu1 %2259 }
 0xb34   :  { %2304 = vrot.lane.b32.xlu1 %v2287_v54, %s3675_s2  ;;  %v4649_v54 = vpop.permute.xlu0 %2070 }
 0xb3b   :  { %2224 = vrot.lane.b32.xlu2 %v2207_v48, %s3685_s3 }
 0xb3c   :  { %2112 = vrot.lane.b32.xlu1 %v2095_v62, %s3675_s2 }
 0xb43   :  { %v4556_v41 = vpop.f32.mrf.mxu0 }
 0xb44   :  { %v2288_v17 = vmul.f32 %v4484_v37, %v4556_v41  ;;  %v2344_v43 = vmul.f32 %v4519_v24, %v4556_v41  ;;  %v2400_v1 = vmul.f32 %v4524_v13, %v4556_v41 }
 0xb46   :  { %2306 = vrot.lane.b32.xlu0 %v2288_v17, %s3675_s2  ;;  %2362 = vrot.lane.b32.xlu2 %v2344_v43, %s3670_s12 }
 0xb47   :  { %2418 = vrot.lane.b32.xlu1 %v2400_v1, %s3685_s3 }
 0xb49   :  { %v4567_v55 = vpop.f32.mrf.mxu2 }
 0xb4a   :  { %v2096_v23 = vmul.f32 %v4491_v35, %v4567_v55  ;;  %v2152_v21 = vmul.f32 %v4532_v29, %v4567_v55  ;;  %v2208_v49 = vmul.f32 %v4474_v57, %v4567_v55 }
 0xb4b   :  { %v4578_v22 = vpop.f32.mrf.mxu0 }
 0xb4c   :  { %v2401_v11 = vmul.f32 %v4540_v4, %v4578_v22  ;;  %v2345_v45 = vmul.f32 %v4497_v38, %v4578_v22  ;;  %v2289_v53 = vmul.f32 %v4542_v14, %v4578_v22 }
 0xb4e   :  { %2114 = vrot.lane.b32.xlu0 %v2096_v23, %s3675_s2  ;;  %2170 = vrot.lane.b32.xlu2 %v2152_v21, %s3670_s12 }
 0xb4f   :  { %2226 = vrot.lane.b32.xlu1 %v2208_v49, %s3685_s3  ;;  %v3250_v49 = vld [vmem:[#allocation7 + $0x8] sm:$0xff] }
 0xb50   :  { %2504 = vmatpush.bf16.msra.mxu3 %v3250_v49 }
 0xb51   :  { %v4589_v6 = vpop.f32.mrf.mxu2 }
 0xb52   :  { %v2209_v0 = vmul.f32 %v4517_v7, %v4589_v6  ;;  %v2153_v42 = vmul.f32 %v4502_v60, %v4589_v6  ;;  %v2097_v44 = vmul.f32 %v4472_v58, %v4589_v6 }
 0xb55   :  { %v4611_v9 = vpop.permute.xlu2 %2302 }
 0xb56   :  { %2364 = vrot.lane.b32.xlu0 %v2345_v45, %s3670_s12  ;;  %2420 = vrot.lane.b32.xlu2 %v2401_v11, %s3685_s3  ;;  %v4667_v11 = vpop.permute.xlu0 %2255 }
 0xb57   :  { %2308 = vrot.lane.b32.xlu1 %v2289_v53, %s3675_s2  ;;  %v3249_v53 = vld [vmem:[#allocation7] sm:$0xff] }
 0xb58   :  { %2505 = vmatpush.bf16.msra.mxu3 %v3249_v53  ;;  %v4712_v53 = vld [vmem:[#allocation5 + $0x8] sm:$0xff] }
 0xb5e   :  { %2172 = vrot.lane.b32.xlu0 %v2153_v42, %s3670_s12  ;;  %2228 = vrot.lane.b32.xlu2 %v2209_v0, %s3685_s3 }
 0xb5f   :  { %2116 = vrot.lane.b32.xlu1 %v2097_v44, %s3675_s2 }
 0xb75   :  { %v4626_v63 = vpop.permute.xlu2 %2358 }
 0xb79   :  { %v4600_v34 = vpop.f32.mrf.mxu0 }
 0xb7a   :  { %v2290_v31 = vmul.f32 %v4484_v37, %v4600_v34  ;;  %v2402_v3 = vmul.f32 %v4524_v13, %v4600_v34  ;;  %v2346_v10 = vmul.f32 %v4519_v24, %v4600_v34 }
 0xb7c   :  { %2310 = vrot.lane.b32.xlu0 %v2290_v31, %s3675_s2  ;;  %2366 = vrot.lane.b32.xlu2 %v2346_v10, %s3670_s12 }
 0xb7d   :  { %2422 = vrot.lane.b32.xlu1 %v2402_v3, %s3685_s3  ;;  %v2111_v47 = vpop.permute.xlu2 %2110 }
 0xb7e   :  { %v4613_v61 = vpop.f32.mrf.mxu2 }
 0xb7f   :  { %v2098_v33 = vmul.f32 %v4491_v35, %v4613_v61  ;;  %v2154_v32 = vmul.f32 %v4532_v29, %v4613_v61  ;;  %v2210_v50 = vmul.f32 %v4474_v57, %v4613_v61 }
 0xb81   :  { %v4628_v56 = vpop.f32.mrf.mxu0 }
 0xb82   :  { %v2403_v19 = vmul.f32 %v4540_v4, %v4628_v56  ;;  %v2347_v20 = vmul.f32 %v4497_v38, %v4628_v56  ;;  %v2291_v39 = vmul.f32 %v4542_v14, %v4628_v56 }
 0xb84   :  { %2118 = vrot.lane.b32.xlu0 %v2098_v33, %s3675_s2  ;;  %2174 = vrot.lane.b32.xlu2 %v2154_v32, %s3670_s12 }
 0xb85   :  { %2230 = vrot.lane.b32.xlu1 %v2210_v50, %s3685_s3  ;;  %v2167_v23 = vpop.permute.xlu2 %2166 }
 0xb86   :  { %v4636_v26 = vpop.f32.mrf.mxu2 }
 0xb87   :  { %v2211_v36 = vmul.f32 %v4517_v7, %v4636_v26  ;;  %v2155_v12 = vmul.f32 %v4502_v60, %v4636_v26  ;;  %v2099_v46 = vmul.f32 %v4472_v58, %v4636_v26 }
 0xb8a   :  { %v4656_v17 = vpop.f32.mrf.mxu0 }
 0xb8b   :  { %v2292_v43 = vmul.f32 %v4484_v37, %v4656_v17  ;;  %v2348_v0 = vmul.f32 %v4519_v24, %v4656_v17  ;;  %v2262_v24 = vmul.f32 %v4667_v11, %v4476_v52 }
 0xb8c   :  { %2368 = vrot.lane.b32.xlu0 %v2347_v20, %s3670_s12  ;;  %2424 = vrot.lane.b32.xlu2 %v2403_v19, %s3685_s3  ;;  %v2079_v20 = vmul.f32 %v4621_v59, %v4508_v8 }
 0xb8d   :  { %2312 = vrot.lane.b32.xlu1 %v2291_v39, %s3675_s2  ;;  %v2417_v3 = vpop.permute.xlu2 %2416 }
 0xb8f   :  { %v4654_v48 = vpop.f32.mrf.mxu2 }
 0xb90   :  { %v2156_v1 = vmul.f32 %v4532_v29, %v4654_v48  ;;  %v2212_v21 = vmul.f32 %v4474_v57, %v4654_v48  ;;  %v2078_v29 = vmul.f32 %v4649_v54, %v4493_v18  ;;  %v2100_v57 = vmul.f32 %v4491_v35, %v4654_v48  ;;  %v2361_v18 = vpop.permute.xlu0 %2360 }
 0xb92   :  { %v2134_v42 = vadd.f32 %v2111_v47, %v2078_v29  ;;  %v4682_v35 = vpop.f32.mrf.mxu0 }
 0xb93   :  { %v2293_v50 = vmul.f32 %v4542_v14, %v4682_v35  ;;  %v2405_v14 = vmul.f32 %v4540_v4, %v4682_v35 }
 0xb94   :  { %2176 = vrot.lane.b32.xlu0 %v2155_v12, %s3670_s12  ;;  %2232 = vrot.lane.b32.xlu2 %v2211_v36, %s3685_s3  ;;  %v2190_v31 = vadd.f32 %v2167_v23, %v2134_v42  ;;  %v2349_v12 = vmul.f32 %v4497_v38, %v4682_v35  ;;  %v4710_v38 = vld [vmem:[#allocation5] sm:$0xff] }
 0xb95   :  { %2120 = vrot.lane.b32.xlu1 %v2099_v46, %s3675_s2  ;;  %v2225_v39 = vpop.permute.xlu2 %2224  ;;  %v2263_v46 = vmul.f32 %v4641_v40, %v4495_v30 }
 0xb96   :  { %v2415_v62 = vpop.permute.xlu1 %2414 }
 0xb97   :  { %v4669_v37 = vpop.f32.mrf.mxu2 }
 0xb98   :  { %v2101_v44 = vmul.f32 %v4472_v58, %v4669_v37  ;;  %v2157_v32 = vmul.f32 %v4502_v60, %v4669_v37  ;;  %v2213_v58 = vmul.f32 %v4517_v7, %v4669_v37  ;;  %v2169_v36 = vpop.permute.xlu0 %2168 }
 0xb9c   :  { %2314 = vrot.lane.b32.xlu0 %v2292_v43, %s3675_s2  ;;  %2178 = vrot.lane.b32.xlu2 %v2156_v1, %s3670_s12  ;;  %v2404_v43 = vmul.f32 %v4524_v13, %v4656_v17 }
 0xb9d   :  { %2234 = vrot.lane.b32.xlu1 %v2212_v21, %s3685_s3 }
 0xb9e   :  { %v2223_v45 = vpop.permute.xlu1 %2222 }
 0xb9f   :  { %v2246_v33 = vadd.f32 %v2223_v45, %v2190_v31 }
 0xba0   :  { %v2363_v23 = vpop.permute.xlu2 %2362 }
 0xba1   :  { %v2270_v19 = vadd.f32 %v2262_v24, %v2246_v33 }
 0xba3   :  { %v2326_v60 = vadd.f32 %v4611_v9, %v2270_v19 }
 0xba4   :  { %2370 = vrot.lane.b32.xlu2 %v2348_v0, %s3670_s12  ;;  %2122 = vrot.lane.b32.xlu0 %v2100_v57, %s3675_s2 }
 0xba5   :  { %2124 = vrot.lane.b32.xlu1 %v2101_v44, %s3675_s2  ;;  %v2382_v8 = vadd.f32 %v4626_v63, %v2326_v60 }
 0xba6   :  { %v2305_v10 = vpop.permute.xlu1 %2304 }
 0xba7   :  { %v2438_v4 = vadd.f32 %v2415_v62, %v2382_v8  ;;  %v2080_v62 = vmul.f32 %v4649_v54, %v4567_v55 }
 0xba8   :  { %v2171_v44 = vpop.permute.xlu2 %2170 }
 0xba9   :  { %v2448_v13 = vadd.f32 %v4710_v38, %v2438_v4 }
 0xbab   :  { %v2456_v57 = vadd.f32 %v2448_v13, %v4300_v5 }
 0xbac   :  { %2236 = vrot.lane.b32.xlu2 %v2213_v58, %s3685_s3  ;;  %2180 = vrot.lane.b32.xlu0 %v2157_v32, %s3670_s12 }
 0xbad   :  { %2316 = vrot.lane.b32.xlu1 %v2293_v50, %s3675_s2 }
 0xbae   :  { %v2113_v52 = vpop.permute.xlu1 %2112 }
 0xbaf   :  { %v2135_v47 = vadd.f32 %v2113_v52, %v2079_v20 }
 0xbb0   :  { %v2421_v50 = vpop.permute.xlu2 %2420 }
 0xbb1   :  { %v2191_v7 = vadd.f32 %v2169_v36, %v2135_v47  ;;  %v2265_v47 = vmul.f32 %v4641_v40, %v4578_v22 }
 0xbb3   :  { %v2247_v1 = vadd.f32 %v2225_v39, %v2191_v7 }
 0xbb4   :  { %2428 = vrot.lane.b32.xlu2 %v2405_v14, %s3685_s3  ;;  %2372 = vrot.lane.b32.xlu0 %v2349_v12, %s3670_s12 }
 0xbb5   :  { %v2271_v9 = vadd.f32 %v2263_v46, %v2247_v1  ;;  %2426 = vrot.lane.b32.xlu1 %v2404_v43, %s3685_s3 }
 0xbb7   :  { %v2327_v21 = vadd.f32 %v2305_v10, %v2271_v9 }
 0xbb8   :  { %v2307_v49 = vpop.permute.xlu0 %2306  ;;  %v2229_v60 = vpop.permute.xlu2 %2228 }
 0xbb9   :  { %v2383_v30 = vadd.f32 %v2361_v18, %v2327_v21  ;;  %v2419_v45 = vpop.permute.xlu1 %2418 }
 0xbbb   :  { %v2439_v63 = vadd.f32 %v2417_v3, %v2383_v30  ;;  %v2264_v3 = vmul.f32 %v4667_v11, %v4556_v41  ;;  %v2082_v30 = vmul.f32 %v4649_v54, %v4613_v61 }
 0xbbd   :  { %v2449_v29 = vadd.f32 %v4712_v53, %v2439_v63 }
 0xbbf   :  { %v2457_v0 = vadd.f32 %v2449_v29, %v4304_v51  ;;  %v2081_v51 = vmul.f32 %v4621_v59, %v4589_v6 }
 0xbc0   :  { %v2115_v42 = vpop.permute.xlu0 %2114 }
 0xbc1   :  { %v2227_v31 = vpop.permute.xlu1 %2226  ;;  %v2136_v10 = vadd.f32 %v2115_v42, %v2080_v62  ;;  %v2464_v18 = vpack.c.bf16 %v2457_v0, %v2456_v57  ;;  %v2266_v0 = vmul.f32 %v4667_v11, %v4600_v34 }
 0xbc3   :  { %v2192_v33 = vadd.f32 %v2171_v44, %v2136_v10  ;;  %3202 = vmatmul.msk.bf16.vlgmr.msra.gmra.mxu3 %vm1901_vm3, %v2464_v18 }
 0xbc5   :  { %v2248_v24 = vadd.f32 %v2227_v31, %v2192_v33  ;;  %v2083_v31 = vmul.f32 %v4621_v59, %v4636_v26 }
 0xbc7   :  { %v2272_v32 = vadd.f32 %v2264_v3, %v2248_v24 }
 0xbc8   :  { %v2365_v5 = vpop.permute.xlu0 %2364 }
 0xbc9   :  { %v2309_v58 = vpop.permute.xlu1 %2308  ;;  %v2328_v19 = vadd.f32 %v2307_v49, %v2272_v32  ;;  %v2267_v32 = vmul.f32 %v4641_v40, %v4628_v56 }
 0xbcb   :  { %v2384_v36 = vadd.f32 %v2363_v23, %v2328_v19 }
 0xbcd   :  { %v2440_v14 = vadd.f32 %v2419_v45, %v2384_v36 }
 0xbcf   :  { %v2450_v8 = vadd.f32 %v4710_v38, %v2440_v14 }
 0xbd0   :  { %v2173_v52 = vpop.permute.xlu0 %2172 }
 0xbd1   :  { %v2117_v55 = vpop.permute.xlu1 %2116  ;;  %v2458_v9 = vadd.f32 %v2450_v8, %v4326_v15 }
 0xbd2   :  { %v2137_v20 = vadd.f32 %v2117_v55, %v2081_v51 }
 0xbd4   :  { %v2193_v39 = vadd.f32 %v2173_v52, %v2137_v20 }
 0xbd6   :  { %v2249_v7 = vadd.f32 %v2229_v60, %v2193_v39  ;;  %v2367_v1 = vpop.permute.xlu2 %2366  ;;  %v2084_v60 = vmul.f32 %v4649_v54, %v4654_v48 }
 0xbd8   :  { %v2273_v41 = vadd.f32 %v2265_v47, %v2249_v7 }
 0xbda   :  { %v2329_v12 = vadd.f32 %v2309_v58, %v2273_v41 }
 0xbdc   :  { %v2385_v46 = vadd.f32 %v2365_v5, %v2329_v12 }
 0xbde   :  { %v2441_v43 = vadd.f32 %v2421_v50, %v2385_v46  ;;  %v2175_v22 = vpop.permute.xlu2 %2174 }
 0xbe0   :  { %v2451_v6 = vadd.f32 %v4712_v53, %v2441_v43  ;;  %v2268_v43 = vmul.f32 %v4667_v11, %v4656_v17 }
 0xbe2   :  { %v2459_v4 = vadd.f32 %v2451_v6, %v4330_v28  ;;  %v2085_v6 = vmul.f32 %v4621_v59, %v4669_v37 }
 0xbe4   :  { %v2465_v21 = vpack.c.bf16 %v2459_v4, %v2458_v9 }
 0xbe6   :  { %3203 = vmatmul.msk.bf16.gmra.mxu3 %vm1901_vm3, %v2465_v21  ;;  %v2425_v45 = vpop.permute.xlu2 %2424 }
 0xbee   :  { %v2311_v23 = vpop.permute.xlu0 %2310  ;;  %v2233_v44 = vpop.permute.xlu2 %2232 }
 0xbef   :  { %v2423_v49 = vpop.permute.xlu1 %2422 }
 0xbf6   :  { %v2119_v13 = vpop.permute.xlu0 %2118  ;;  %v2179_v3 = vpop.permute.xlu2 %2178 }
 0xbf7   :  { %v2231_v63 = vpop.permute.xlu1 %2230  ;;  %v2138_v29 = vadd.f32 %v2119_v13, %v2082_v30 }
 0xbf9   :  { %v2194_v57 = vadd.f32 %v2175_v22, %v2138_v29 }
 0xbfb   :  { %v2250_v15 = vadd.f32 %v2231_v63, %v2194_v57 }
 0xbfd   :  { %v2274_v62 = vadd.f32 %v2266_v0, %v2250_v15 }
 0xbfe   :  { %v2369_v28 = vpop.permute.xlu0 %2368  ;;  %v2371_v52 = vpop.permute.xlu2 %2370 }
 0xbff   :  { %v2313_v42 = vpop.permute.xlu1 %2312  ;;  %v2330_v33 = vadd.f32 %v2311_v23, %v2274_v62 }
 0xc01   :  { %v2386_v58 = vadd.f32 %v2367_v1, %v2330_v33 }
 0xc03   :  { %v2442_v55 = vadd.f32 %v2423_v49, %v2386_v58 }
 0xc05   :  { %v2452_v26 = vadd.f32 %v4710_v38, %v2442_v55 }
 0xc06   :  { %v2177_v10 = vpop.permute.xlu0 %2176  ;;  %v2237_v1 = vpop.permute.xlu2 %2236 }
 0xc07   :  { %v2121_v18 = vpop.permute.xlu1 %2120  ;;  %v2460_v41 = vadd.f32 %v2452_v26, %v4344_v16 }
 0xc08   :  { %v2139_v61 = vadd.f32 %v2121_v18, %v2083_v31 }
 0xc0a   :  { %v2195_v24 = vadd.f32 %v2177_v10, %v2139_v61 }
 0xc0c   :  { %v2251_v5 = vadd.f32 %v2233_v44, %v2195_v24 }
 0xc0e   :  { %v2275_v34 = vadd.f32 %v2267_v32, %v2251_v5  ;;  %v2315_v50 = vpop.permute.xlu0 %2314  ;;  %v2429_v59 = vpop.permute.xlu2 %2428 }
 0xc0f   :  { %v2235_v51 = vpop.permute.xlu1 %2234 }
 0xc10   :  { %v2331_v19 = vadd.f32 %v2313_v42, %v2275_v34 }
 0xc12   :  { %v2387_v20 = vadd.f32 %v2369_v28, %v2331_v19 }
 0xc14   :  { %v2443_v39 = vadd.f32 %v2425_v45, %v2387_v20 }
 0xc16   :  { %v2123_v47 = vpop.permute.xlu0 %2122  ;;  %v2453_v36 = vadd.f32 %v4712_v53, %v2443_v39 }
 0xc17   :  { %v2140_v7 = vadd.f32 %v2123_v47, %v2084_v60  ;;  %v2125_v56 = vpop.permute.xlu1 %2124 }
 0xc18   :  { %v2461_v14 = vadd.f32 %v2453_v36, %v4348_v27  ;;  %v2141_v54 = vadd.f32 %v2125_v56, %v2085_v6  ;;  %v2269_v27 = vmul.f32 %v4641_v40, %v4682_v35  ;;  %v4761_v40 = vld [vmem:[%s4952_s10] ss:$0 sm:$0xff] }
 0xc19   :  { %v2196_v12 = vadd.f32 %v2179_v3, %v2140_v7 }
 0xc1a   :  { %v2466_v46 = vpack.c.bf16 %v2461_v14, %v2460_v41 }
 0xc1b   :  { %v2252_v8 = vadd.f32 %v2235_v51, %v2196_v12 }
 0xc1c   :  { %3204 = vmatmul.msk.bf16.gmra.mxu3 %vm1901_vm3, %v2466_v46 }
 0xc1d   :  { %v2276_v48 = vadd.f32 %v2268_v43, %v2252_v8 }
 0xc1e   :  { %v2181_v9 = vpop.permute.xlu0 %2180 }
 0xc1f   :  { %v2197_v4 = vadd.f32 %v2181_v9, %v2141_v54  ;;  %v2317_v21 = vpop.permute.xlu1 %2316  ;;  %v2332_v22 = vadd.f32 %v2315_v50, %v2276_v48 }
 0xc21   :  { %v2253_v16 = vadd.f32 %v2237_v1, %v2197_v4  ;;  %v2388_v11 = vadd.f32 %v2371_v52, %v2332_v22 }
 0xc23   :  { %v2277_v23 = vadd.f32 %v2269_v27, %v2253_v16 }
 0xc25   :  { %v2333_v49 = vadd.f32 %v2317_v21, %v2277_v23 }
 0xc26   :  { %v2373_v17 = vpop.permute.xlu0 %2372 }
 0xc27   :  { %v2389_v30 = vadd.f32 %v2373_v17, %v2333_v49  ;;  %v2427_v45 = vpop.permute.xlu1 %2426 }
 0xc28   :  { %v2444_v37 = vadd.f32 %v2427_v45, %v2388_v11 }
 0xc29   :  { %v2445_v13 = vadd.f32 %v2429_v59, %v2389_v30 }
 0xc2a   :  { %v2454_v63 = vadd.f32 %v4710_v38, %v2444_v37 }
 0xc2b   :  { %v2455_v29 = vadd.f32 %v4712_v53, %v2445_v13 }
 0xc2c   :  { %v2462_v0 = vadd.f32 %v2454_v63, %v4358_v2 }
 0xc2d   :  { %v2463_v57 = vadd.f32 %v2455_v29, %v4362_v25 }
 0xc2f   :  { %v2467_v15 = vpack.c.bf16 %v2463_v57, %v2462_v0 }
 0xc31   :  { %3205 = vmatmul.msk.bf16.gmra.mxu3 %vm1901_vm3, %v2467_v15 }
 0xc46   :  { %v2507_v35 = vpop.f32.mrf.mxu3 }
 0xc47   :  { %v4764_v62 = vadd.f32 %v4761_v40, %v2507_v35 }
 0xc49   :  { %v3206_v38 = vmul.f32 -1.442695, %v4764_v62 }
 0xc4b   :  { %3472 = vpow2.f32 %v3206_v38 }
 0xc4e   :  { %v2509_v53 = vpop.f32.mrf.mxu3 }
 0xc4f   :  { %v4768_v25 = vadd.f32 %v4761_v40, %v2509_v53 }
 0xc51   :  { %v3473_v2 = vpop.eup %3472  ;;  %v3207_v28 = vmul.f32 -1.442695, %v4768_v25 }
 0xc52   :  { %v2551_v42 = vadd.f32 1.0, %v3473_v2 }
 0xc53   :  { %3474 = vpow2.f32 %v3207_v28 }
 0xc54   :  { %3476 = vrcp.f32 %v2551_v42  ;;  %v2570_v61 = vand.u32 2147483648, %v2551_v42  ;;  %v2568_v24 = vand.u32 2147483647, %v2551_v42  ;;  %vm2564_vm7 = vweird.f32 %v2551_v42 }
 0xc56   :  { %v2571_v5 = vor.u32 1.1754944e-38, %v2570_v61  ;;  %vm2569_vm9 = vcmp.eq.f32.partialorder %v2568_v24, 8.507059e+37 }
 0xc59   :  { %v3475_v44 = vpop.eup %3474 }
 0xc5a   :  { %v3477_v31 = vpop.eup %3476  ;;  %v2552_v10 = vadd.f32 1.0, %v3475_v44 }
 0xc5b   :  { %v2560_v18 = vmul.f32 %v3477_v31, %v2551_v42  ;;  %vm2565_vm6 = vweird.f32 %v3477_v31 }
 0xc5c   :  { %3478 = vrcp.f32 %v2552_v10  ;;  %vm2566_vm8 = vmor %vm2564_vm7, %vm2565_vm6  ;;  %v2585_v19 = vand.u32 2147483648, %v2552_v10  ;;  %v2583_v52 = vand.u32 2147483647, %v2552_v10  ;;  %vm2579_vm11 = vweird.f32 %v2552_v10 }
 0xc5d   :  { %v2561_v33 = vsub.f32 1.0, %v2560_v18 }
 0xc5e   :  { %v2586_v47 = vor.u32 1.1754944e-38, %v2585_v19  ;;  %vm2584_vm13 = vcmp.eq.f32.partialorder %v2583_v52, 8.507059e+37 }
 0xc5f   :  { %v2562_v3 = vmul.f32 %v3477_v31, %v2561_v33 }
 0xc61   :  { %v2563_v32 = vadd.f32 %v3477_v31, %v2562_v3 }
 0xc62   :  { %v3479_v58 = vpop.eup %3478 }
 0xc63   :  { %v2567_v34 = vsel %vm2566_vm8, %v3477_v31, %v2563_v32  ;;  %v2575_v50 = vmul.f32 %v3479_v58, %v2552_v10  ;;  %vm2580_vm10 = vweird.f32 %v3479_v58 }
 0xc64   :  { %v2572_v51 = vsel %vm2569_vm9, %v2571_v5, %v2567_v34  ;;  %vm2581_vm12 = vmor %vm2579_vm11, %vm2580_vm10 }
 0xc65   :  { %2687 = vrot.lane.b32.xlu0 %v2572_v51, %s3675_s2  ;;  %v2576_v55 = vsub.f32 1.0, %v2575_v50 }
 0xc67   :  { %v2577_v20 = vmul.f32 %v3479_v58, %v2576_v55 }
 0xc69   :  { %v2512_v39 = vpop.f32.mrf.mxu3  ;;  %v2578_v26 = vadd.f32 %v3479_v58, %v2577_v20 }
 0xc6a   :  { %v4773_v60 = vadd.f32 %v4761_v40, %v2512_v39 }
 0xc6b   :  { %v2582_v36 = vsel %vm2581_vm12, %v3479_v58, %v2578_v26 }
 0xc6c   :  { %v3208_v7 = vmul.f32 -1.442695, %v4773_v60  ;;  %v2587_v56 = vsel %vm2584_vm13, %v2586_v47, %v2582_v36 }
 0xc6d   :  { %2689 = vrot.lane.b32.xlu1 %v2587_v56, %s3675_s2 }
 0xc6e   :  { %3480 = vpow2.f32 %v3208_v7 }
 0xc71   :  { %v2514_v41 = vpop.f32.mrf.mxu3 }
 0xc72   :  { %v4778_v14 = vadd.f32 %v4761_v40, %v2514_v41 }
 0xc74   :  { %v3481_v12 = vpop.eup %3480  ;;  %v3209_v46 = vmul.f32 -1.442695, %v4778_v14 }
 0xc75   :  { %v2553_v43 = vadd.f32 1.0, %v3481_v12 }
 0xc76   :  { %3482 = vpow2.f32 %v3209_v46 }
 0xc77   :  { %3484 = vrcp.f32 %v2553_v43  ;;  %v2600_v9 = vand.u32 2147483648, %v2553_v43  ;;  %v2598_v21 = vand.u32 2147483647, %v2553_v43  ;;  %vm2594_vm15 = vweird.f32 %v2553_v43 }
 0xc79   :  { %v2601_v22 = vor.u32 1.1754944e-38, %v2600_v9  ;;  %vm2599_vm1 = vcmp.eq.f32.partialorder %v2598_v21, 8.507059e+37 }
 0xc7c   :  { %v3483_v8 = vpop.eup %3482 }
 0xc7d   :  { %v3485_v6 = vpop.eup %3484  ;;  %v2554_v54 = vadd.f32 1.0, %v3483_v8 }
 0xc7e   :  { %v2590_v48 = vmul.f32 %v3485_v6, %v2553_v43  ;;  %vm2595_vm14 = vweird.f32 %v3485_v6 }
 0xc7f   :  { %3486 = vrcp.f32 %v2554_v54  ;;  %vm2596_vm0 = vmor %vm2594_vm15, %vm2595_vm14  ;;  %v2615_v30 = vand.u32 2147483648, %v2554_v54  ;;  %v2613_v59 = vand.u32 2147483647, %v2554_v54  ;;  %vm2609_vm5 = vweird.f32 %v2554_v54 }
 0xc80   :  { %v2591_v1 = vsub.f32 1.0, %v2590_v48 }
 0xc81   :  { %v2616_v13 = vor.u32 1.1754944e-38, %v2615_v30  ;;  %vm2614_vm7 = vcmp.eq.f32.partialorder %v2613_v59, 8.507059e+37 }
 0xc82   :  { %v2592_v4 = vmul.f32 %v3485_v6, %v2591_v1 }
 0xc84   :  { %v2593_v16 = vadd.f32 %v3485_v6, %v2592_v4 }
 0xc85   :  { %v3487_v27 = vpop.eup %3486 }
 0xc86   :  { %v2597_v23 = vsel %vm2596_vm0, %v3485_v6, %v2593_v16  ;;  %v2605_v49 = vmul.f32 %v3487_v27, %v2554_v54  ;;  %vm2610_vm2 = vweird.f32 %v3487_v27 }
 0xc87   :  { %v2602_v17 = vsel %vm2599_vm1, %v2601_v22, %v2597_v23  ;;  %vm2611_vm6 = vmor %vm2609_vm5, %vm2610_vm2 }
 0xc88   :  { %2691 = vrot.lane.b32.xlu2 %v2602_v17, %s3675_s2  ;;  %v2606_v11 = vsub.f32 1.0, %v2605_v49 }
 0xc8a   :  { %v2607_v45 = vmul.f32 %v3487_v27, %v2606_v11 }
 0xc8c   :  { %v2608_v37 = vadd.f32 %v3487_v27, %v2607_v45 }
 0xc8e   :  { %v2612_v63 = vsel %vm2611_vm6, %v3487_v27, %v2608_v37 }
 0xc8f   :  { %v2617_v29 = vsel %vm2614_vm7, %v2616_v13, %v2612_v63 }
 0xc90   :  { %2693 = vrot.lane.b32.xlu0 %v2617_v29, %s3675_s2 }
 0xc9f   :  { %v2517_v57 = vpop.f32.mrf.mxu3 }
 0xca0   :  { %v4784_v0 = vadd.f32 %v4761_v40, %v2517_v57 }
 0xca2   :  { %v3210_v15 = vmul.f32 -1.442695, %v4784_v0 }
 0xca4   :  { %3488 = vpow2.f32 %v3210_v15 }
 0xca7   :  { %v2519_v35 = vpop.f32.mrf.mxu3 }
 0xca8   :  { %v4788_v38 = vadd.f32 %v4761_v40, %v2519_v35 }
 0xcaa   :  { %v3489_v53 = vpop.eup %3488  ;;  %v3211_v2 = vmul.f32 -1.442695, %v4788_v38 }
 0xcab   :  { %v2555_v28 = vadd.f32 1.0, %v3489_v53 }
 0xcac   :  { %3490 = vpow2.f32 %v3211_v2 }
 0xcad   :  { %3492 = vrcp.f32 %v2555_v28  ;;  %v2630_v24 = vand.u32 2147483648, %v2555_v28  ;;  %v2628_v58 = vand.u32 2147483647, %v2555_v28  ;;  %vm2624_vm9 = vweird.f32 %v2555_v28 }
 0xcaf   :  { %v2631_v50 = vor.u32 1.1754944e-38, %v2630_v24  ;;  %vm2629_vm11 = vcmp.eq.f32.partialorder %v2628_v58, 8.507059e+37 }
 0xcb2   :  { %v3491_v42 = vpop.eup %3490 }
 0xcb3   :  { %v3493_v44 = vpop.eup %3492  ;;  %v2556_v31 = vadd.f32 1.0, %v3491_v42 }
 0xcb4   :  { %v2522_v10 = vpop.f32.mrf.mxu3  ;;  %v2620_v18 = vmul.f32 %v3493_v44, %v2555_v28  ;;  %vm2625_vm8 = vweird.f32 %v3493_v44 }
 0xcb5   :  { %3494 = vrcp.f32 %v2556_v31  ;;  %v4792_v33 = vadd.f32 %v4761_v40, %v2522_v10  ;;  %vm2626_vm10 = vmor %vm2624_vm9, %vm2625_vm8  ;;  %v2645_v36 = vand.u32 2147483648, %v2556_v31  ;;  %v2643_v41 = vand.u32 2147483647, %v2556_v31 }
 0xcb6   :  { %v2621_v61 = vsub.f32 1.0, %v2620_v18  ;;  %vm2639_vm13 = vweird.f32 %v2556_v31 }
 0xcb7   :  { %v3212_v3 = vmul.f32 -1.442695, %v4792_v33  ;;  %v2646_v46 = vor.u32 1.1754944e-38, %v2645_v36  ;;  %vm2644_vm15 = vcmp.eq.f32.partialorder %v2643_v41, 8.507059e+37 }
 0xcb8   :  { %v2622_v32 = vmul.f32 %v3493_v44, %v2621_v61 }
 0xcb9   :  { %3496 = vpow2.f32 %v3212_v3 }
 0xcba   :  { %v2623_v5 = vadd.f32 %v3493_v44, %v2622_v32 }
 0xcbb   :  { %v3495_v34 = vpop.eup %3494 }
 0xcbc   :  { %v2524_v51 = vpop.f32.mrf.mxu3  ;;  %v2627_v55 = vsel %vm2626_vm10, %v3493_v44, %v2623_v5  ;;  %v2635_v19 = vmul.f32 %v3495_v34, %v2556_v31  ;;  %vm2640_vm12 = vweird.f32 %v3495_v34 }
 0xcbd   :  { %v4796_v20 = vadd.f32 %v4761_v40, %v2524_v51  ;;  %v2632_v52 = vsel %vm2629_vm11, %v2631_v50, %v2627_v55  ;;  %vm2641_vm14 = vmor %vm2639_vm13, %vm2640_vm12 }
 0xcbe   :  { %2695 = vrot.lane.b32.xlu1 %v2632_v52, %s3675_s2  ;;  %v2636_v39 = vsub.f32 1.0, %v2635_v19 }
 0xcbf   :  { %v3497_v26 = vpop.eup %3496  ;;  %v3213_v47 = vmul.f32 -1.442695, %v4796_v20 }
 0xcc0   :  { %v2557_v7 = vadd.f32 1.0, %v3497_v26  ;;  %v2637_v56 = vmul.f32 %v3495_v34, %v2636_v39 }
 0xcc1   :  { %3498 = vpow2.f32 %v3213_v47 }
 0xcc2   :  { %3500 = vrcp.f32 %v2557_v7  ;;  %v2638_v12 = vadd.f32 %v3495_v34, %v2637_v56  ;;  %v2660_v9 = vand.u32 2147483648, %v2557_v7  ;;  %v2658_v21 = vand.u32 2147483647, %v2557_v7 }
 0xcc3   :  { %vm2654_vm1 = vweird.f32 %v2557_v7 }
 0xcc4   :  { %v2642_v40 = vsel %vm2641_vm14, %v3495_v34, %v2638_v12  ;;  %v2661_v22 = vor.u32 1.1754944e-38, %v2660_v9  ;;  %vm2659_vm5 = vcmp.eq.f32.partialorder %v2658_v21, 8.507059e+37 }
 0xcc5   :  { %v2647_v43 = vsel %vm2644_vm15, %v2646_v46, %v2642_v40 }
 0xcc6   :  { %2697 = vrot.lane.b32.xlu2 %v2647_v43, %s3675_s2 }
 0xcc7   :  { %v3499_v8 = vpop.eup %3498 }
 0xcc8   :  { %v3501_v6 = vpop.eup %3500  ;;  %v2558_v54 = vadd.f32 1.0, %v3499_v8 }
 0xcc9   :  { %v2650_v48 = vmul.f32 %v3501_v6, %v2557_v7  ;;  %vm2655_vm0 = vweird.f32 %v3501_v6 }
 0xcca   :  { %3502 = vrcp.f32 %v2558_v54  ;;  %vm2656_vm2 = vmor %vm2654_vm1, %vm2655_vm0  ;;  %v2675_v30 = vand.u32 2147483648, %v2558_v54  ;;  %v2673_v59 = vand.u32 2147483647, %v2558_v54  ;;  %vm2669_vm7 = vweird.f32 %v2558_v54 }
 0xccb   :  { %v2651_v1 = vsub.f32 1.0, %v2650_v48 }
 0xccc   :  { %v2676_v29 = vor.u32 1.1754944e-38, %v2675_v30  ;;  %vm2674_vm9 = vcmp.eq.f32.partialorder %v2673_v59, 8.507059e+37 }
 0xccd   :  { %v2652_v4 = vmul.f32 %v3501_v6, %v2651_v1 }
 0xccf   :  { %v2653_v16 = vadd.f32 %v3501_v6, %v2652_v4 }
 0xcd0   :  { %v3503_v27 = vpop.eup %3502 }
 0xcd1   :  { %v2657_v23 = vsel %vm2656_vm2, %v3501_v6, %v2653_v16  ;;  %v2665_v49 = vmul.f32 %v3503_v27, %v2558_v54  ;;  %vm2670_vm6 = vweird.f32 %v3503_v27 }
 0xcd2   :  { %v2662_v17 = vsel %vm2659_vm5, %v2661_v22, %v2657_v23  ;;  %vm2671_vm8 = vmor %vm2669_vm7, %vm2670_vm6 }
 0xcd3   :  { %2699 = vrot.lane.b32.xlu2 %v2662_v17, %s3675_s2  ;;  %v2666_v11 = vsub.f32 1.0, %v2665_v49 }
 0xcd5   :  { %v2667_v45 = vmul.f32 %v3503_v27, %v2666_v11 }
 0xcd7   :  { %v2688_v37 = vpop.permute.xlu0 %2687  ;;  %v2668_v13 = vadd.f32 %v3503_v27, %v2667_v45 }
 0xcd8   :  { %v2711_v63 = vmul.f32 %v2688_v37, %v4764_v62 }
 0xcd9   :  { %v2672_v57 = vsel %vm2671_vm8, %v3503_v27, %v2668_v13 }
 0xcda   :  { %v2677_v15 = vsel %vm2674_vm9, %v2676_v29, %v2672_v57  ;;  %v2719_v35 = vsel %vm1901_vm3, %v2711_v63, 0.0 }
 0xcdb   :  { %2701 = vrot.lane.b32.xlu2 %v2677_v15, %s3675_s2  ;;  %2720 = vadd.xlane.f32.xlu0 %v2719_v35 }
 0xcdf   :  { %v2690_v53 = vpop.permute.xlu1 %2689 }
 0xce0   :  { %v2712_v2 = vmul.f32 %v2690_v53, %v4768_v25 }
 0xce2   :  { %v2722_v28 = vsel %vm1901_vm3, %v2712_v2, 0.0  ;;  %v2692_v42 = vpop.permute.xlu2 %2691 }
 0xce3   :  { %v2713_v44 = vmul.f32 %v2692_v42, %v4773_v60 }
 0xce5   :  { %v2725_v10 = vsel %vm1901_vm3, %v2713_v44, 0.0 }
 0xce8   :  { %2723 = vadd.xlane.f32.xlu1 %v2722_v28 }
 0xd02   :  { %v2694_v62 = vpop.permute.xlu0 %2693 }
 0xd03   :  { %v2714_v31 = vmul.f32 %v2694_v62, %v4778_v14 }
 0xd04   :  { %2726 = vadd.xlane.f32.xlu2 %v2725_v10 }
 0xd05   :  { %v2728_v18 = vsel %vm1901_vm3, %v2714_v31, 0.0 }
 0xd06   :  { %2729 = vadd.xlane.f32.xlu0 %v2728_v18 }
 0xd20   :  { %v2698_v61 = vpop.permute.xlu2 %2697 }
 0xd21   :  { %v4812_v3 = vmul.f32 %v2698_v61, %v4788_v38 }
 0xd23   :  { %v2734_v25 = vsel %vm1901_vm3, %v4812_v3, 0.0 }
 0xd24   :  { %2735 = vadd.xlane.f32.xlu0 %v2734_v25 }
 0xd2d   :  { %v2700_v24 = vpop.permute.xlu2 %2699 }
 0xd2e   :  { %v4825_v38 = vmul.f32 %v2700_v24, %v4792_v33 }
 0xd30   :  { %v2696_v32 = vpop.permute.xlu1 %2695  ;;  %v2737_v50 = vsel %vm1901_vm3, %v4825_v38, 0.0 }
 0xd31   :  { %v4817_v60 = vmul.f32 %v2696_v32, %v4784_v0  ;;  %v3694_v0 = vmov 512.0  }
 0xd32   :  { %3504 = vrcp.f32 %v3694_v0 }
 0xd33   :  { %v2731_v14 = vsel %vm1901_vm3, %v4817_v60, 0.0 }
 0xd34   :  { %2732 = vadd.xlane.f32.xlu1 %v2731_v14 }
 0xd35   :  { %v2702_v58 = vpop.permute.xlu2 %2701 }
 0xd36   :  { %v4822_v5 = vmul.f32 %v2702_v58, %v4796_v20 }
 0xd38   :  { %v2740_v34 = vsel %vm1901_vm3, %v4822_v5, 0.0  ;;  %v3505_v51 = vpop.eup %3504 }
 0xd39   :  { %2741 = vadd.xlane.f32.xlu0 %v2740_v34  ;;  %v2772_v55 = vmul.f32 512.0, %v3505_v51  ;;  %vm2776_vm10 = vweird.f32 %v3505_v51 }
 0xd3b   :  { %v2773_v39 = vsub.f32 1.0, %v2772_v55 }
 0xd3c   :  { %2738 = vadd.xlane.f32.xlu1 %v2737_v50 }
 0xd3d   :  { %v2774_v47 = vmul.f32 %v3505_v51, %v2773_v39 }
 0xd3f   :  { %v2775_v7 = vadd.f32 %v3505_v51, %v2774_v47 }
 0xd41   :  { %v4831_v12 = vsel %vm2776_vm10, %v3505_v51, %v2775_v7 }
 0xd4e   :  { %v2721_v19 = vpop.xlane.xlu0 %2720 }
 0xd5b   :  { %v2724_v52 = vpop.xlane.xlu1 %2723 }
 0xd5c   :  { %v2743_v20 = vadd.f32 %v2724_v52, %v2721_v19 }
 0xd5e   :  { %v2744_v26 = vrot.slane %v2743_v20, 4 }
 0xd60   :  { %v2745_v33 = vadd.f32 %v2744_v26, %v2743_v20 }
 0xd62   :  { %v2746_v36 = vrot.slane %v2745_v33, 2 }
 0xd64   :  { %v2747_v56 = vadd.f32 %v2746_v36, %v2745_v33 }
 0xd66   :  { %v2748_v41 = vrot.slane %v2747_v56, 1 }
 0xd68   :  { %v2749_v46 = vadd.f32 %v2748_v41, %v2747_v56  ;;  %v3252_v41 = vld [vmem:[#allocation8 + $0x8] sm:$0xff] }
 0xd69   :  { %2967 = vmatpush.bf16.msra.mxu1 %v3252_v41 }
 0xd6a   :  { %v2778_v40 = vmul.f32 %v4831_v12, %v2749_v46 }
 0xd6c   :  { %v4834_v43 = vsub.f32 %v2712_v2, %v2778_v40  ;;  %v4836_v8 = vsub.f32 %v2711_v63, %v2778_v40  ;;  %v3251_v40 = vld [vmem:[#allocation8] sm:$0xff] }
 0xd6d   :  { %2968 = vmatpush.bf16.msra.mxu1 %v3251_v40 }
 0xd6e   :  { %v2791_v6 = vmul.f32 %v4834_v43, %v4834_v43  ;;  %v2790_v54 = vmul.f32 %v4836_v8, %v4836_v8 }
 0xd70   :  { %v2801_v48 = vsel %vm1901_vm3, %v2791_v6, 0.0  ;;  %v2798_v1 = vsel %vm1901_vm3, %v2790_v54, 0.0 }
 0xd71   :  { %2802 = vadd.xlane.f32.xlu2 %v2801_v48  ;;  %2799 = vadd.xlane.f32.xlu1 %v2798_v1 }
 0xd77   :  { %v2727_v9 = vpop.xlane.xlu2 %2726 }
 0xd79   :  { %v2730_v4 = vpop.xlane.xlu0 %2729 }
 0xd7a   :  { %v2750_v21 = vadd.f32 %v2730_v4, %v2727_v9 }
 0xd7c   :  { %v2751_v16 = vrot.slane %v2750_v21, 4 }
 0xd7e   :  { %v2752_v27 = vadd.f32 %v2751_v16, %v2750_v21 }
 0xd80   :  { %v2753_v22 = vrot.slane %v2752_v27, 2 }
 0xd82   :  { %v2754_v23 = vadd.f32 %v2753_v22, %v2752_v27 }
 0xd84   :  { %v2755_v49 = vrot.slane %v2754_v23, 1 }
 0xd86   :  { %v2756_v17 = vadd.f32 %v2755_v49, %v2754_v23 }
 0xd88   :  { %v2779_v11 = vmul.f32 %v4831_v12, %v2756_v17 }
 0xd8a   :  { %v4845_v30 = vsub.f32 %v2714_v31, %v2779_v11  ;;  %v4847_v45 = vsub.f32 %v2713_v44, %v2779_v11 }
 0xd8c   :  { %v2793_v59 = vmul.f32 %v4845_v30, %v4845_v30  ;;  %v2792_v37 = vmul.f32 %v4847_v45, %v4847_v45 }
 0xd8e   :  { %v2807_v13 = vsel %vm1901_vm3, %v2793_v59, 0.0  ;;  %v2804_v63 = vsel %vm1901_vm3, %v2792_v37, 0.0  ;;  %v4882_v37 = vld [vmem:[#allocation10] sm:$0xff] }
 0xd8f   :  { %2808 = vadd.xlane.f32.xlu1 %v2807_v13  ;;  %2805 = vadd.xlane.f32.xlu0 %v2804_v63  ;;  %v4884_v13 = vld [vmem:[#allocation10 + $0x8] sm:$0xff] }
 0xd97   :  { %v2736_v29 = vpop.xlane.xlu0 %2735 }
 0xda7   :  { %v2733_v57 = vpop.xlane.xlu1 %2732 }
 0xda8   :  { %v2757_v15 = vadd.f32 %v2736_v29, %v2733_v57 }
 0xdaa   :  { %v2758_v35 = vrot.slane %v2757_v15, 4 }
 0xdac   :  { %v2759_v53 = vadd.f32 %v2758_v35, %v2757_v15  ;;  %v2742_v28 = vpop.xlane.xlu0 %2741  ;;  %v4888_v35 = vld [vmem:[#allocation10 + $0x10] sm:$0xff] }
 0xdae   :  { %v2760_v2 = vrot.slane %v2759_v53, 2 }
 0xdaf   :  { %v2739_v42 = vpop.xlane.xlu1 %2738 }
 0xdb0   :  { %v2761_v44 = vadd.f32 %v2760_v2, %v2759_v53  ;;  %v2764_v62 = vadd.f32 %v2742_v28, %v2739_v42  ;;  %v4890_v53 = vld [vmem:[#allocation10 + $0x18] sm:$0xff] }
 0xdb2   :  { %v2762_v31 = vrot.slane %v2761_v44, 1  ;;  %v2765_v10 = vrot.slane %v2764_v62, 4 }
 0xdb4   :  { %v2763_v18 = vadd.f32 %v2762_v31, %v2761_v44  ;;  %v2766_v61 = vadd.f32 %v2765_v10, %v2764_v62 }
 0xdb6   :  { %v2767_v25 = vrot.slane %v2766_v61, 2  ;;  %v2780_v24 = vmul.f32 %v4831_v12, %v2763_v18 }
 0xdb8   :  { %v2768_v32 = vadd.f32 %v2767_v25, %v2766_v61  ;;  %v4857_v14 = vsub.f32 %v4817_v60, %v2780_v24  ;;  %v4860_v58 = vsub.f32 %v4812_v3, %v2780_v24 }
 0xdba   :  { %v2769_v34 = vrot.slane %v2768_v32, 1  ;;  %v2794_v50 = vmul.f32 %v4857_v14, %v4857_v14  ;;  %v2795_v0 = vmul.f32 %v4860_v58, %v4860_v58 }
 0xdbc   :  { %v2770_v51 = vadd.f32 %v2769_v34, %v2768_v32  ;;  %v2810_v55 = vsel %vm1901_vm3, %v2794_v50, 0.0  ;;  %v2813_v19 = vsel %vm1901_vm3, %v2795_v0, 0.0 }
 0xdbd   :  { %2811 = vadd.xlane.f32.xlu2 %v2810_v55  ;;  %2814 = vadd.xlane.f32.xlu0 %v2813_v19 }
 0xdbe   :  { %v2781_v60 = vmul.f32 %v4831_v12, %v2770_v51 }
 0xdc0   :  { %v4870_v52 = vsub.f32 %v4822_v5, %v2781_v60  ;;  %v4873_v3 = vsub.f32 %v4825_v38, %v2781_v60 }
 0xdc2   :  { %v2797_v39 = vmul.f32 %v4870_v52, %v4870_v52  ;;  %v2796_v20 = vmul.f32 %v4873_v3, %v4873_v3 }
 0xdc4   :  { %v2819_v26 = vsel %vm1901_vm3, %v2797_v39, 0.0  ;;  %v2816_v47 = vsel %vm1901_vm3, %v2796_v20, 0.0 }
 0xdc5   :  { %2820 = vadd.xlane.f32.xlu2 %v2819_v26  ;;  %2817 = vadd.xlane.f32.xlu1 %v2816_v47 }
 0xde4   :  { %v2800_v33 = vpop.xlane.xlu1 %2799  ;;  %v2803_v36 = vpop.xlane.xlu2 %2802 }
 0xde5   :  { %v2822_v7 = vadd.f32 %v2803_v36, %v2800_v33 }
 0xde7   :  { %v2823_v5 = vrot.slane %v2822_v7, 4 }
 0xde9   :  { %v2824_v56 = vadd.f32 %v2823_v5, %v2822_v7 }
 0xdeb   :  { %v2825_v38 = vrot.slane %v2824_v56, 2 }
 0xded   :  { %v2826_v46 = vadd.f32 %v2825_v38, %v2824_v56 }
 0xdef   :  { %v2827_v6 = vrot.slane %v2826_v46, 1 }
 0xdf1   :  { %v2828_v54 = vadd.f32 %v2827_v6, %v2826_v46 }
 0xdf3   :  { %v2850_v48 = vmul.f32 %v2828_v54, %v4831_v12 }
 0xdf5   :  { %v2854_v1 = vadd.f32 1e-05, %v2850_v48 }
 0xdf7   :  { %3506 = vrsqrt.f32 %v2854_v1  ;;  %vm2864_vm12 = vweird.f32 %v2854_v1 }
 0xdfd   :  { %v3507_v9 = vpop.eup %3506 }
 0xdfe   :  { %v2859_v4 = vmul.f32 %v3507_v9, %v2854_v1  ;;  %vm2865_vm11 = vweird.f32 %v3507_v9 }
 0xdff   :  { %vm2866_vm13 = vmor %vm2864_vm12, %vm2865_vm11 }
 0xe00   :  { %v2860_v21 = vmul.f32 %v3507_v9, %v2859_v4 }
 0xe02   :  { %v2861_v16 = vmul.f32 0.5, %v2860_v21  ;;  %v2809_v27 = vpop.xlane.xlu1 %2808  ;;  %v2806_v22 = vpop.xlane.xlu0 %2805 }
 0xe03   :  { %v2829_v23 = vadd.f32 %v2809_v27, %v2806_v22 }
 0xe04   :  { %v2862_v49 = vsub.f32 1.5, %v2861_v16 }
 0xe05   :  { %v2830_v17 = vrot.slane %v2829_v23, 4 }
 0xe06   :  { %v2863_v11 = vmul.f32 %v3507_v9, %v2862_v49 }
 0xe07   :  { %v2831_v59 = vadd.f32 %v2830_v17, %v2829_v23 }
 0xe08   :  { %v2867_v63 = vsel %vm2866_vm13, %v3507_v9, %v2863_v11 }
 0xe09   :  { %v2898_v29 = vmul.f32 %v2867_v63, %v4836_v8  ;;  %v2899_v57 = vmul.f32 %v2867_v63, %v4834_v43  ;;  %v2832_v15 = vrot.slane %v2831_v59, 2 }
 0xe0b   :  { %v2908_v2 = vmul.f32 %v4882_v37, %v2898_v29  ;;  %v2909_v28 = vmul.f32 %v4884_v13, %v2899_v57  ;;  %v2833_v42 = vadd.f32 %v2832_v15, %v2831_v59 }
 0xe0d   :  { %v2834_v44 = vrot.slane %v2833_v42, 1  ;;  %v2919_v62 = vadd.f32 %v4888_v35, %v2908_v2  ;;  %v2920_v31 = vadd.f32 %v4890_v53, %v2909_v28 }
 0xe0f   :  { %v2835_v10 = vadd.f32 %v2834_v44, %v2833_v42  ;;  %v2927_v18 = vpack.c.bf16 %v2920_v31, %v2919_v62 }
 0xe11   :  { %v2851_v8 = vmul.f32 %v2835_v10, %v4831_v12  ;;  %3222 = vmatmul.msk.bf16.vlgmr.msra.gmra.mxu1 %vm1901_vm3, %v2927_v18 }
 0xe13   :  { %v2855_v43 = vadd.f32 1e-05, %v2851_v8 }
 0xe15   :  { %3508 = vrsqrt.f32 %v2855_v43  ;;  %vm2874_vm15 = vweird.f32 %v2855_v43 }
 0xe1b   :  { %v3509_v61 = vpop.eup %3508 }
 0xe1c   :  { %v2869_v25 = vmul.f32 %v3509_v61, %v2855_v43  ;;  %vm2875_vm14 = vweird.f32 %v3509_v61 }
 0xe1d   :  { %vm2876_vm0 = vmor %vm2874_vm15, %vm2875_vm14 }
 0xe1e   :  { %v2870_v24 = vmul.f32 %v3509_v61, %v2869_v25 }
 0xe20   :  { %v2871_v32 = vmul.f32 0.5, %v2870_v24 }
 0xe22   :  { %v2872_v34 = vsub.f32 1.5, %v2871_v32 }
 0xe24   :  { %v2873_v50 = vmul.f32 %v3509_v61, %v2872_v34 }
 0xe26   :  { %v2877_v0 = vsel %vm2876_vm0, %v3509_v61, %v2873_v50 }
 0xe27   :  { %v2900_v51 = vmul.f32 %v2877_v0, %v4847_v45  ;;  %v2901_v55 = vmul.f32 %v2877_v0, %v4845_v30 }
 0xe29   :  { %v2910_v19 = vmul.f32 %v4882_v37, %v2900_v51  ;;  %v2911_v60 = vmul.f32 %v4884_v13, %v2901_v55 }
 0xe2b   :  { %v2921_v39 = vadd.f32 %v4888_v35, %v2910_v19  ;;  %v2922_v20 = vadd.f32 %v4890_v53, %v2911_v60 }
 0xe2d   :  { %v2928_v26 = vpack.c.bf16 %v2922_v20, %v2921_v39 }
 0xe2f   :  { %3223 = vmatmul.msk.bf16.gmra.mxu1 %vm1901_vm3, %v2928_v26 }
 0xe30   :  { %v2815_v47 = vpop.xlane.xlu0 %2814  ;;  %v2812_v33 = vpop.xlane.xlu2 %2811 }
 0xe31   :  { %v2836_v36 = vadd.f32 %v2815_v47, %v2812_v33 }
 0xe33   :  { %v2837_v7 = vrot.slane %v2836_v36, 4 }
 0xe35   :  { %v2838_v5 = vadd.f32 %v2837_v7, %v2836_v36 }
 0xe37   :  { %v2839_v56 = vrot.slane %v2838_v5, 2 }
 0xe38   :  { %v2818_v45 = vpop.xlane.xlu1 %2817  ;;  %v2821_v41 = vpop.xlane.xlu2 %2820 }
 0xe39   :  { %v2840_v30 = vadd.f32 %v2839_v56, %v2838_v5  ;;  %v2843_v38 = vadd.f32 %v2821_v41, %v2818_v45 }
 0xe3b   :  { %v2841_v46 = vrot.slane %v2840_v30, 1  ;;  %v2844_v40 = vrot.slane %v2843_v38, 4 }
 0xe3d   :  { %v2842_v6 = vadd.f32 %v2841_v46, %v2840_v30  ;;  %v2845_v54 = vadd.f32 %v2844_v40, %v2843_v38 }
 0xe3f   :  { %v2852_v48 = vmul.f32 %v2842_v6, %v4831_v12  ;;  %v2846_v1 = vrot.slane %v2845_v54, 2  ;;  %v2998_v6 = vld [vmem:[%s4952_s10 + $0x2] sm:$0x1] }
 0xe41   :  { %v2856_v9 = vadd.f32 1e-05, %v2852_v48  ;;  %v2847_v4 = vadd.f32 %v2846_v1, %v2845_v54 }
 0xe43   :  { %3510 = vrsqrt.f32 %v2856_v9  ;;  %v2848_v21 = vrot.slane %v2847_v4, 1  ;;  %vm2884_vm2 = vweird.f32 %v2856_v9 }
 0xe45   :  { %v2849_v16 = vadd.f32 %v2848_v21, %v2847_v4 }
 0xe47   :  { %v2853_v27 = vmul.f32 %v2849_v16, %v4831_v12 }
 0xe49   :  { %v3511_v22 = vpop.eup %3510  ;;  %v2857_v23 = vadd.f32 1e-05, %v2853_v27 }
 0xe4a   :  { %v2879_v49 = vmul.f32 %v3511_v22, %v2856_v9  ;;  %vm2885_vm1 = vweird.f32 %v3511_v22 }
 0xe4b   :  { %3512 = vrsqrt.f32 %v2857_v23  ;;  %vm2886_vm5 = vmor %vm2884_vm2, %vm2885_vm1  ;;  %vm2894_vm7 = vweird.f32 %v2857_v23 }
 0xe4c   :  { %v2880_v17 = vmul.f32 %v3511_v22, %v2879_v49 }
 0xe4e   :  { %v2881_v11 = vmul.f32 0.5, %v2880_v17 }
 0xe50   :  { %v2882_v59 = vsub.f32 1.5, %v2881_v11 }
 0xe51   :  { %v3513_v63 = vpop.eup %3512 }
 0xe52   :  { %v2883_v29 = vmul.f32 %v3511_v22, %v2882_v59  ;;  %v2889_v57 = vmul.f32 %v3513_v63, %v2857_v23  ;;  %vm2895_vm6 = vweird.f32 %v3513_v63 }
 0xe53   :  { %vm2896_vm8 = vmor %vm2894_vm7, %vm2895_vm6 }
 0xe54   :  { %v2890_v15 = vmul.f32 %v3513_v63, %v2889_v57  ;;  %v2887_v2 = vsel %vm2886_vm5, %v3511_v22, %v2883_v29 }
 0xe55   :  { %v2902_v28 = vmul.f32 %v2887_v2, %v4857_v14  ;;  %v2903_v42 = vmul.f32 %v2887_v2, %v4860_v58 }
 0xe56   :  { %v2891_v12 = vmul.f32 0.5, %v2890_v15 }
 0xe57   :  { %v2912_v44 = vmul.f32 %v4882_v37, %v2902_v28  ;;  %v2913_v62 = vmul.f32 %v4884_v13, %v2903_v42 }
 0xe58   :  { %v2892_v31 = vsub.f32 1.5, %v2891_v12 }
 0xe59   :  { %v2923_v10 = vadd.f32 %v4888_v35, %v2912_v44  ;;  %v2924_v18 = vadd.f32 %v4890_v53, %v2913_v62 }
 0xe5a   :  { %v2893_v8 = vmul.f32 %v3513_v63, %v2892_v31 }
 0xe5b   :  { %v2929_v43 = vpack.c.bf16 %v2924_v18, %v2923_v10 }
 0xe5c   :  { %v2897_v61 = vsel %vm2896_vm8, %v3513_v63, %v2893_v8 }
 0xe5d   :  { %3224 = vmatmul.msk.bf16.gmra.mxu1 %vm1901_vm3, %v2929_v43  ;;  %v2904_v14 = vmul.f32 %v2897_v61, %v4873_v3  ;;  %v2905_v58 = vmul.f32 %v2897_v61, %v4870_v52  ;;  %v3343_v52 = vld [vmem:[%s4952_s10 + $0x1] ss:$0 sm:$0xff] }
 0xe5f   :  { %v2914_v25 = vmul.f32 %v4882_v37, %v2904_v14  ;;  %v2915_v24 = vmul.f32 %v4884_v13, %v2905_v58 }
 0xe61   :  { %v2925_v32 = vadd.f32 %v4888_v35, %v2914_v25  ;;  %v2926_v34 = vadd.f32 %v4890_v53, %v2915_v24  ;;  %v2999_v53 = vld [vmem:[%s4952_s10 + $0x3] sm:$0x1] }
 0xe62   :  { %3253 = vpush %v2999_v53 }
 0xe63   :  { %v2930_v50 = vpack.c.bf16 %v2926_v34, %v2925_v32 }
 0xe6d   :  { %3225 = vmatmul.msk.bf16.gmra.mxu1 %vm1901_vm3, %v2930_v50  ;;  %vm3049_vm3 = vcmask 516096  }
 0xe8e   :  { %v2970_v0 = vpop.f32.mrf.mxu1 }
 0xe8f   :  { %v2971_v38 = vadd.f32 %v3343_v52, %v2970_v0 }
 0xe91   :  { %v2990_v40 = vmax.f32 %v2971_v38, 0.0 }
 0xe93   :  { %s3254_s16 = spop %3253 }
 0xe94   :  { %v3001_v54 = vstv %s3254_s16 }
 0xe96   :  { %v2972_v51 = vpop.f32.mrf.mxu1 }
 0xe97   :  { %v2973_v41 = vadd.f32 %v3343_v52, %v2972_v51 }
 0xe99   :  { %v2991_v46 = vmax.f32 %v2973_v41, 0.0 }
 0xeac   :  { %v2975_v55 = vpop.f32.mrf.mxu1 }
 0xead   :  { %v2976_v56 = vadd.f32 %v3343_v52, %v2975_v55 }
 0xeaf   :  { %v2992_v30 = vmax.f32 %v2976_v56, 0.0 }
 0xeb4   :  { %v2977_v19 = vpop.f32.mrf.mxu1 }
 0xeb5   :  { %v2978_v7 = vadd.f32 %v3343_v52, %v2977_v19 }
 0xeb7   :  { %v2993_v45 = vmax.f32 %v2978_v7, 0.0 }
 0xeda   :  { %v2980_v60 = vpop.f32.mrf.mxu1 }
 0xedb   :  { %v2981_v33 = vadd.f32 %v3343_v52, %v2980_v60 }
 0xedd   :  { %v2994_v5 = vmax.f32 %v2981_v33, 0.0 }
 0xee2   :  { %v2982_v39 = vpop.f32.mrf.mxu1 }
 0xee3   :  { %v2983_v26 = vadd.f32 %v3343_v52, %v2982_v39 }
 0xee5   :  { %v2995_v36 = vmax.f32 %v2983_v26, 0.0 }
 0xeea   :  { %v2985_v3 = vpop.f32.mrf.mxu1 }
 0xeeb   :  { %v2986_v20 = vadd.f32 %v3343_v52, %v2985_v3 }
 0xeed   :  { %v2996_v47 = vmax.f32 %v2986_v20, 0.0 }
 0xef2   :  { %v2987_v37 = vpop.f32.mrf.mxu1 }
 0xef3   :  { %v2988_v13 = vadd.f32 %v3343_v52, %v2987_v37 }
 0xef5   :  { %v2997_v35 = vmax.f32 %v2988_v13, 0.0 }
 0xef7   :  { %3226 = vmatpush.xpose.msk.msra.mxu0 %vm1910_vm4, %v2997_v35 }
 0xefb   :  { %3227 = vmatpush.xpose.msk.msra.mxu0 %vm1910_vm4, %v2996_v47 }
 0xeff   :  { %3228 = vmatpush.xpose.msk.msra.mxu0 %vm1910_vm4, %v2995_v36 }
 0xf03   :  { %3229 = vmatpush.xpose.msk.msra.mxu0 %vm1910_vm4, %v2994_v5 }
 0xf07   :  { %3230 = vmatpush.xpose.msk.msra.mxu0 %vm1910_vm4, %v2993_v45 }
 0xf0b   :  { %3231 = vmatpush.xpose.msk.msra.mxu0 %vm1910_vm4, %v2992_v30 }
 0xf0f   :  { %3232 = vmatpush.xpose.msk.msra.mxu0 %vm1910_vm4, %v2991_v46 }
 0xf13   :  { %3233 = vmatpush.xpose.msk.msra.mxu0 %vm1910_vm4, %v2990_v40 }
 0xf16   :  { %3234 = vmatmul.msk.f32.vlgmr.msra.gmra.mxu0 %vm1910_vm4, %v2998_v6 }
 0xf93   :  { %v3046_v48 = vpop.f32.mrf.mxu0 }
 0xf94   :  { %v3047_v1 = vadd.f32 %v3046_v48, %v3001_v54 }
 0xf96   :  { %3050 = vst.msk [vmem:[#allocation11] sm:$0x1] %vm3049_vm3, %v3047_v1 }
 0xf97   :  { %3061 = dma.vmem_to_hbm [thread:$0]  %s3057_s8, 16, %s3059_s19, [#allocation4]  }
 0xf98   :  { %3664 = dma.done.wait [#allocation4], 16  }
 0xf99   :  { %3665 = vsyncadd [#allocation4], 4294967280 }
 0xf9a   :  { %3066 = vsyncpa [#allocation3], 1 }
 0xf9b   :  { %3067 = vsyncpa [#allocation6], 1 }
 0xf9c   :  { %3068 = vsyncpa [#allocation9], 1 }
 0xf9d   :  { %3069 = vsyncpa [#allocation4], 1 }

</bundles_post_ra>
